<compile_context>
chip_gen: v6e
topology: v6e:2x2x1
jax: 0.10.0
libtpu: 0.0.40
codegen_flags: <defaults>
</compile_context>

<pallas_src>
import functools

import jax
import jax.numpy as jnp
from jax import lax
from jax.experimental import pallas as pl
from jax.experimental.pallas import tpu as pltpu


def ffn_kernel(x_ref, w1_ref, b1_ref, w2_ref, b2_ref, g_ref, beta_ref, o_ref,
               *, act_dtype):
    xv = x_ref[...]                                   # load once: matmul + residual
    mm = w1_ref.dtype                                 # bf16 matmul operands

    # linear1 (MXU, bf16 operands, f32 accumulate); bias + ReLU in act_dtype
    # (bf16 on v6e/v7x halves the live (tm, H) footprint; f32 on v5e).
    h = jnp.dot(xv.astype(mm), w1_ref[...], preferred_element_type=jnp.float32)
    h = jnp.maximum(h.astype(act_dtype) + b1_ref[...].astype(act_dtype),
                    jnp.zeros((), act_dtype))

    # linear2 (MXU, f32 accumulate) + bias
    y = jnp.dot(h.astype(mm), w2_ref[...], preferred_element_type=jnp.float32)
    y = y + b2_ref[...]                               # (TM, D), f32

    # dropout (eval mode) -> identity; residual add in f32
    z = y + xv.astype(jnp.float32)

    # LayerNorm over last dim (torch default eps 1e-5), all f32
    mean = jnp.mean(z, axis=-1, keepdims=True)
    zc = z - mean
    var = jnp.mean(zc * zc, axis=-1, keepdims=True)
    out = zc * lax.rsqrt(var + 1e-5) * g_ref[...] + beta_ref[...]

    o_ref[...] = out.astype(o_ref.dtype)


# ----------------------------------------------------------------------------
# wrapper helpers
# ----------------------------------------------------------------------------
def _round_up(v, m):
    return ((v + m - 1) // m) * m


def _round_down(v, m):
    return (v // m) * m


def _device_kind():
    try:
        return jax.devices()[0].device_kind.lower()
    except Exception:
        return ""


def _vmem_capacity_bytes():
    try:
        return int(pltpu.get_tpu_info().vmem_capacity_bytes)
    except Exception:
        return 64 * 1024 * 1024          # conservative (v7x per-TC capacity)


def _vmem_estimate(tm, d, h, wbytes, act_bytes):
    """Rough VMEM footprint for a (tm, d) token tile."""
    return (2 * 2 * tm * d * 4             # x + out tiles, double-buffered, f32
            + (d * h + h * d) * wbytes     # W1 + W2 resident (single buffer)
            + tm * h * (4 + act_bytes)     # matmul1 f32 acc + act-dtype intermediate
            + 3 * tm * d * 4               # y / z / zc live f32 values
            + 4 * (h + 3 * d) * 4)         # biases + LN params (+ slack)


def _choose_token_tile(n, tm_max, vmem_budget, d, h, wbytes, act_bytes, num_tc):
    """Largest sublane-aligned token tile fitting VMEM; balanced on multi-TC chips."""
    if n < 8:
        return n                                        # single block == full dim
    hi = max(8, _round_down(n, 8))                      # keep block <= token dim
    tm = min(max(8, _round_down(tm_max, 8)), hi)
    while tm > 8 and _vmem_estimate(tm, d, h, wbytes, act_bytes) > vmem_budget:
        tm = max(8, _round_down(tm // 2, 8))
    if num_tc > 1:
        # Make the grid step count a multiple of the TC count so megacore
        # sharding ("parallel" axis) gives both cores equal work.
        steps = -(-n // tm)
        if steps % num_tc:
            balanced = steps + (num_tc - steps % num_tc)
            tm_bal = min(hi, _round_up(-(-n // balanced), 8))
            if tm_bal >= 8:
                tm = tm_bal
    return tm


def ffn_forward(x, w1, b1, w2, b2, gamma, beta, *, tm=2048,
                matmul_dtype=jnp.bfloat16):
    """x: (N, D); w1: (D, H); b1: (1, H); w2: (H, D); b2/gamma/beta: (1, D)."""
    N, D = x.shape
    H = w1.shape[1]
    assert w2.shape == (H, D), "residual y + x requires input_dim == output_dim"

    kind = _device_kind()
    capacity = _vmem_capacity_bytes()
    num_tc = 2 if any(t in kind for t in ("v4", "v5p", "v7", "7x")) else 1
    # bf16 VALUs exist on v6e/v7x; keep elementwise f32 on older chips.
    act_dtype = (jnp.bfloat16 if any(t in kind for t in ("v6", "v7", "7x"))
                 else jnp.float32)

    w1m = w1.astype(matmul_dtype)
    w2m = w2.astype(matmul_dtype)
    wbytes = jnp.dtype(matmul_dtype).itemsize
    act_bytes = jnp.dtype(act_dtype).itemsize

    tm_eff = _choose_token_tile(N, tm, capacity // 2, D, H, wbytes, act_bytes,
                                num_tc)
    grid = (pl.cdiv(N, tm_eff),)

    est = _vmem_estimate(tm_eff, D, H, wbytes, act_bytes)
    vmem_limit = int(min(max(int(est * 1.5), 32 * 1024 * 1024),
                         int(0.75 * capacity)))

    kernel = functools.partial(ffn_kernel, act_dtype=act_dtype)

    def call(single_buffer_invariants):
        # Grid-invariant operands: constant index_map, so a single buffer
        # suffices (reclaims ~0.5 MiB of VMEM vs. default double-buffering).
        inv = ({"pipeline_mode": pl.Buffered(1)}
               if single_buffer_invariants else {})
        grid_spec = pltpu.PrefetchScalarGridSpec(
            num_scalar_prefetch=0,
            grid=grid,
            in_specs=[
                pl.BlockSpec((tm_eff, D), lambda i: (i, 0)),          # x tile
                pl.BlockSpec((D, H), lambda i: (0, 0), **inv),        # W1
                pl.BlockSpec((1, H), lambda i: (0, 0), **inv),        # b1
                pl.BlockSpec((H, D), lambda i: (0, 0), **inv),        # W2
                pl.BlockSpec((1, D), lambda i: (0, 0), **inv),        # b2
                pl.BlockSpec((1, D), lambda i: (0, 0), **inv),        # gamma
                pl.BlockSpec((1, D), lambda i: (0, 0), **inv),        # beta
            ],
            out_specs=pl.BlockSpec((tm_eff, D), lambda i: (i, 0)),
        )
        return pl.pallas_call(
            kernel,
            out_shape=jax.ShapeDtypeStruct((N, D), x.dtype),
            grid_spec=grid_spec,
            compiler_params=pltpu.CompilerParams(
                dimension_semantics=("parallel",),
                vmem_limit_bytes=vmem_limit),
        )(x, w1m, b1, w2m, b2, gamma, beta)

    try:
        return call(True)
    except Exception:
        # Fallback if this jax build rejects pipeline_mode=pl.Buffered(1);
        # identical semantics, default double-buffered invariant operands.
        return call(False)


def ffn_reference(x, w1, b1, w2, b2, gamma, beta, matmul_dtype=jnp.bfloat16):
    # Reference rounds matmul operands through the same dtype the kernel uses,
    # so the comparison isolates kernel correctness (not bf16 quantization).
    f32 = jnp.float32
    xm = x.astype(matmul_dtype).astype(f32)
    w1m = w1.astype(matmul_dtype).astype(f32)
    w2m = w2.astype(matmul_dtype).astype(f32)
    h = jnp.maximum(xm @ w1m + b1, 0.0)
    y = h.astype(matmul_dtype).astype(f32) @ w2m + b2
    z = y + x
    mean = jnp.mean(z, axis=-1, keepdims=True)
    var = jnp.mean((z - mean) ** 2, axis=-1, keepdims=True)
    return (z - mean) / jnp.sqrt(var + 1e-5) * gamma + beta


if __name__ == "__main__":
    key = jax.random.PRNGKey(0)
    D = 128          # input_dim == output_dim (required by residual y + x)
    H = 1024         # hidden width fixed by the module
    N = 64           # batch*seq tokens (small demo)

    k = jax.random.split(key, 5)
    # deterministic synthetic parameters (torch-Linear-like scale 1/sqrt(fan_in))
    w1 = jax.random.uniform(k[0], (D, H), jnp.float32, -1, 1) / jnp.sqrt(D)
    b1 = jax.random.uniform(k[1], (1, H), jnp.float32, -1, 1) / jnp.sqrt(D)
    w2 = jax.random.uniform(k[2], (H, D), jnp.float32, -1, 1) / jnp.sqrt(H)
    b2 = jax.random.uniform(k[3], (1, D), jnp.float32, -1, 1) / jnp.sqrt(H)
    gamma = jnp.ones((1, D), jnp.float32)
    beta = jnp.zeros((1, D), jnp.float32)
    x = jax.random.normal(k[4], (N, D), jnp.float32)

    out = jax.block_until_ready(ffn_forward(x, w1, b1, w2, b2, gamma, beta))
    ref = ffn_reference(x, w1, b1, w2, b2, gamma, beta)
    assert out.shape == (N, D)
    assert jnp.allclose(out, ref, atol=1e-2, rtol=1e-2), "mismatch vs reference"

    # Ragged token count: exercises the pad-free boundary-masked path.
    x_r = jax.random.normal(key, (20, D), jnp.float32)
    out_r = jax.block_until_ready(ffn_forward(x_r, w1, b1, w2, b2, gamma, beta))
    ref_r = ffn_reference(x_r, w1, b1, w2, b2, gamma, beta)
    assert out_r.shape == (20, D)
    assert jnp.allclose(out_r, ref_r, atol=1e-2, rtol=1e-2), "mismatch (ragged N)"

    print("KERNEL_OK")
</pallas_src>

<mosaic_0001>
module attributes {stable_mosaic.version = 11 : i64} {
  func.func @ffn_kernel(%arg0: i32, %arg1: memref<64x128xf32, #tpu.memory_space<vmem>>, %arg2: memref<128x1024xbf16, #tpu.memory_space<vmem>>, %arg3: memref<1x1024xf32, #tpu.memory_space<vmem>>, %arg4: memref<1024x128xbf16, #tpu.memory_space<vmem>>, %arg5: memref<1x128xf32, #tpu.memory_space<vmem>>, %arg6: memref<1x128xf32, #tpu.memory_space<vmem>>, %arg7: memref<1x128xf32, #tpu.memory_space<vmem>>, %arg8: memref<64x128xf32, #tpu.memory_space<vmem>>) attributes {dimension_semantics = [#tpu.dimension_semantics<parallel>], iteration_bounds = array<i64: 1>, scalar_prefetch = 0 : i64, scratch_operands = 0 : i64, tpu.core_type = #tpu.core_type<tc>, window_params = [{transform_indices = @transform_0, window_bounds = array<i64: 64, 128>}, {pipeline_mode = #tpu.pipeline_mode<synchronous>, transform_indices = @transform_1, window_bounds = array<i64: 128, 1024>}, {pipeline_mode = #tpu.pipeline_mode<synchronous>, transform_indices = @transform_2, window_bounds = array<i64: 1, 1024>}, {pipeline_mode = #tpu.pipeline_mode<synchronous>, transform_indices = @transform_3, window_bounds = array<i64: 1024, 128>}, {pipeline_mode = #tpu.pipeline_mode<synchronous>, transform_indices = @transform_4, window_bounds = array<i64: 1, 128>}, {pipeline_mode = #tpu.pipeline_mode<synchronous>, transform_indices = @transform_5, window_bounds = array<i64: 1, 128>}, {pipeline_mode = #tpu.pipeline_mode<synchronous>, transform_indices = @transform_6, window_bounds = array<i64: 1, 128>}, {transform_indices = @transform_7, window_bounds = array<i64: 64, 128>}]} {
    %c0 = arith.constant 0 : index
    %c0_0 = arith.constant 0 : index
    %0 = vector.load %arg1[%c0, %c0_0] : memref<64x128xf32, #tpu.memory_space<vmem>>, vector<64x128xf32>
    %1 = arith.truncf %0 : vector<64x128xf32> to vector<64x128xbf16>
    %c0_1 = arith.constant 0 : index
    %c0_2 = arith.constant 0 : index
    %2 = vector.load %arg2[%c0_1, %c0_2] : memref<128x1024xbf16, #tpu.memory_space<vmem>>, vector<128x1024xbf16>
    %cst = arith.constant dense<0.000000e+00> : vector<64x1024xf32>
    %3 = tpu.matmul %1, %2, %cst {dimension_numbers = #tpu.dot_dimension_numbers<[1], [0], [0], [1], [0, 0, 1, 1], [], []>} : vector<64x128xbf16>, vector<128x1024xbf16>, vector<64x1024xf32> -> vector<64x1024xf32>
    %c0_3 = arith.constant 0 : index
    %c0_4 = arith.constant 0 : index
    %4 = vector.load %arg3[%c0_3, %c0_4] : memref<1x1024xf32, #tpu.memory_space<vmem>>, vector<1x1024xf32>
    %5 = vector.broadcast %4 : vector<1x1024xf32> to vector<64x1024xf32>
    %6 = arith.addf %3, %5 : vector<64x1024xf32>
    %cst_5 = arith.constant 0.000000e+00 : f32
    %7 = vector.broadcast %cst_5 : f32 to vector<64x1024xf32>
    %8 = arith.maximumf %6, %7 : vector<64x1024xf32>
    %9 = arith.truncf %8 : vector<64x1024xf32> to vector<64x1024xbf16>
    %c0_6 = arith.constant 0 : index
    %c0_7 = arith.constant 0 : index
    %10 = vector.load %arg4[%c0_6, %c0_7] : memref<1024x128xbf16, #tpu.memory_space<vmem>>, vector<1024x128xbf16>
    %cst_8 = arith.constant dense<0.000000e+00> : vector<64x128xf32>
    %11 = tpu.matmul %9, %10, %cst_8 {dimension_numbers = #tpu.dot_dimension_numbers<[1], [0], [0], [1], [0, 0, 1, 1], [], []>} : vector<64x1024xbf16>, vector<1024x128xbf16>, vector<64x128xf32> -> vector<64x128xf32>
    %c0_9 = arith.constant 0 : index
    %c0_10 = arith.constant 0 : index
    %12 = vector.load %arg5[%c0_9, %c0_10] : memref<1x128xf32, #tpu.memory_space<vmem>>, vector<1x128xf32>
    %13 = vector.broadcast %12 : vector<1x128xf32> to vector<64x128xf32>
    %14 = arith.addf %11, %13 : vector<64x128xf32>
    %15 = arith.addf %14, %0 : vector<64x128xf32>
    %cst_11 = arith.constant dense<0.000000e+00> : vector<64xf32>
    %16 = vector.multi_reduction <add>, %15, %cst_11 [1] : vector<64x128xf32> to vector<64xf32>
    %17 = vector.shape_cast %16 : vector<64xf32> to vector<64x1xf32>
    %cst_12 = arith.constant 1.280000e+02 : f32
    %18 = vector.broadcast %cst_12 : f32 to vector<64x1xf32>
    %19 = arith.divf %17, %18 : vector<64x1xf32>
    %20 = vector.broadcast %19 : vector<64x1xf32> to vector<64x128xf32>
    %21 = arith.subf %15, %20 : vector<64x128xf32>
    %22 = arith.mulf %21, %21 : vector<64x128xf32>
    %cst_13 = arith.constant dense<0.000000e+00> : vector<64xf32>
    %23 = vector.multi_reduction <add>, %22, %cst_13 [1] : vector<64x128xf32> to vector<64xf32>
    %24 = vector.shape_cast %23 : vector<64xf32> to vector<64x1xf32>
    %cst_14 = arith.constant 1.280000e+02 : f32
    %25 = vector.broadcast %cst_14 : f32 to vector<64x1xf32>
    %26 = arith.divf %24, %25 : vector<64x1xf32>
    %cst_15 = arith.constant 9.99999974E-6 : f32
    %27 = vector.broadcast %cst_15 : f32 to vector<64x1xf32>
    %28 = arith.addf %26, %27 : vector<64x1xf32>
    %29 = math.rsqrt %28 : vector<64x1xf32>
    %30 = vector.broadcast %29 : vector<64x1xf32> to vector<64x128xf32>
    %31 = arith.mulf %21, %30 : vector<64x128xf32>
    %c0_16 = arith.constant 0 : index
    %c0_17 = arith.constant 0 : index
    %32 = vector.load %arg6[%c0_16, %c0_17] : memref<1x128xf32, #tpu.memory_space<vmem>>, vector<1x128xf32>
    %33 = vector.broadcast %32 : vector<1x128xf32> to vector<64x128xf32>
    %34 = arith.mulf %31, %33 : vector<64x128xf32>
    %c0_18 = arith.constant 0 : index
    %c0_19 = arith.constant 0 : index
    %35 = vector.load %arg7[%c0_18, %c0_19] : memref<1x128xf32, #tpu.memory_space<vmem>>, vector<1x128xf32>
    %36 = vector.broadcast %35 : vector<1x128xf32> to vector<64x128xf32>
    %37 = arith.addf %34, %36 : vector<64x128xf32>
    %c0_20 = arith.constant 0 : index
    %c0_21 = arith.constant 0 : index
    %38 = vector.load %arg8[%c0_20, %c0_21] : memref<64x128xf32, #tpu.memory_space<vmem>>, vector<64x128xf32>
    tpu.vector_store %arg8[%c0_20, %c0_21], %37 {strides = array<i32>} : memref<64x128xf32, #tpu.memory_space<vmem>>, vector<64x128xf32>,
    return
  }
  func.func @transform_0(%arg0: i32) -> (i32, i32) {
    %c0_i32 = arith.constant 0 : i32
    %c0_i32_0 = arith.constant 0 : i32
    return %arg0, %c0_i32 : i32, i32
  }
  func.func @transform_1(%arg0: i32) -> (i32, i32) {
    %c0_i32 = arith.constant 0 : i32
    %c0_i32_0 = arith.constant 0 : i32
    %c0_i32_1 = arith.constant 0 : i32
    return %c0_i32, %c0_i32_0 : i32, i32
  }
  func.func @transform_2(%arg0: i32) -> (i32, i32) {
    %c0_i32 = arith.constant 0 : i32
    %c0_i32_0 = arith.constant 0 : i32
    %c0_i32_1 = arith.constant 0 : i32
    return %c0_i32, %c0_i32_0 : i32, i32
  }
  func.func @transform_3(%arg0: i32) -> (i32, i32) {
    %c0_i32 = arith.constant 0 : i32
    %c0_i32_0 = arith.constant 0 : i32
    %c0_i32_1 = arith.constant 0 : i32
    return %c0_i32, %c0_i32_0 : i32, i32
  }
  func.func @transform_4(%arg0: i32) -> (i32, i32) {
    %c0_i32 = arith.constant 0 : i32
    %c0_i32_0 = arith.constant 0 : i32
    %c0_i32_1 = arith.constant 0 : i32
    return %c0_i32, %c0_i32_0 : i32, i32
  }
  func.func @transform_5(%arg0: i32) -> (i32, i32) {
    %c0_i32 = arith.constant 0 : i32
    %c0_i32_0 = arith.constant 0 : i32
    %c0_i32_1 = arith.constant 0 : i32
    return %c0_i32, %c0_i32_0 : i32, i32
  }
  func.func @transform_6(%arg0: i32) -> (i32, i32) {
    %c0_i32 = arith.constant 0 : i32
    %c0_i32_0 = arith.constant 0 : i32
    %c0_i32_1 = arith.constant 0 : i32
    return %c0_i32, %c0_i32_0 : i32, i32
  }
  func.func @transform_7(%arg0: i32) -> (i32, i32) {
    %c0_i32 = arith.constant 0 : i32
    %c0_i32_0 = arith.constant 0 : i32
    return %arg0, %c0_i32 : i32, i32
  }
}

module attributes {stable_mosaic.version = 11 : i64} {
  func.func @ffn_kernel(%arg0: i32, %arg1: memref<64x128xf32, #tpu.memory_space<vmem>>, %arg2: memref<128x1024xbf16, #tpu.memory_space<vmem>>, %arg3: memref<1x1024xf32, #tpu.memory_space<vmem>>, %arg4: memref<1024x128xbf16, #tpu.memory_space<vmem>>, %arg5: memref<1x128xf32, #tpu.memory_space<vmem>>, %arg6: memref<1x128xf32, #tpu.memory_space<vmem>>, %arg7: memref<1x128xf32, #tpu.memory_space<vmem>>, %arg8: memref<64x128xf32, #tpu.memory_space<vmem>>) attributes {dimension_semantics = [#tpu.dimension_semantics<parallel>], iteration_bounds = array<i64: 1>, scalar_prefetch = 0 : i64, scratch_operands = 0 : i64, tpu.core_type = #tpu.core_type<tc>, window_params = [{transform_indices = @transform_0, window_bounds = array<i64: 64, 128>}, {pipeline_mode = #tpu.pipeline_mode<synchronous>, transform_indices = @transform_1, window_bounds = array<i64: 128, 1024>}, {pipeline_mode = #tpu.pipeline_mode<synchronous>, transform_indices = @transform_2, window_bounds = array<i64: 1, 1024>}, {pipeline_mode = #tpu.pipeline_mode<synchronous>, transform_indices = @transform_3, window_bounds = array<i64: 1024, 128>}, {pipeline_mode = #tpu.pipeline_mode<synchronous>, transform_indices = @transform_4, window_bounds = array<i64: 1, 128>}, {pipeline_mode = #tpu.pipeline_mode<synchronous>, transform_indices = @transform_5, window_bounds = array<i64: 1, 128>}, {pipeline_mode = #tpu.pipeline_mode<synchronous>, transform_indices = @transform_6, window_bounds = array<i64: 1, 128>}, {transform_indices = @transform_7, window_bounds = array<i64: 64, 128>}]} {
    %c0 = arith.constant 0 : index
    %c0_0 = arith.constant 0 : index
    %0 = vector.load %arg1[%c0, %c0_0] : memref<64x128xf32, #tpu.memory_space<vmem>>, vector<64x128xf32>
    %1 = arith.truncf %0 : vector<64x128xf32> to vector<64x128xbf16>
    %c0_1 = arith.constant 0 : index
    %c0_2 = arith.constant 0 : index
    %2 = vector.load %arg2[%c0_1, %c0_2] : memref<128x1024xbf16, #tpu.memory_space<vmem>>, vector<128x1024xbf16>
    %cst = arith.constant dense<0.000000e+00> : vector<64x1024xf32>
    %3 = tpu.matmul %1, %2, %cst {dimension_numbers = #tpu.dot_dimension_numbers<[1], [0], [0], [1], [0, 0, 1, 1], [], []>} : vector<64x128xbf16>, vector<128x1024xbf16>, vector<64x1024xf32> -> vector<64x1024xf32>
    %c0_3 = arith.constant 0 : index
    %c0_4 = arith.constant 0 : index
    %4 = vector.load %arg3[%c0_3, %c0_4] : memref<1x1024xf32, #tpu.memory_space<vmem>>, vector<1x1024xf32>
    %5 = vector.broadcast %4 : vector<1x1024xf32> to vector<64x1024xf32>
    %6 = arith.addf %3, %5 : vector<64x1024xf32>
    %cst_5 = arith.constant 0.000000e+00 : f32
    %7 = vector.broadcast %cst_5 : f32 to vector<64x1024xf32>
    %8 = arith.maximumf %6, %7 : vector<64x1024xf32>
    %9 = arith.truncf %8 : vector<64x1024xf32> to vector<64x1024xbf16>
    %c0_6 = arith.constant 0 : index
    %c0_7 = arith.constant 0 : index
    %10 = vector.load %arg4[%c0_6, %c0_7] : memref<1024x128xbf16, #tpu.memory_space<vmem>>, vector<1024x128xbf16>
    %cst_8 = arith.constant dense<0.000000e+00> : vector<64x128xf32>
    %11 = tpu.matmul %9, %10, %cst_8 {dimension_numbers = #tpu.dot_dimension_numbers<[1], [0], [0], [1], [0, 0, 1, 1], [], []>} : vector<64x1024xbf16>, vector<1024x128xbf16>, vector<64x128xf32> -> vector<64x128xf32>
    %c0_9 = arith.constant 0 : index
    %c0_10 = arith.constant 0 : index
    %12 = vector.load %arg5[%c0_9, %c0_10] : memref<1x128xf32, #tpu.memory_space<vmem>>, vector<1x128xf32>
    %13 = vector.broadcast %12 : vector<1x128xf32> to vector<64x128xf32>
    %14 = arith.addf %11, %13 : vector<64x128xf32>
    %15 = arith.addf %14, %0 : vector<64x128xf32>
    %cst_11 = arith.constant dense<0.000000e+00> : vector<64xf32>
    %16 = vector.multi_reduction <add>, %15, %cst_11 [1] : vector<64x128xf32> to vector<64xf32>
    %17 = vector.shape_cast %16 : vector<64xf32> to vector<64x1xf32>
    %cst_12 = arith.constant 1.280000e+02 : f32
    %18 = vector.broadcast %cst_12 : f32 to vector<64x1xf32>
    %19 = arith.divf %17, %18 : vector<64x1xf32>
    %20 = vector.broadcast %19 : vector<64x1xf32> to vector<64x128xf32>
    %21 = arith.subf %15, %20 : vector<64x128xf32>
    %22 = arith.mulf %21, %21 : vector<64x128xf32>
    %cst_13 = arith.constant dense<0.000000e+00> : vector<64xf32>
    %23 = vector.multi_reduction <add>, %22, %cst_13 [1] : vector<64x128xf32> to vector<64xf32>
    %24 = vector.shape_cast %23 : vector<64xf32> to vector<64x1xf32>
    %cst_14 = arith.constant 1.280000e+02 : f32
    %25 = vector.broadcast %cst_14 : f32 to vector<64x1xf32>
    %26 = arith.divf %24, %25 : vector<64x1xf32>
    %cst_15 = arith.constant 9.99999974E-6 : f32
    %27 = vector.broadcast %cst_15 : f32 to vector<64x1xf32>
    %28 = arith.addf %26, %27 : vector<64x1xf32>
    %29 = math.rsqrt %28 : vector<64x1xf32>
    %30 = vector.broadcast %29 : vector<64x1xf32> to vector<64x128xf32>
    %31 = arith.mulf %21, %30 : vector<64x128xf32>
    %c0_16 = arith.constant 0 : index
    %c0_17 = arith.constant 0 : index
    %32 = vector.load %arg6[%c0_16, %c0_17] : memref<1x128xf32, #tpu.memory_space<vmem>>, vector<1x128xf32>
    %33 = vector.broadcast %32 : vector<1x128xf32> to vector<64x128xf32>
    %34 = arith.mulf %31, %33 : vector<64x128xf32>
    %c0_18 = arith.constant 0 : index
    %c0_19 = arith.constant 0 : index
    %35 = vector.load %arg7[%c0_18, %c0_19] : memref<1x128xf32, #tpu.memory_space<vmem>>, vector<1x128xf32>
    %36 = vector.broadcast %35 : vector<1x128xf32> to vector<64x128xf32>
    %37 = arith.addf %34, %36 : vector<64x128xf32>
    %c0_20 = arith.constant 0 : index
    %c0_21 = arith.constant 0 : index
    %38 = vector.load %arg8[%c0_20, %c0_21] : memref<64x128xf32, #tpu.memory_space<vmem>>, vector<64x128xf32>
    tpu.vector_store %arg8[%c0_20, %c0_21], %37 {strides = array<i32>} : memref<64x128xf32, #tpu.memory_space<vmem>>, vector<64x128xf32>,
    return
  }
  func.func @transform_0(%arg0: i32) -> (i32, i32) {
    %c0_i32 = arith.constant 0 : i32
    %c0_i32_0 = arith.constant 0 : i32
    return %arg0, %c0_i32 : i32, i32
  }
  func.func @transform_1(%arg0: i32) -> (i32, i32) {
    %c0_i32 = arith.constant 0 : i32
    %c0_i32_0 = arith.constant 0 : i32
    %c0_i32_1 = arith.constant 0 : i32
    return %c0_i32, %c0_i32_0 : i32, i32
  }
  func.func @transform_2(%arg0: i32) -> (i32, i32) {
    %c0_i32 = arith.constant 0 : i32
    %c0_i32_0 = arith.constant 0 : i32
    %c0_i32_1 = arith.constant 0 : i32
    return %c0_i32, %c0_i32_0 : i32, i32
  }
  func.func @transform_3(%arg0: i32) -> (i32, i32) {
    %c0_i32 = arith.constant 0 : i32
    %c0_i32_0 = arith.constant 0 : i32
    %c0_i32_1 = arith.constant 0 : i32
    return %c0_i32, %c0_i32_0 : i32, i32
  }
  func.func @transform_4(%arg0: i32) -> (i32, i32) {
    %c0_i32 = arith.constant 0 : i32
    %c0_i32_0 = arith.constant 0 : i32
    %c0_i32_1 = arith.constant 0 : i32
    return %c0_i32, %c0_i32_0 : i32, i32
  }
  func.func @transform_5(%arg0: i32) -> (i32, i32) {
    %c0_i32 = arith.constant 0 : i32
    %c0_i32_0 = arith.constant 0 : i32
    %c0_i32_1 = arith.constant 0 : i32
    return %c0_i32, %c0_i32_0 : i32, i32
  }
  func.func @transform_6(%arg0: i32) -> (i32, i32) {
    %c0_i32 = arith.constant 0 : i32
    %c0_i32_0 = arith.constant 0 : i32
    %c0_i32_1 = arith.constant 0 : i32
    return %c0_i32, %c0_i32_0 : i32, i32
  }
  func.func @transform_7(%arg0: i32) -> (i32, i32) {
    %c0_i32 = arith.constant 0 : i32
    %c0_i32_0 = arith.constant 0 : i32
    return %arg0, %c0_i32 : i32, i32
  }
}

</mosaic_0001>

<bundles_post_ra>
// kernel: tpu_custom_call.1
= control target key start
LH: loop header
LB: loop body
LE: loop exit
PB: predicated region body
PF: predicated region fallthrough
CT: control target
= control target key end

     0   :  { %12 = vsyncpa [#allocation3], 0  ;;  %s2654_s0 = inlined_call_operand.hbm [shape: f32[64,128], index: 0, kind: input, shape index: {}]   ;;  %s2655_s1 = inlined_call_operand.hbm [shape: bf16[128,1024], index: 1, kind: input, shape index: {}]   ;;  %s2656_s2 = inlined_call_operand.hbm [shape: f32[1,1024], index: 2, kind: input, shape index: {}]   ;;  %s2657_s3 = inlined_call_operand.hbm [shape: bf16[1024,128], index: 3, kind: input, shape index: {}]   ;;  %s2658_s4 = inlined_call_operand.vmem [shape: f32[1,128], index: 4, kind: input, shape index: {}]   ;;  %s2659_s5 = inlined_call_operand.vmem [shape: f32[1,128], index: 5, kind: input, shape index: {}]   ;;  %s2660_s6 = inlined_call_operand.vmem [shape: f32[1,128], index: 6, kind: input, shape index: {}]   ;;  %s2661_s7 = inlined_call_operand.hbm [shape: f32[64,128], index: 7, kind: output, shape index: {}]  }
   0x1   :  { %13 = vsyncpa [#allocation6], 0 }
   0x2   :  { %14 = vsyncpa [#allocation9], 0 }
   0x3   :  { %15 = vsyncpa [#allocation4], 0  ;;  %s2339_s24 = smov [#allocation5]  }
   0x4   :  { %s33_s25 = sshll.u32 %s2339_s24, 4  ;;  %s34_s25 = int_to_ptr.vmem [resolvable:$true] %s33_s25 }
   0x5   :  { %s2239_s26 = scalar_lea.vmem %s34_s25, 8192  ;;  %p2244_p1 = scmp.lt.s32.totalorder %s34_s25, %s34_s25 }
   0x6   :  { %p2240_p0 = scmp.ne.s32.totalorder %s34_s25, %s2239_s26  ;;  %p2245_p2 = scmp.lt.s32.totalorder %s2239_s26, %s2239_s26 }
   0x8   :  { %p2246_p3 = por %p2245_p2, %p2244_p1 }
   0xa   :  { %p2247_p4 = pnand %p2246_p3, %p2240_p0 }
   0xc   :  { %2250 = shalt.err (!%p2247_p4)
}
   0xd   :  { %s2340_s27 = smov 512   ;;  %s2341_s28 = smov 32  }
   0xe   :  { %39 = dma.hbm_to_vmem [thread:$0]  %s2655_s1, 8192, %s34_s25, [#allocation6], %s2340_s27, %s2340_s27, %s2341_s28  }
   0xf   :  { %s2342_s8 = smov [#allocation2]  }
  0x10   :  { %s21_s9 = sshll.u32 %s2342_s8, 4  ;;  %s22_s9 = int_to_ptr.vmem [resolvable:$true] %s21_s9 }
  0x11   :  { %s2259_s10 = scalar_lea.vmem %s22_s9, 1024  ;;  %p2264_p6 = scmp.lt.s32.totalorder %s22_s9, %s22_s9 }
  0x12   :  { %p2260_p5 = scmp.ne.s32.totalorder %s22_s9, %s2259_s10  ;;  %p2265_p7 = scmp.lt.s32.totalorder %s2259_s10, %s2259_s10 }
  0x14   :  { %p2266_p8 = por %p2265_p7, %p2264_p6 }
  0x16   :  { %p2267_p9 = pnand %p2266_p8, %p2260_p5 }
  0x18   :  { %2270 = shalt.err (!%p2267_p9)
}
  0x19   :  { %s2343_s11 = smov 128   ;;  %s2344_s12 = smov 8  }
  0x1a   :  { %27 = dma.hbm_to_vmem [thread:$0]  %s2654_s0, 1024, %s22_s9, [#allocation3], %s2343_s11, %s2343_s11, %s2344_s12  }
  0x1b   :  { %s2345_s1 = smov [#allocation7]   ;;  %s2346_s16 = smov [#allocation8]  }
  0x1c   :  { %s46_s15 = sshll.u32 %s2345_s1, 4  ;;  %s55_s17 = sshll.u32 %s2346_s16, 4  ;;  %s47_s15 = int_to_ptr.vmem [resolvable:$true] %s46_s15  ;;  %s56_s17 = int_to_ptr.vmem [resolvable:$true] %s55_s17 }
  0x1d   :  { %s2279_s18 = scalar_lea.vmem %s47_s15, 128  ;;  %p2284_p11 = scmp.lt.s32.totalorder %s47_s15, %s47_s15 }
  0x1e   :  { %p2280_p10 = scmp.ne.s32.totalorder %s47_s15, %s2279_s18  ;;  %p2285_p12 = scmp.lt.s32.totalorder %s2279_s18, %s2279_s18 }
  0x20   :  { %p2286_p13 = por %p2285_p12, %p2284_p11 }
  0x22   :  { %p2287_p0 = pnand %p2286_p13, %p2280_p10 }
  0x24   :  { %2290 = shalt.err (!%p2287_p0)
}
  0x25   :  { %49 = dma.hbm_to_vmem [thread:$0]  %s2656_s2, 128, %s47_s15, [#allocation6]  }
  0x26   :  { %s2299_s21 = scalar_lea.vmem %s56_s17, 8192  ;;  %p2304_p2 = scmp.lt.s32.totalorder %s56_s17, %s56_s17 }
  0x27   :  { %p2300_p1 = scmp.ne.s32.totalorder %s56_s17, %s2299_s21  ;;  %p2305_p3 = scmp.lt.s32.totalorder %s2299_s21, %s2299_s21 }
  0x29   :  { %p2306_p4 = por %p2305_p3, %p2304_p2 }
  0x2b   :  { %p2307_p5 = pnand %p2306_p4, %p2300_p1 }
  0x2d   :  { %2310 = shalt.err (!%p2307_p5)
}
  0x2e   :  { %s2347_s0 = smov 64   ;;  %s2348_s22 = smov 4  }
  0x2f   :  { %61 = dma.hbm_to_vmem [thread:$0]  %s2657_s3, 8192, %s56_s17, [#allocation9], %s2347_s0, %s2347_s0, %s2348_s22  }
  0x30   :  { %2331 = dma.done.wait [#allocation3], 1024  }
  0x31   :  { %2332 = vsyncadd [#allocation3], 4294966272 }
  0x32   :  { %2333 = dma.done.wait [#allocation6], 8320  }
  0x33   :  { %2334 = vsyncadd [#allocation6], 4294958976 }
  0x34   :  { %2335 = dma.done.wait [#allocation9], 8192  }
  0x35   :  { %2336 = vsyncadd [#allocation9], 4294959104  ;;  %v2349_v0 = vmov 0   ;;  %v149_v1 = vld [vmem:[#allocation5 + $0x1c0] sm:$0xff]  ;;  %v150_v3 = vld [vmem:[#allocation5 + $0x1c8] sm:$0xff] }
  0x36   :  { %551 = vmatprep.mubr.bf16.mxu0 %v2349_v0  ;;  %624 = vmatprep.mubr.bf16.mxu1 %v2349_v0  ;;  %v153_v2 = vld [vmem:[#allocation5 + $0x1e0] sm:$0xff]  ;;  %v154_v5 = vld [vmem:[#allocation5 + $0x1e8] sm:$0xff]  ;;  %v151_v60 = vld [vmem:[#allocation5 + $0x1d0] sm:$0xff] }
  0x37   :  { %v1897_v4 = vcombine.high %v149_v1, %v153_v2  ;;  %v1896_v6 = vcombine.low %v149_v1, %v153_v2  ;;  %v141_v7 = vld [vmem:[#allocation5 + $0x180] sm:$0xff]  ;;  %v1899_v9 = vcombine.high %v150_v3, %v154_v5  ;;  %v1898_v10 = vcombine.low %v150_v3, %v154_v5  ;;  %v142_v12 = vld [vmem:[#allocation5 + $0x188] sm:$0xff]  ;;  %v155_v63 = vld [vmem:[#allocation5 + $0x1f0] sm:$0xff] }
  0x38   :  { %v145_v8 = vld [vmem:[#allocation5 + $0x1a0] sm:$0xff]  ;;  %v146_v13 = vld [vmem:[#allocation5 + $0x1a8] sm:$0xff]  ;;  %v156_v5 = vld [vmem:[#allocation5 + $0x1f8] sm:$0xff] }
  0x39   :  { %v1889_v11 = vcombine.high %v141_v7, %v145_v8  ;;  %v133_v14 = vld [vmem:[#allocation5 + $0x140] sm:$0xff]  ;;  %519 = vmatprep.subr.bf16.mxu0 %v1897_v4  ;;  %v1891_v15 = vcombine.high %v142_v12, %v146_v13  ;;  %v134_v17 = vld [vmem:[#allocation5 + $0x148] sm:$0xff]  ;;  %592 = vmatprep.subr.bf16.mxu1 %v1899_v9  ;;  %v1888_v19 = vcombine.low %v141_v7, %v145_v8  ;;  %v152_v4 = vld [vmem:[#allocation5 + $0x1d8] sm:$0xff] }
  0x3a   :  { %v137_v16 = vld [vmem:[#allocation5 + $0x160] sm:$0xff]  ;;  %v138_v18 = vld [vmem:[#allocation5 + $0x168] sm:$0xff]  ;;  %520 = vmatpush1.bf16.msra.mxu0 %v1896_v6  ;;  %593 = vmatpush1.bf16.msra.mxu1 %v1898_v10  ;;  %v1890_v20 = vcombine.low %v142_v12, %v146_v13  ;;  %v143_v7 = vld [vmem:[#allocation5 + $0x190] sm:$0xff]  ;;  %v1901_v9 = vcombine.high %v151_v60, %v155_v63 }
  0x3b   :  { %521 = vmatprep.subr.bf16.mxu0 %v1889_v11  ;;  %v1881_v21 = vcombine.high %v133_v14, %v137_v16  ;;  %594 = vmatprep.subr.bf16.mxu1 %v1891_v15  ;;  %v1883_v22 = vcombine.high %v134_v17, %v138_v18  ;;  %v125_v23 = vld [vmem:[#allocation5 + $0x100] sm:$0xff]  ;;  %v126_v25 = vld [vmem:[#allocation5 + $0x108] sm:$0xff]  ;;  %v1880_v27 = vcombine.low %v133_v14, %v137_v16  ;;  %v147_v10 = vld [vmem:[#allocation5 + $0x1b0] sm:$0xff] }
  0x3c   :  { %v129_v24 = vld [vmem:[#allocation5 + $0x120] sm:$0xff]  ;;  %v130_v26 = vld [vmem:[#allocation5 + $0x128] sm:$0xff]  ;;  %v1882_v28 = vcombine.low %v134_v17, %v138_v18  ;;  %v1903_v11 = vcombine.high %v152_v4, %v156_v5  ;;  %v144_v12 = vld [vmem:[#allocation5 + $0x198] sm:$0xff]  ;;  %v1900_v15 = vcombine.low %v151_v60, %v155_v63  ;;  %v1902_v17 = vcombine.low %v152_v4, %v156_v5 }
  0x3d   :  { %v1873_v29 = vcombine.high %v125_v23, %v129_v24  ;;  %v1875_v30 = vcombine.high %v126_v25, %v130_v26  ;;  %v117_v31 = vld [vmem:[#allocation5 + $0xc0] sm:$0xff]  ;;  %v118_v33 = vld [vmem:[#allocation5 + $0xc8] sm:$0xff]  ;;  %v1872_v35 = vcombine.low %v125_v23, %v129_v24  ;;  %v1874_v36 = vcombine.low %v126_v25, %v130_v26  ;;  %v148_v14 = vld [vmem:[#allocation5 + $0x1b8] sm:$0xff] }
  0x3e   :  { %522 = vmatpush1.bf16.msra.mxu0 %v1888_v19  ;;  %595 = vmatpush1.bf16.msra.mxu1 %v1890_v20  ;;  %v121_v32 = vld [vmem:[#allocation5 + $0xe0] sm:$0xff]  ;;  %v122_v34 = vld [vmem:[#allocation5 + $0xe8] sm:$0xff]  ;;  %v135_v16 = vld [vmem:[#allocation5 + $0x150] sm:$0xff]  ;;  %v1893_v18 = vcombine.high %v143_v7, %v147_v10  ;;  %v1895_v20 = vcombine.high %v144_v12, %v148_v14  ;;  %v1892_v25 = vcombine.low %v143_v7, %v147_v10 }
  0x3f   :  { %523 = vmatprep.subr.bf16.mxu0 %v1881_v21  ;;  %596 = vmatprep.subr.bf16.mxu1 %v1883_v22  ;;  %v1865_v37 = vcombine.high %v117_v31, %v121_v32  ;;  %v1867_v38 = vcombine.high %v118_v33, %v122_v34  ;;  %v109_v39 = vld [vmem:[#allocation5 + $0x80] sm:$0xff]  ;;  %v110_v41 = vld [vmem:[#allocation5 + $0x88] sm:$0xff]  ;;  %v1864_v43 = vcombine.low %v117_v31, %v121_v32  ;;  %v139_v19 = vld [vmem:[#allocation5 + $0x170] sm:$0xff] }
  0x40   :  { %v113_v40 = vld [vmem:[#allocation5 + $0xa0] sm:$0xff]  ;;  %v114_v42 = vld [vmem:[#allocation5 + $0xa8] sm:$0xff]  ;;  %v1866_v44 = vcombine.low %v118_v33, %v122_v34  ;;  %v83_v21 = vld [vmem:[#allocation2 + $0x10] sm:$0xff]  ;;  %v1884_v34 = vcombine.low %v135_v16, %v139_v19 }
  0x41   :  { %v1857_v45 = vcombine.high %v109_v39, %v113_v40  ;;  %v1859_v46 = vcombine.high %v110_v41, %v114_v42  ;;  %v101_v47 = vld [vmem:[#allocation5 + $0x40] sm:$0xff]  ;;  %v102_v49 = vld [vmem:[#allocation5 + $0x48] sm:$0xff]  ;;  %v1856_v51 = vcombine.low %v109_v39, %v113_v40  ;;  %v1858_v52 = vcombine.low %v110_v41, %v114_v42  ;;  %v84_v22 = vld [vmem:[#allocation2 + $0x18] sm:$0xff] }
  0x42   :  { %524 = vmatpush1.bf16.msra.mxu0 %v1880_v27  ;;  %597 = vmatpush1.bf16.msra.mxu1 %v1882_v28  ;;  %v105_v48 = vld [vmem:[#allocation5 + $0x60] sm:$0xff]  ;;  %v106_v50 = vld [vmem:[#allocation5 + $0x68] sm:$0xff]  ;;  %v136_v23 = vld [vmem:[#allocation5 + $0x158] sm:$0xff]  ;;  %v1894_v27 = vcombine.low %v144_v12, %v148_v14  ;;  %v1885_v28 = vcombine.high %v135_v16, %v139_v19  ;;  %v2414_v32 = vpack.c.bf16 %v84_v22, %v83_v21 }
  0x43   :  { %525 = vmatprep.subr.bf16.mxu0 %v1873_v29  ;;  %598 = vmatprep.subr.bf16.mxu1 %v1875_v30  ;;  %v1849_v53 = vcombine.high %v101_v47, %v105_v48  ;;  %v1851_v54 = vcombine.high %v102_v49, %v106_v50  ;;  %v93_v55 = vld [vmem:[#allocation5] sm:$0xff]  ;;  %v94_v57 = vld [vmem:[#allocation5 + $0x8] sm:$0xff]  ;;  %v1848_v59 = vcombine.low %v101_v47, %v105_v48  ;;  %v140_v24 = vld [vmem:[#allocation5 + $0x178] sm:$0xff] }
  0x44   :  { %v97_v56 = vld [vmem:[#allocation5 + $0x20] sm:$0xff]  ;;  %v98_v58 = vld [vmem:[#allocation5 + $0x28] sm:$0xff]  ;;  %v1850_v61 = vcombine.low %v102_v49, %v106_v50  ;;  %v127_v26 = vld [vmem:[#allocation5 + $0x110] sm:$0xff]  ;;  %v1887_v30 = vcombine.high %v136_v23, %v140_v24 }
  0x45   :  { %v1841_v62 = vcombine.high %v93_v55, %v97_v56  ;;  %v1843_v1 = vcombine.high %v94_v57, %v98_v58  ;;  %v81_v2 = vld [vmem:[#allocation2] sm:$0xff]  ;;  %v82_v3 = vld [vmem:[#allocation2 + $0x8] sm:$0xff]  ;;  %v1840_v6 = vcombine.low %v93_v55, %v97_v56  ;;  %v1842_v8 = vcombine.low %v94_v57, %v98_v58  ;;  %v131_v29 = vld [vmem:[#allocation5 + $0x130] sm:$0xff] }
  0x46   :  { %526 = vmatpush1.bf16.msra.mxu0 %v1872_v35  ;;  %599 = vmatpush1.bf16.msra.mxu1 %v1874_v36  ;;  %v2408_v13 = vpack.c.bf16 %v82_v3, %v81_v2  ;;  %v128_v31 = vld [vmem:[#allocation5 + $0x118] sm:$0xff]  ;;  %v119_v35 = vld [vmem:[#allocation5 + $0xd0] sm:$0xff]  ;;  %v1886_v36 = vcombine.low %v136_v23, %v140_v24  ;;  %v85_v40 = vld [vmem:[#allocation2 + $0x20] sm:$0xff] }
  0x47   :  { %527 = vmatprep.subr.bf16.mxu0 %v1865_v37  ;;  %600 = vmatprep.subr.bf16.mxu1 %v1867_v38  ;;  %v132_v33 = vld [vmem:[#allocation5 + $0x138] sm:$0xff]  ;;  %v1877_v37 = vcombine.high %v127_v26, %v131_v29  ;;  %v123_v38 = vld [vmem:[#allocation5 + $0xf0] sm:$0xff]  ;;  %v86_v41 = vld [vmem:[#allocation2 + $0x28] sm:$0xff] }
  0x48   :  { %v1879_v39 = vcombine.high %v128_v31, %v132_v33  ;;  %v120_v42 = vld [vmem:[#allocation5 + $0xd8] sm:$0xff]  ;;  %v1878_v47 = vcombine.low %v128_v31, %v132_v33  ;;  %v1869_v48 = vcombine.high %v119_v35, %v123_v38  ;;  %v107_v55 = vld [vmem:[#allocation5 + $0x70] sm:$0xff]  ;;  %v2143_v14 = vld [vmem:[#allocation8 + $0x78] sm:$0xff]  }
  0x49   :  { %v112_v49 = vld [vmem:[#allocation5 + $0x98] sm:$0xff]  ;;  %v99_v2 = vld [vmem:[#allocation5 + $0x30] sm:$0xff]  ;;  %v2144_v16 = vld [vmem:[#allocation8 + $0xf8] sm:$0xff]  }
  0x4a   :  { %528 = vmatpush1.bf16.msra.mxu0 %v1864_v43  ;;  %601 = vmatpush1.bf16.msra.mxu1 %v1866_v44  ;;  %v124_v43 = vld [vmem:[#allocation5 + $0xf8] sm:$0xff]  ;;  %v1876_v44 = vcombine.low %v127_v26, %v131_v29  ;;  %v2146_v19 = vld [vmem:[#allocation8 + $0xb8] sm:$0xff]   ;;  %v2151_v24 = vld [vmem:[#allocation8 + $0x68] sm:$0xff]  }
  0x4b   :  { %529 = vmatprep.subr.bf16.mxu0 %v1857_v45  ;;  %602 = vmatprep.subr.bf16.mxu1 %v1859_v46  ;;  %v111_v45 = vld [vmem:[#allocation5 + $0x90] sm:$0xff]  ;;  %v116_v50 = vld [vmem:[#allocation5 + $0xb8] sm:$0xff]  ;;  %v1870_v56 = vcombine.low %v120_v42, %v124_v43  ;;  %v2157_v29 = vld [vmem:[#allocation8 + $0x20] sm:$0xff]  }
  0x4c   :  { %v115_v46 = vld [vmem:[#allocation5 + $0xb0] sm:$0xff]  ;;  %v104_v58 = vld [vmem:[#allocation5 + $0x58] sm:$0xff]  ;;  %v1863_v60 = vcombine.high %v112_v49, %v116_v50  ;;  %v1862_v3 = vcombine.low %v112_v49, %v116_v50  ;;  %v2159_v31 = vld [vmem:[#allocation8 + $0x58] sm:$0xff]  }
  0x4d   :  { %v1861_v57 = vcombine.high %v111_v45, %v115_v46  ;;  %v1860_v63 = vcombine.low %v111_v45, %v115_v46  ;;  %v96_v5 = vld [vmem:[#allocation5 + $0x18] sm:$0xff]  ;;  %v2153_v26 = vld [vmem:[#allocation8 + $0x28] sm:$0xff]   ;;  %v2160_v33 = vld [vmem:[#allocation8 + $0xd8] sm:$0xff]  }
  0x4e   :  { %530 = vmatpush1.bf16.msra.mxu0 %v1856_v51  ;;  %603 = vmatpush1.bf16.msra.mxu1 %v1858_v52  ;;  %v1871_v51 = vcombine.high %v120_v42, %v124_v43  ;;  %v2420_v52 = vpack.c.bf16 %v86_v41, %v85_v40  ;;  %v2148_v21 = vld [vmem:[#allocation8 + $0xf0] sm:$0xff]   ;;  %v2168_v40 = vld [vmem:[#allocation8 + $0xc8] sm:$0xff]   ;;  %v2172_v43 = vld [vmem:[#allocation8 + $0xc0] sm:$0xff]  }
  0x4f   :  { %531 = vmatprep.subr.bf16.mxu0 %v1849_v53  ;;  %604 = vmatprep.subr.bf16.mxu1 %v1851_v54  ;;  %v1868_v53 = vcombine.low %v119_v35, %v123_v38  ;;  %v103_v54 = vld [vmem:[#allocation5 + $0x50] sm:$0xff]  ;;  %v2149_v22 = vld [vmem:[#allocation8 + $0x30] sm:$0xff]   ;;  %v2162_v35 = vld [vmem:[#allocation8 + $0x98] sm:$0xff]  }
  0x50   :  { %v1853_v4 = vcombine.high %v103_v54, %v107_v55  ;;  %v2150_v23 = vld [vmem:[#allocation8 + $0xb0] sm:$0xff]   ;;  %v2169_v41 = vld [vmem:[#allocation8 + $0x8] sm:$0xff]   ;;  %v2174_v45 = vld [vmem:[#allocation8 + $0x80] sm:$0xff]  }
  0x51   :  { %v2166_v38 = vld [vmem:[#allocation8 + $0x90] sm:$0xff]   ;;  %v2170_v42 = vld [vmem:[#allocation8 + $0x88] sm:$0xff]   ;;  %v2175_v46 = vld [vmem:[#allocation8 + $0x178] sm:$0xff]  }
  0x52   :  { %532 = vmatpush1.bf16.msra.mxu0 %v1848_v59  ;;  %605 = vmatpush1.bf16.msra.mxu1 %v1850_v61  ;;  %v108_v59 = vld [vmem:[#allocation5 + $0x78] sm:$0xff]  ;;  %v87_v61 = vld [vmem:[#allocation2 + $0x30] sm:$0xff] }
  0x53   :  { %533 = vmatprep.subr.bf16.mxu0 %v1841_v62  ;;  %606 = vmatprep.subr.bf16.mxu1 %v1843_v1  ;;  %v88_v62 = vld [vmem:[#allocation2 + $0x38] sm:$0xff]  ;;  %v95_v1 = vld [vmem:[#allocation5 + $0x10] sm:$0xff]  ;;  %v1855_v7 = vcombine.high %v104_v58, %v108_v59  ;;  %v1854_v10 = vcombine.low %v104_v58, %v108_v59 }
  0x56   :  { %534 = vmatpush1.bf16.msra.mxu0 %v1840_v6  ;;  %607 = vmatpush1.bf16.msra.mxu1 %v1842_v8  ;;  %v100_v6 = vld [vmem:[#allocation5 + $0x38] sm:$0xff]  ;;  %v2426_v8 = vpack.c.bf16 %v88_v62, %v87_v61 }
  0x57   :  { %665 = vmatprep.subr.bf16.mxu0 %v1901_v9  ;;  %738 = vmatprep.subr.bf16.mxu1 %v1903_v11  ;;  %v1852_v9 = vcombine.low %v103_v54, %v107_v55  ;;  %v1845_v11 = vcombine.high %v95_v1, %v99_v2  ;;  %v1847_v12 = vcombine.high %v96_v5, %v100_v6 }
  0x59   :  { %552 = vmatmul.mubr.bf16.vlgmr.msra.gmra.mxu0 %v2408_v13  ;;  %625 = vmatmul.mubr.bf16.vlgmr.msra.gmra.mxu1 %v2408_v13 }
  0x5a   :  { %666 = vmatpush1.bf16.msra.mxu0 %v1900_v15  ;;  %739 = vmatpush1.bf16.msra.mxu1 %v1902_v17  ;;  %v1844_v15 = vcombine.low %v95_v1, %v99_v2  ;;  %v1846_v17 = vcombine.low %v96_v5, %v100_v6 }
  0x5b   :  { %667 = vmatprep.subr.bf16.mxu0 %v1893_v18  ;;  %740 = vmatprep.subr.bf16.mxu1 %v1895_v20  ;;  %v2145_v18 = vld [vmem:[#allocation8 + $0x38] sm:$0xff]   ;;  %v2147_v20 = vld [vmem:[#allocation8 + $0x70] sm:$0xff]  }
  0x5c   :  { %561 = vmatprep.mubr.bf16.mxu0 %v2349_v0  ;;  %634 = vmatprep.mubr.bf16.mxu1 %v2349_v0 }
  0x5e   :  { %668 = vmatpush1.bf16.msra.mxu0 %v1892_v25  ;;  %741 = vmatpush1.bf16.msra.mxu1 %v1894_v27  ;;  %v2152_v25 = vld [vmem:[#allocation8 + $0xe8] sm:$0xff]  }
  0x5f   :  { %669 = vmatprep.subr.bf16.mxu0 %v1885_v28  ;;  %742 = vmatprep.subr.bf16.mxu1 %v1887_v30  ;;  %v2154_v27 = vld [vmem:[#allocation8 + $0xa8] sm:$0xff]   ;;  %v2155_v28 = vld [vmem:[#allocation8 + $0x60] sm:$0xff]  }
  0x60   :  { %v2158_v30 = vld [vmem:[#allocation8 + $0xa0] sm:$0xff]  }
  0x61   :  { %562 = vmatmul.mubr.bf16.gmra.mxu0 %v2414_v32  ;;  %635 = vmatmul.mubr.bf16.gmra.mxu1 %v2414_v32 }
  0x62   :  { %670 = vmatpush1.bf16.msra.mxu0 %v1884_v34  ;;  %743 = vmatpush1.bf16.msra.mxu1 %v1886_v36  ;;  %v2161_v34 = vld [vmem:[#allocation8 + $0x18] sm:$0xff]   ;;  %v2164_v36 = vld [vmem:[#allocation8 + $0xd0] sm:$0xff]  }
  0x63   :  { %671 = vmatprep.subr.bf16.mxu0 %v1877_v37  ;;  %744 = vmatprep.subr.bf16.mxu1 %v1879_v39  ;;  %v2165_v37 = vld [vmem:[#allocation8 + $0x10] sm:$0xff]   ;;  %v2167_v39 = vld [vmem:[#allocation8 + $0x48] sm:$0xff]  }
  0x64   :  { %571 = vmatprep.mubr.bf16.mxu0 %v2349_v0  ;;  %644 = vmatprep.mubr.bf16.mxu1 %v2349_v0 }
  0x66   :  { %672 = vmatpush1.bf16.msra.mxu0 %v1876_v44  ;;  %745 = vmatpush1.bf16.msra.mxu1 %v1878_v47  ;;  %v2173_v44 = vld [vmem:[#allocation8] sm:$0xff]   ;;  %v2176_v47 = vld [vmem:[#allocation8 + $0x1f8] sm:$0xff]  }
  0x67   :  { %673 = vmatprep.subr.bf16.mxu0 %v1869_v48  ;;  %746 = vmatprep.subr.bf16.mxu1 %v1871_v51  ;;  %v159_v48 = vlaneseq }
  0x69   :  { %572 = vmatmul.mubr.bf16.gmra.mxu0 %v2420_v52  ;;  %645 = vmatmul.mubr.bf16.gmra.mxu1 %v2420_v52  ;;  %v2446_v49 = vshrl.u32 %v159_v48, 7 }
  0x6a   :  { %674 = vmatpush1.bf16.msra.mxu0 %v1868_v53  ;;  %747 = vmatpush1.bf16.msra.mxu1 %v1870_v56  ;;  %v2451_v53 = vld [vmem:[#allocation7] sm:$0xff] }
  0x6b   :  { %675 = vmatprep.subr.bf16.mxu0 %v1861_v57  ;;  %748 = vmatprep.subr.bf16.mxu1 %v1863_v60  ;;  %v165_v50 = vsub.s32 1, %v2446_v49  ;;  %v161_v51 = vsub.s32 0, %v2446_v49  ;;  %v169_v54 = vsub.s32 2, %v2446_v49 }
  0x6c   :  { %581 = vmatprep.mubr.bf16.mxu0 %v2349_v0  ;;  %654 = vmatprep.mubr.bf16.mxu1 %v2349_v0 }
  0x6d   :  { %v2455_v57 = vrot.slane %v2451_v53, %v165_v50  ;;  %v2458_v58 = vrot.slane %v2451_v53, %v161_v51  ;;  %v2464_v61 = vrot.slane %v2451_v53, %v169_v54  ;;  %v2184_v54 = vld [vmem:[#allocation8 + $0x1e8] sm:$0xff]  }
  0x6e   :  { %676 = vmatpush1.bf16.msra.mxu0 %v1860_v63  ;;  %749 = vmatpush1.bf16.msra.mxu1 %v1862_v3 }
  0x6f   :  { %677 = vmatprep.subr.bf16.mxu0 %v1853_v4  ;;  %750 = vmatprep.subr.bf16.mxu1 %v1855_v7 }
  0x71   :  { %582 = vmatmul.mubr.bf16.gmra.mxu0 %v2426_v8  ;;  %655 = vmatmul.mubr.bf16.gmra.mxu1 %v2426_v8 }
  0x72   :  { %678 = vmatpush1.bf16.msra.mxu0 %v1852_v9  ;;  %751 = vmatpush1.bf16.msra.mxu1 %v1854_v10 }
  0x73   :  { %679 = vmatprep.subr.bf16.mxu0 %v1845_v11  ;;  %752 = vmatprep.subr.bf16.mxu1 %v1847_v12 }
  0x74   :  { %697 = vmatprep.mubr.bf16.mxu0 %v2349_v0  ;;  %770 = vmatprep.mubr.bf16.mxu1 %v2349_v0 }
  0x76   :  { %680 = vmatpush1.bf16.msra.mxu0 %v1844_v15  ;;  %753 = vmatpush1.bf16.msra.mxu1 %v1846_v17 }
  0x77   :  { %1971 = vmatprep.subr.bf16.mxu0 %v2143_v14  ;;  %2011 = vmatprep.subr.bf16.mxu1 %v2144_v16 }
  0x79   :  { %698 = vmatmul.mubr.bf16.vlgmr.msra.gmra.mxu0 %v2408_v13  ;;  %771 = vmatmul.mubr.bf16.vlgmr.msra.gmra.mxu1 %v2408_v13  ;;  %v2156_v13 = vld [vmem:[#allocation8 + $0xe0] sm:$0xff]  }
  0x7a   :  { %707 = vmatprep.mubr.bf16.mxu0 %v2349_v0  ;;  %780 = vmatprep.mubr.bf16.mxu1 %v2349_v0 }
  0x7b   :  { %1972 = vmatpush3.bf16.msra.mxu0 %v2145_v18  ;;  %2012 = vmatpush3.bf16.msra.mxu1 %v2146_v19 }
  0x7c   :  { %1973 = vmatprep.subr.bf16.mxu0 %v2147_v20  ;;  %2013 = vmatprep.subr.bf16.mxu1 %v2148_v21 }
  0x7f   :  { %1974 = vmatpush3.bf16.msra.mxu0 %v2149_v22  ;;  %2014 = vmatpush3.bf16.msra.mxu1 %v2150_v23 }
  0x80   :  { %1975 = vmatprep.subr.bf16.mxu0 %v2151_v24  ;;  %2015 = vmatprep.subr.bf16.mxu1 %v2152_v25 }
  0x81   :  { %708 = vmatmul.mubr.bf16.gmra.mxu0 %v2414_v32  ;;  %781 = vmatmul.mubr.bf16.gmra.mxu1 %v2414_v32  ;;  %v2163_v32 = vld [vmem:[#allocation8 + $0x50] sm:$0xff]  }
  0x82   :  { %717 = vmatprep.mubr.bf16.mxu0 %v2349_v0  ;;  %790 = vmatprep.mubr.bf16.mxu1 %v2349_v0 }
  0x83   :  { %1976 = vmatpush3.bf16.msra.mxu0 %v2153_v26  ;;  %2016 = vmatpush3.bf16.msra.mxu1 %v2154_v27  ;;  %v2177_v26 = vld [vmem:[#allocation8 + $0x138] sm:$0xff]  }
  0x84   :  { %1977 = vmatprep.subr.bf16.mxu0 %v2155_v28  ;;  %2017 = vmatprep.subr.bf16.mxu1 %v2156_v13 }
  0x87   :  { %1978 = vmatpush3.bf16.msra.mxu0 %v2157_v29  ;;  %2018 = vmatpush3.bf16.msra.mxu1 %v2158_v30  ;;  %v2178_v29 = vld [vmem:[#allocation8 + $0x1b8] sm:$0xff]   ;;  %v2179_v30 = vld [vmem:[#allocation8 + $0x170] sm:$0xff]  }
  0x88   :  { %1979 = vmatprep.subr.bf16.mxu0 %v2159_v31  ;;  %2019 = vmatprep.subr.bf16.mxu1 %v2160_v33 }
  0x89   :  { %718 = vmatmul.mubr.bf16.gmra.mxu0 %v2420_v52  ;;  %791 = vmatmul.mubr.bf16.gmra.mxu1 %v2420_v52  ;;  %v173_v52 = vsub.s32 3, %v2446_v49 }
  0x8a   :  { %727 = vmatprep.mubr.bf16.mxu0 %v2349_v0  ;;  %800 = vmatprep.mubr.bf16.mxu1 %v2349_v0  ;;  %v2171_v0 = vld [vmem:[#allocation8 + $0x40] sm:$0xff]  }
  0x8b   :  { %1980 = vmatpush3.bf16.msra.mxu0 %v2161_v34  ;;  %2020 = vmatpush3.bf16.msra.mxu1 %v2162_v35  ;;  %v2461_v60 = vrot.slane %v2451_v53, %v173_v52 }
  0x8c   :  { %1981 = vmatprep.subr.bf16.mxu0 %v2163_v32  ;;  %2021 = vmatprep.subr.bf16.mxu1 %v2164_v36  ;;  %v2180_v32 = vld [vmem:[#allocation8 + $0x1f0] sm:$0xff]  }
  0x8f   :  { %1982 = vmatpush3.bf16.msra.mxu0 %v2165_v37  ;;  %2022 = vmatpush3.bf16.msra.mxu1 %v2166_v38 }
  0x90   :  { %1983 = vmatprep.subr.bf16.mxu0 %v2167_v39  ;;  %2023 = vmatprep.subr.bf16.mxu1 %v2168_v40 }
  0x91   :  { %728 = vmatmul.mubr.bf16.gmra.mxu0 %v2426_v8  ;;  %801 = vmatmul.mubr.bf16.gmra.mxu1 %v2426_v8 }
  0x93   :  { %1984 = vmatpush3.bf16.msra.mxu0 %v2169_v41  ;;  %2024 = vmatpush3.bf16.msra.mxu1 %v2170_v42 }
  0x94   :  { %1985 = vmatprep.subr.bf16.mxu0 %v2171_v0  ;;  %2025 = vmatprep.subr.bf16.mxu1 %v2172_v43  ;;  %v2181_v0 = vld [vmem:[#allocation8 + $0x130] sm:$0xff]  }
  0x97   :  { %1986 = vmatpush3.bf16.msra.mxu0 %v2173_v44  ;;  %2026 = vmatpush3.bf16.msra.mxu1 %v2174_v45 }
  0x98   :  { %2051 = vmatprep.subr.bf16.mxu0 %v2175_v46  ;;  %2091 = vmatprep.subr.bf16.mxu1 %v2176_v47  ;;  %v2182_v46 = vld [vmem:[#allocation8 + $0x1b0] sm:$0xff]   ;;  %v2183_v47 = vld [vmem:[#allocation8 + $0x168] sm:$0xff]  }
 0x119   :  { %v553_v55 = vpop.f32.mrf.mxu0  ;;  %v626_v56 = vpop.f32.mrf.mxu1 }
 0x11a   :  { %v554_v4 = vadd.f32 %v553_v55, %v2458_v58  ;;  %v627_v8 = vadd.f32 %v626_v56, %v2464_v61 }
 0x11b   :  { %v555_v59 = vpop.f32.mrf.mxu0  ;;  %v628_v62 = vpop.f32.mrf.mxu1 }
 0x11c   :  { %v556_v1 = vadd.f32 %v555_v59, %v2455_v57  ;;  %v629_v5 = vadd.f32 %v628_v62, %v2461_v60  ;;  %v811_v19 = vmax.f32 %v554_v4, 0.0  ;;  %v813_v23 = vmax.f32 %v627_v8, 0.0  ;;  %v2187_v8 = vld [vmem:[#allocation8 + $0x160] sm:$0xff]  }
 0x11d   :  { %v557_v63 = vpop.f32.mrf.mxu0  ;;  %v630_v3 = vpop.f32.mrf.mxu1 }
 0x11e   :  { %v558_v2 = vadd.f32 %v557_v63, %v2458_v58  ;;  %v631_v6 = vadd.f32 %v630_v3, %v2464_v61  ;;  %v812_v15 = vmax.f32 %v556_v1, 0.0  ;;  %v814_v20 = vmax.f32 %v629_v5, 0.0  ;;  %v2185_v3 = vld [vmem:[#allocation8 + $0x128] sm:$0xff]  }
 0x11f   :  { %v559_v7 = vpop.f32.mrf.mxu0  ;;  %v632_v10 = vpop.f32.mrf.mxu1 }
 0x120   :  { %v560_v9 = vadd.f32 %v559_v7, %v2455_v57  ;;  %v819_v11 = vmax.f32 %v558_v2, 0.0  ;;  %v633_v12 = vadd.f32 %v632_v10, %v2461_v60  ;;  %v821_v16 = vmax.f32 %v631_v6, 0.0  ;;  %v2186_v7 = vld [vmem:[#allocation8 + $0x1a8] sm:$0xff]  }
 0x121   :  { %v563_v14 = vpop.f32.mrf.mxu0  ;;  %v636_v18 = vpop.f32.mrf.mxu1 }
 0x122   :  { %v820_v17 = vmax.f32 %v560_v9, 0.0  ;;  %v822_v21 = vmax.f32 %v633_v12, 0.0  ;;  %v875_v27 = vpack.c.bf16 %v819_v11, %v811_v19  ;;  %v877_v31 = vpack.c.bf16 %v821_v16, %v813_v23 }
 0x123   :  { %v565_v22 = vpop.f32.mrf.mxu0  ;;  %v638_v25 = vpop.f32.mrf.mxu1  ;;  %v564_v36 = vadd.f32 %v563_v14, %v2458_v58  ;;  %v637_v40 = vadd.f32 %v636_v18, %v2464_v61  ;;  %v2188_v14 = vld [vmem:[#allocation8 + $0x1e0] sm:$0xff]  }
 0x124   :  { %v876_v24 = vpack.c.bf16 %v820_v17, %v812_v15  ;;  %v878_v28 = vpack.c.bf16 %v822_v21, %v814_v20  ;;  %v566_v33 = vadd.f32 %v565_v22, %v2455_v57  ;;  %v639_v37 = vadd.f32 %v638_v25, %v2461_v60  ;;  %v2189_v22 = vld [vmem:[#allocation8 + $0x120] sm:$0xff]  }
 0x125   :  { %v567_v13 = vpop.f32.mrf.mxu0  ;;  %v640_v35 = vpop.f32.mrf.mxu1  ;;  %v827_v55 = vmax.f32 %v564_v36, 0.0  ;;  %v829_v63 = vmax.f32 %v637_v40, 0.0 }
 0x126   :  { %v568_v34 = vadd.f32 %v567_v13, %v2458_v58  ;;  %1458 = vmatprep.mubr.bf16.mxu0 %v876_v24  ;;  %v641_v38 = vadd.f32 %v640_v35, %v2464_v61  ;;  %1523 = vmatprep.mubr.bf16.mxu1 %v878_v28  ;;  %v828_v48 = vmax.f32 %v566_v33, 0.0  ;;  %v830_v56 = vmax.f32 %v639_v37, 0.0 }
 0x127   :  { %v569_v39 = vpop.f32.mrf.mxu0  ;;  %1459 = vmatmul.mubr.bf16.vlgmr.msra.gmra.mxu0 %v875_v27  ;;  %v642_v42 = vpop.f32.mrf.mxu1  ;;  %1524 = vmatmul.mubr.bf16.vlgmr.msra.gmra.mxu1 %v877_v31  ;;  %v2191_v27 = vld [vmem:[#allocation8 + $0x158] sm:$0xff]  }
 0x128   :  { %v570_v41 = vadd.f32 %v569_v39, %v2455_v57  ;;  %2052 = vmatpush3.bf16.msra.mxu0 %v2177_v26  ;;  %v835_v43 = vmax.f32 %v568_v34, 0.0  ;;  %v643_v44 = vadd.f32 %v642_v42, %v2461_v60  ;;  %2092 = vmatpush3.bf16.msra.mxu1 %v2178_v29  ;;  %v837_v50 = vmax.f32 %v641_v38, 0.0  ;;  %v2190_v26 = vld [vmem:[#allocation8 + $0x1a0] sm:$0xff]   ;;  %v2192_v31 = vld [vmem:[#allocation8 + $0x1d8] sm:$0xff]  }
 0x129   :  { %v573_v45 = vpop.f32.mrf.mxu0  ;;  %2053 = vmatprep.subr.bf16.mxu0 %v2179_v30  ;;  %v646_v52 = vpop.f32.mrf.mxu1  ;;  %2093 = vmatprep.subr.bf16.mxu1 %v2180_v32  ;;  %v2193_v39 = vld [vmem:[#allocation8 + $0x118] sm:$0xff]  }
 0x12a   :  { %v836_v51 = vmax.f32 %v570_v41, 0.0  ;;  %v838_v59 = vmax.f32 %v643_v44, 0.0  ;;  %v883_v4 = vpack.c.bf16 %v835_v43, %v827_v55  ;;  %v885_v9 = vpack.c.bf16 %v837_v50, %v829_v63  ;;  %v2195_v44 = vld [vmem:[#allocation8 + $0x150] sm:$0xff]  }
 0x12b   :  { %v575_v62 = vpop.f32.mrf.mxu0  ;;  %v648_v2 = vpop.f32.mrf.mxu1  ;;  %v574_v15 = vadd.f32 %v573_v45, %v2458_v58  ;;  %v647_v19 = vadd.f32 %v646_v52, %v2464_v61  ;;  %v177_v43 = vsub.s32 4, %v2446_v49  ;;  %v181_v50 = vsub.s32 5, %v2446_v49 }
 0x12c   :  { %v884_v1 = vpack.c.bf16 %v836_v51, %v828_v48  ;;  %2054 = vmatpush3.bf16.msra.mxu0 %v2181_v0  ;;  %v886_v5 = vpack.c.bf16 %v838_v59, %v830_v56  ;;  %2094 = vmatpush3.bf16.msra.mxu1 %v2182_v46  ;;  %v576_v10 = vadd.f32 %v575_v62, %v2455_v57  ;;  %v2194_v0 = vld [vmem:[#allocation8 + $0x198] sm:$0xff]   ;;  %v2196_v51 = vld [vmem:[#allocation8 + $0x1d0] sm:$0xff]   ;;  %v189_v59 = vsub.s32 7, %v2446_v49 }
 0x12d   :  { %v577_v6 = vpop.f32.mrf.mxu0  ;;  %2055 = vmatprep.subr.bf16.mxu0 %v2183_v47  ;;  %v650_v12 = vpop.f32.mrf.mxu1  ;;  %2095 = vmatprep.subr.bf16.mxu1 %v2184_v54  ;;  %v649_v16 = vadd.f32 %v648_v2, %v2461_v60  ;;  %v843_v33 = vmax.f32 %v574_v15, 0.0  ;;  %v845_v36 = vmax.f32 %v647_v19, 0.0  ;;  %v185_v2 = vsub.s32 6, %v2446_v49  ;;  %v2200_v49 = vld [vmem:[#allocation8 + $0x1c8] sm:$0xff]  }
 0x12e   :  { %v578_v11 = vadd.f32 %v577_v6, %v2458_v58  ;;  %1466 = vmatprep.mubr.bf16.mxu0 %v884_v1  ;;  %v651_v17 = vadd.f32 %v650_v12, %v2464_v61  ;;  %1531 = vmatprep.mubr.bf16.mxu1 %v886_v5  ;;  %v844_v28 = vmax.f32 %v576_v10, 0.0  ;;  %v2503_v5 = vrot.slane %v2451_v53, %v177_v43 }
 0x12f   :  { %v579_v18 = vpop.f32.mrf.mxu0  ;;  %1467 = vmatmul.mubr.bf16.gmra.mxu0 %v883_v4  ;;  %v652_v21 = vpop.f32.mrf.mxu1  ;;  %1532 = vmatmul.mubr.bf16.gmra.mxu1 %v885_v9  ;;  %v846_v34 = vmax.f32 %v649_v16, 0.0  ;;  %v2509_v16 = vrot.slane %v2451_v53, %v189_v59  ;;  %v2512_v19 = vrot.slane %v2451_v53, %v185_v2 }
 0x130   :  { %v580_v20 = vadd.f32 %v579_v18, %v2455_v57  ;;  %2056 = vmatpush3.bf16.msra.mxu0 %v2185_v3  ;;  %v851_v23 = vmax.f32 %v578_v11, 0.0  ;;  %v653_v24 = vadd.f32 %v652_v21, %v2461_v60  ;;  %2096 = vmatpush3.bf16.msra.mxu1 %v2186_v7  ;;  %v853_v13 = vmax.f32 %v651_v17, 0.0  ;;  %v2197_v3 = vld [vmem:[#allocation8 + $0x110] sm:$0xff]   ;;  %v2201_v21 = vld [vmem:[#allocation8 + $0x108] sm:$0xff]  }
 0x131   :  { %v583_v25 = vpop.f32.mrf.mxu0  ;;  %2057 = vmatprep.subr.bf16.mxu0 %v2187_v8  ;;  %v656_v30 = vpop.f32.mrf.mxu1  ;;  %2097 = vmatprep.subr.bf16.mxu1 %v2188_v14  ;;  %v2198_v7 = vld [vmem:[#allocation8 + $0x190] sm:$0xff]   ;;  %v2199_v8 = vld [vmem:[#allocation8 + $0x148] sm:$0xff]   ;;  %v2506_v11 = vrot.slane %v2451_v53, %v181_v50  ;;  %v2204_v53 = vld [vmem:[#allocation8 + $0x1c0] sm:$0xff]  }
 0x132   :  { %v852_v29 = vmax.f32 %v580_v20, 0.0  ;;  %v854_v35 = vmax.f32 %v653_v24, 0.0  ;;  %v891_v40 = vpack.c.bf16 %v851_v23, %v843_v33  ;;  %v893_v45 = vpack.c.bf16 %v853_v13, %v845_v36 }
 0x133   :  { %v585_v32 = vpop.f32.mrf.mxu0  ;;  %v658_v38 = vpop.f32.mrf.mxu1  ;;  %v584_v52 = vadd.f32 %v583_v25, %v2458_v58  ;;  %v657_v62 = vadd.f32 %v656_v30, %v2464_v61  ;;  %v2202_v25 = vld [vmem:[#allocation8 + $0x188] sm:$0xff]  }
 0x134   :  { %v892_v37 = vpack.c.bf16 %v852_v29, %v844_v28  ;;  %2058 = vmatpush3.bf16.msra.mxu0 %v2189_v22  ;;  %v894_v41 = vpack.c.bf16 %v854_v35, %v846_v34  ;;  %2098 = vmatpush3.bf16.msra.mxu1 %v2190_v26  ;;  %v586_v46 = vadd.f32 %v585_v32, %v2455_v57  ;;  %v2203_v26 = vld [vmem:[#allocation8 + $0x140] sm:$0xff]  }
 0x135   :  { %v587_v42 = vpop.f32.mrf.mxu0  ;;  %2059 = vmatprep.subr.bf16.mxu0 %v2191_v27  ;;  %v660_v48 = vpop.f32.mrf.mxu1  ;;  %2099 = vmatprep.subr.bf16.mxu1 %v2192_v31  ;;  %v659_v54 = vadd.f32 %v658_v38, %v2461_v60  ;;  %v859_v12 = vmax.f32 %v584_v52, 0.0  ;;  %v861_v17 = vmax.f32 %v657_v62, 0.0 }
 0x136   :  { %v588_v47 = vadd.f32 %v587_v42, %v2458_v58  ;;  %1474 = vmatprep.mubr.bf16.mxu0 %v892_v37  ;;  %v661_v55 = vadd.f32 %v660_v48, %v2464_v61  ;;  %1539 = vmatprep.mubr.bf16.mxu1 %v894_v41  ;;  %v860_v61 = vmax.f32 %v586_v46, 0.0  ;;  %v2205_v37 = vld [vmem:[#allocation8 + $0x100] sm:$0xff]  }
 0x137   :  { %v589_v56 = vpop.f32.mrf.mxu0  ;;  %1475 = vmatmul.mubr.bf16.gmra.mxu0 %v891_v40  ;;  %v662_v1 = vpop.f32.mrf.mxu1  ;;  %1540 = vmatmul.mubr.bf16.gmra.mxu1 %v893_v45  ;;  %v862_v14 = vmax.f32 %v659_v54, 0.0  ;;  %v2206_v41 = vld [vmem:[#allocation8 + $0x180] sm:$0xff]  }
 0x138   :  { %v590_v63 = vadd.f32 %v589_v56, %v2455_v57  ;;  %2060 = vmatpush3.bf16.msra.mxu0 %v2193_v39  ;;  %v867_v58 = vmax.f32 %v588_v47, 0.0  ;;  %v663_v4 = vadd.f32 %v662_v1, %v2461_v60  ;;  %2100 = vmatpush3.bf16.msra.mxu1 %v2194_v0  ;;  %v869_v9 = vmax.f32 %v661_v55, 0.0 }
 0x139   :  { %v699_v6 = vpop.f32.mrf.mxu0  ;;  %2061 = vmatprep.subr.bf16.mxu0 %v2195_v44  ;;  %v772_v10 = vpop.f32.mrf.mxu1  ;;  %2101 = vmatprep.subr.bf16.mxu1 %v2196_v51 }
 0x13a   :  { %v868_v57 = vmax.f32 %v590_v63, 0.0  ;;  %v870_v60 = vmax.f32 %v663_v4, 0.0  ;;  %v899_v22 = vpack.c.bf16 %v867_v58, %v859_v12  ;;  %v901_v27 = vpack.c.bf16 %v869_v9, %v861_v17 }
 0x13b   :  { %v701_v15 = vpop.f32.mrf.mxu0  ;;  %v774_v20 = vpop.f32.mrf.mxu1  ;;  %v700_v30 = vadd.f32 %v699_v6, %v2503_v5  ;;  %v773_v35 = vadd.f32 %v772_v10, %v2512_v19 }
 0x13c   :  { %v900_v18 = vpack.c.bf16 %v868_v57, %v860_v61  ;;  %2062 = vmatpush3.bf16.msra.mxu0 %v2197_v3  ;;  %v902_v23 = vpack.c.bf16 %v870_v60, %v862_v14  ;;  %2102 = vmatpush3.bf16.msra.mxu1 %v2198_v7  ;;  %v702_v28 = vadd.f32 %v701_v15, %v2506_v11 }
 0x13d   :  { %v703_v24 = vpop.f32.mrf.mxu0  ;;  %2063 = vmatprep.subr.bf16.mxu0 %v2199_v8  ;;  %v776_v29 = vpop.f32.mrf.mxu1  ;;  %2103 = vmatprep.subr.bf16.mxu1 %v2200_v49  ;;  %v775_v31 = vadd.f32 %v774_v20, %v2509_v16  ;;  %v815_v45 = vmax.f32 %v700_v30, 0.0  ;;  %v817_v50 = vmax.f32 %v773_v35, 0.0 }
 0x13e   :  { %v704_v13 = vadd.f32 %v703_v24, %v2503_v5  ;;  %1482 = vmatprep.mubr.bf16.mxu0 %v900_v18  ;;  %v777_v33 = vadd.f32 %v776_v29, %v2512_v19  ;;  %1547 = vmatprep.mubr.bf16.mxu1 %v902_v23  ;;  %v816_v42 = vmax.f32 %v702_v28, 0.0 }
 0x13f   :  { %v705_v34 = vpop.f32.mrf.mxu0  ;;  %1483 = vmatmul.mubr.bf16.gmra.mxu0 %v899_v22  ;;  %v778_v36 = vpop.f32.mrf.mxu1  ;;  %1548 = vmatmul.mubr.bf16.gmra.mxu1 %v901_v27  ;;  %v818_v46 = vmax.f32 %v775_v31, 0.0 }
 0x140   :  { %v706_v32 = vadd.f32 %v705_v34, %v2506_v11  ;;  %2064 = vmatpush3.bf16.msra.mxu0 %v2201_v21  ;;  %v823_v38 = vmax.f32 %v704_v13, 0.0  ;;  %v779_v39 = vadd.f32 %v778_v36, %v2509_v16  ;;  %2104 = vmatpush3.bf16.msra.mxu1 %v2202_v25  ;;  %v825_v0 = vmax.f32 %v777_v33, 0.0 }
 0x141   :  { %v709_v40 = vpop.f32.mrf.mxu0  ;;  %2065 = vmatprep.subr.bf16.mxu0 %v2203_v26  ;;  %v782_v44 = vpop.f32.mrf.mxu1  ;;  %2105 = vmatprep.subr.bf16.mxu1 %v2204_v53 }
 0x142   :  { %v824_v43 = vmax.f32 %v706_v32, 0.0  ;;  %v826_v47 = vmax.f32 %v779_v39, 0.0  ;;  %v879_v54 = vpack.c.bf16 %v823_v38, %v815_v45  ;;  %v881_v59 = vpack.c.bf16 %v825_v0, %v817_v50 }
 0x143   :  { %v711_v48 = vpop.f32.mrf.mxu0  ;;  %v784_v52 = vpop.f32.mrf.mxu1  ;;  %v710_v2 = vadd.f32 %v709_v40, %v2503_v5  ;;  %v783_v6 = vadd.f32 %v782_v44, %v2512_v19 }
 0x144   :  { %v880_v51 = vpack.c.bf16 %v824_v43, %v816_v42  ;;  %2066 = vmatpush3.bf16.msra.mxu0 %v2205_v37  ;;  %v882_v55 = vpack.c.bf16 %v826_v47, %v818_v46  ;;  %2106 = vmatpush3.bf16.msra.mxu1 %v2206_v41  ;;  %v712_v62 = vadd.f32 %v711_v48, %v2506_v11 }
 0x145   :  { %v713_v56 = vpop.f32.mrf.mxu0  ;;  %v786_v1 = vpop.f32.mrf.mxu1  ;;  %v785_v3 = vadd.f32 %v784_v52, %v2509_v16  ;;  %v831_v60 = vmax.f32 %v710_v2, 0.0  ;;  %v833_v20 = vmax.f32 %v783_v6, 0.0 }
 0x146   :  { %v714_v63 = vadd.f32 %v713_v56, %v2503_v5  ;;  %1588 = vmatprep.mubr.bf16.mxu0 %v880_v51  ;;  %v787_v58 = vadd.f32 %v786_v1, %v2512_v19  ;;  %1653 = vmatprep.mubr.bf16.mxu1 %v882_v55  ;;  %v832_v10 = vmax.f32 %v712_v62, 0.0 }
 0x147   :  { %v715_v4 = vpop.f32.mrf.mxu0  ;;  %1589 = vmatmul.mubr.bf16.vlgmr.msra.gmra.mxu0 %v879_v54  ;;  %v788_v8 = vpop.f32.mrf.mxu1  ;;  %1654 = vmatmul.mubr.bf16.vlgmr.msra.gmra.mxu1 %v881_v59  ;;  %v834_v15 = vmax.f32 %v785_v3, 0.0 }
 0x148   :  { %v716_v7 = vadd.f32 %v715_v4, %v2506_v11  ;;  %v839_v61 = vmax.f32 %v714_v63, 0.0  ;;  %v789_v9 = vadd.f32 %v788_v8, %v2509_v16  ;;  %v841_v49 = vmax.f32 %v787_v58, 0.0 }
 0x149   :  { %v719_v57 = vpop.f32.mrf.mxu0  ;;  %v792_v14 = vpop.f32.mrf.mxu1 }
 0x14a   :  { %v840_v12 = vmax.f32 %v716_v7, 0.0  ;;  %v842_v17 = vmax.f32 %v789_v9, 0.0  ;;  %v887_v23 = vpack.c.bf16 %v839_v61, %v831_v60  ;;  %v889_v26 = vpack.c.bf16 %v841_v49, %v833_v20 }
 0x14b   :  { %v721_v18 = vpop.f32.mrf.mxu0  ;;  %v794_v22 = vpop.f32.mrf.mxu1  ;;  %v720_v29 = vadd.f32 %v719_v57, %v2503_v5  ;;  %v793_v33 = vadd.f32 %v792_v14, %v2512_v19 }
 0x14c   :  { %v888_v21 = vpack.c.bf16 %v840_v12, %v832_v10  ;;  %v890_v24 = vpack.c.bf16 %v842_v17, %v834_v15  ;;  %v722_v27 = vadd.f32 %v721_v18, %v2506_v11  ;;  %v795_v53 = vadd.f32 %v794_v22, %v2509_v16 }
 0x14d   :  { %v723_v25 = vpop.f32.mrf.mxu0  ;;  %v796_v13 = vpop.f32.mrf.mxu1  ;;  %v847_v42 = vmax.f32 %v720_v29, 0.0  ;;  %v849_v45 = vmax.f32 %v793_v33, 0.0 }
 0x14e   :  { %v724_v28 = vadd.f32 %v723_v25, %v2503_v5  ;;  %1596 = vmatprep.mubr.bf16.mxu0 %v888_v21  ;;  %v797_v30 = vadd.f32 %v796_v13, %v2512_v19  ;;  %1661 = vmatprep.mubr.bf16.mxu1 %v890_v24  ;;  %v848_v38 = vmax.f32 %v722_v27, 0.0  ;;  %v850_v0 = vmax.f32 %v795_v53, 0.0 }
 0x14f   :  { %v725_v31 = vpop.f32.mrf.mxu0  ;;  %1597 = vmatmul.mubr.bf16.gmra.mxu0 %v887_v23  ;;  %v798_v35 = vpop.f32.mrf.mxu1  ;;  %1662 = vmatmul.mubr.bf16.gmra.mxu1 %v889_v26 }
 0x150   :  { %v726_v34 = vadd.f32 %v725_v31, %v2506_v11  ;;  %v855_v32 = vmax.f32 %v724_v28, 0.0  ;;  %v799_v36 = vadd.f32 %v798_v35, %v2509_v16  ;;  %v857_v39 = vmax.f32 %v797_v30, 0.0 }
 0x151   :  { %v729_v37 = vpop.f32.mrf.mxu0  ;;  %v802_v41 = vpop.f32.mrf.mxu1 }
 0x152   :  { %v856_v40 = vmax.f32 %v726_v34, 0.0  ;;  %v858_v43 = vmax.f32 %v799_v36, 0.0  ;;  %v895_v48 = vpack.c.bf16 %v855_v32, %v847_v42  ;;  %v897_v52 = vpack.c.bf16 %v857_v39, %v849_v45 }
 0x153   :  { %v731_v44 = vpop.f32.mrf.mxu0  ;;  %v804_v47 = vpop.f32.mrf.mxu1  ;;  %v730_v59 = vadd.f32 %v729_v37, %v2503_v5  ;;  %v803_v2 = vadd.f32 %v802_v41, %v2512_v19  ;;  %v2565_v41 = vld [vmem:[%s2658_s4] ss:$0 sm:$0xff] }
 0x154   :  { %v896_v46 = vpack.c.bf16 %v856_v40, %v848_v38  ;;  %v898_v50 = vpack.c.bf16 %v858_v43, %v850_v0  ;;  %v732_v54 = vadd.f32 %v731_v44, %v2506_v11  ;;  %v805_v62 = vadd.f32 %v804_v47, %v2509_v16 }
 0x155   :  { %v733_v51 = vpop.f32.mrf.mxu0  ;;  %v806_v56 = vpop.f32.mrf.mxu1  ;;  %v865_v10 = vmax.f32 %v803_v2, 0.0 }
 0x156   :  { %v734_v55 = vadd.f32 %v733_v51, %v2503_v5  ;;  %1604 = vmatprep.mubr.bf16.mxu0 %v896_v46  ;;  %v807_v63 = vadd.f32 %v806_v56, %v2512_v19  ;;  %1669 = vmatprep.mubr.bf16.mxu1 %v898_v50  ;;  %v864_v7 = vmax.f32 %v732_v54, 0.0  ;;  %v863_v5 = vmax.f32 %v730_v59, 0.0 }
 0x157   :  { %v735_v1 = vpop.f32.mrf.mxu0  ;;  %1605 = vmatmul.mubr.bf16.gmra.mxu0 %v895_v48  ;;  %v808_v58 = vpop.f32.mrf.mxu1  ;;  %1670 = vmatmul.mubr.bf16.gmra.mxu1 %v897_v52  ;;  %v866_v9 = vmax.f32 %v805_v62, 0.0 }
 0x158   :  { %v736_v3 = vadd.f32 %v735_v1, %v2506_v11  ;;  %v871_v4 = vmax.f32 %v734_v55, 0.0  ;;  %v809_v6 = vadd.f32 %v808_v58, %v2509_v16  ;;  %v873_v8 = vmax.f32 %v807_v63, 0.0 }
 0x15a   :  { %v872_v61 = vmax.f32 %v736_v3, 0.0  ;;  %v874_v57 = vmax.f32 %v809_v6, 0.0  ;;  %v903_v12 = vpack.c.bf16 %v871_v4, %v863_v5  ;;  %v905_v60 = vpack.c.bf16 %v873_v8, %v865_v10 }
 0x15c   :  { %v904_v49 = vpack.c.bf16 %v872_v61, %v864_v7  ;;  %v906_v14 = vpack.c.bf16 %v874_v57, %v866_v9 }
 0x15e   :  { %1612 = vmatprep.mubr.bf16.mxu0 %v904_v49  ;;  %1677 = vmatprep.mubr.bf16.mxu1 %v906_v14  ;;  %v2223_v14 = vld [vmem:[#allocation2] sm:$0xff] }
 0x15f   :  { %1613 = vmatmul.mubr.bf16.gmra.mxu0 %v903_v12  ;;  %1678 = vmatmul.mubr.bf16.gmra.mxu1 %v905_v60 }
 0x1e7   :  { %v1987_v11 = vpop.f32.mrf.mxu0  ;;  %v2027_v19 = vpop.f32.mrf.mxu1 }
 0x1e9   :  { %v1988_v15 = vpop.f32.mrf.mxu0  ;;  %v2028_v17 = vpop.f32.mrf.mxu1 }
 0x1ea   :  { %v1989_v39 = vadd.f32 %v1988_v15, %v1987_v11  ;;  %v2029_v48 = vadd.f32 %v2028_v17, %v2027_v19 }
 0x1eb   :  { %v1990_v16 = vpop.f32.mrf.mxu0  ;;  %v2030_v18 = vpop.f32.mrf.mxu1 }
 0x1ec   :  { %v1461_v44 = vadd.f32 %v1989_v39, %v2565_v41 }
 0x1ed   :  { %v1991_v20 = vpop.f32.mrf.mxu0  ;;  %v2031_v21 = vpop.f32.mrf.mxu1 }
 0x1ee   :  { %v1992_v45 = vadd.f32 %v1991_v20, %v1990_v16  ;;  %v1526_v54 = vadd.f32 %v2029_v48, %v1461_v44  ;;  %v2032_v63 = vadd.f32 %v2031_v21, %v2030_v18 }
 0x1ef   :  { %v1993_v22 = vpop.f32.mrf.mxu0  ;;  %v2033_v23 = vpop.f32.mrf.mxu1 }
 0x1f0   :  { %v1464_v55 = vadd.f32 %v1992_v45, %v2565_v41 }
 0x1f1   :  { %v1994_v24 = vpop.f32.mrf.mxu0  ;;  %v2034_v25 = vpop.f32.mrf.mxu1 }
 0x1f2   :  { %v1995_v51 = vadd.f32 %v1994_v24, %v1993_v22  ;;  %v1529_v6 = vadd.f32 %v2032_v63, %v1464_v55  ;;  %v2035_v9 = vadd.f32 %v2034_v25, %v2033_v23 }
 0x1f3   :  { %v1996_v26 = vpop.f32.mrf.mxu0  ;;  %v2036_v27 = vpop.f32.mrf.mxu1 }
 0x1f4   :  { %v1469_v58 = vadd.f32 %v1995_v51, %v2565_v41 }
 0x1f5   :  { %v1997_v28 = vpop.f32.mrf.mxu0  ;;  %v2037_v13 = vpop.f32.mrf.mxu1 }
 0x1f6   :  { %v1998_v7 = vadd.f32 %v1997_v28, %v1996_v26  ;;  %v1534_v11 = vadd.f32 %v2035_v9, %v1469_v58  ;;  %v2038_v22 = vadd.f32 %v2037_v13, %v2036_v27  ;;  %v2224_v26 = vld [vmem:[#allocation2 + $0x8] sm:$0xff] }
 0x1f7   :  { %v1999_v29 = vpop.f32.mrf.mxu0  ;;  %v2546_v53 = vpop.f32.mrf.mxu1 }
 0x1f8   :  { %v1472_v15 = vadd.f32 %v1998_v7, %v2565_v41 }
 0x1f9   :  { %v2000_v30 = vpop.f32.mrf.mxu0  ;;  %v2548_v31 = vpop.f32.mrf.mxu1 }
 0x1fa   :  { %v2001_v17 = vadd.f32 %v2000_v30, %v1999_v29  ;;  %v1537_v45 = vadd.f32 %v2038_v22, %v1472_v15  ;;  %v2041_v27 = vadd.f32 %v2548_v31, %v2546_v53 }
 0x1fb   :  { %v2002_v33 = vpop.f32.mrf.mxu0  ;;  %v2550_v34 = vpop.f32.mrf.mxu1 }
 0x1fd   :  { %v2003_v35 = vpop.f32.mrf.mxu0  ;;  %v2552_v32 = vpop.f32.mrf.mxu1 }
 0x1fe   :  { %v2004_v39 = vadd.f32 %v2003_v35, %v2002_v33  ;;  %v2044_v53 = vadd.f32 %v2552_v32, %v2550_v34 }
 0x1ff   :  { %v2554_v36 = vpop.f32.mrf.mxu0  ;;  %v2556_v37 = vpop.f32.mrf.mxu1 }
 0x200   :  { %v1480_v33 = vadd.f32 %v2004_v39, %v2565_v41 }
 0x201   :  { %v2558_v38 = vpop.f32.mrf.mxu0  ;;  %v2560_v40 = vpop.f32.mrf.mxu1 }
 0x202   :  { %v1545_v7 = vadd.f32 %v2044_v53, %v1480_v33  ;;  %v2047_v34 = vadd.f32 %v2560_v40, %v2556_v37  ;;  %v2228_v40 = vld [vmem:[#allocation2 + $0x28] sm:$0xff] }
 0x203   :  { %v2567_v42 = vpop.f32.mrf.mxu0  ;;  %v2569_v0 = vpop.f32.mrf.mxu1 }
 0x205   :  { %v2571_v43 = vpop.f32.mrf.mxu0  ;;  %v2574_v46 = vpop.f32.mrf.mxu1 }
 0x207   :  { %v2067_v47 = vpop.f32.mrf.mxu0  ;;  %v2107_v50 = vpop.f32.mrf.mxu1 }
 0x209   :  { %v2068_v52 = vpop.f32.mrf.mxu0  ;;  %v2108_v59 = vpop.f32.mrf.mxu1 }
 0x20a   :  { %v2069_v56 = vadd.f32 %v2068_v52, %v2067_v47  ;;  %v2109_v2 = vadd.f32 %v2108_v59, %v2107_v50  ;;  %v1477_v47 = vadd.f32 %v2001_v17, %v2565_v41  ;;  %v2007_v59 = vadd.f32 %v2558_v38, %v2554_v36 }
 0x20b   :  { %v2070_v62 = vpop.f32.mrf.mxu0  ;;  %v2110_v3 = vpop.f32.mrf.mxu1  ;;  %v2010_v36 = vadd.f32 %v2571_v43, %v2567_v42 }
 0x20c   :  { %v1591_v1 = vadd.f32 %v2069_v56, %v1526_v54  ;;  %v2225_v54 = vld [vmem:[#allocation2 + $0x10] sm:$0xff]  ;;  %v1542_v56 = vadd.f32 %v2041_v27, %v1477_v47 }
 0x20d   :  { %v2071_v4 = vpop.f32.mrf.mxu0  ;;  %v2111_v5 = vpop.f32.mrf.mxu1  ;;  %v1488_v15 = vadd.f32 %v2010_v36, %v2565_v41 }
 0x20e   :  { %v1656_v8 = vadd.f32 %v2109_v2, %v1591_v1  ;;  %v2072_v61 = vadd.f32 %v2071_v4, %v2070_v62  ;;  %v2112_v49 = vadd.f32 %v2111_v5, %v2110_v3  ;;  %v2226_v4 = vld [vmem:[#allocation2 + $0x18] sm:$0xff] }
 0x20f   :  { %v2073_v57 = vpop.f32.mrf.mxu0  ;;  %v2113_v12 = vpop.f32.mrf.mxu1 }
 0x210   :  { %v1594_v10 = vadd.f32 %v2072_v61, %v1529_v6  ;;  %v2578_v60 = vadd.f32 %v2223_v14, %v1656_v8  ;;  %v1485_v61 = vadd.f32 %v2007_v59, %v2565_v41 }
 0x211   :  { %v2074_v19 = vpop.f32.mrf.mxu0  ;;  %v2114_v20 = vpop.f32.mrf.mxu1 }
 0x212   :  { %v1659_v16 = vadd.f32 %v2112_v49, %v1594_v10  ;;  %v2075_v18 = vadd.f32 %v2074_v19, %v2073_v57  ;;  %1694 = vadd.xlane.f32.xlu0 %v2578_v60  ;;  %v2115_v24 = vadd.f32 %v2114_v20, %v2113_v12  ;;  %v2227_v12 = vld [vmem:[#allocation2 + $0x20] sm:$0xff]  ;;  %v1550_v19 = vadd.f32 %v2047_v34, %v1485_v61 }
 0x213   :  { %v2076_v21 = vpop.f32.mrf.mxu0  ;;  %v2116_v25 = vpop.f32.mrf.mxu1 }
 0x214   :  { %v1599_v23 = vadd.f32 %v2075_v18, %v1534_v11  ;;  %v2582_v28 = vadd.f32 %v2224_v26, %v1659_v16  ;;  %v2050_v18 = vadd.f32 %v2574_v46, %v2569_v0 }
 0x215   :  { %v2077_v44 = vpop.f32.mrf.mxu0  ;;  %v2117_v30 = vpop.f32.mrf.mxu1 }
 0x216   :  { %v1664_v48 = vadd.f32 %v2115_v24, %v1599_v23  ;;  %v2078_v29 = vadd.f32 %v2077_v44, %v2076_v21  ;;  %1696 = vadd.xlane.f32.xlu0 %v2582_v28  ;;  %v2118_v51 = vadd.f32 %v2117_v30, %v2116_v25  ;;  %v1553_v24 = vadd.f32 %v2050_v18, %v1488_v15 }
 0x217   :  { %v2079_v50 = vpop.f32.mrf.mxu0  ;;  %v2119_v52 = vpop.f32.mrf.mxu1 }
 0x218   :  { %v1602_v13 = vadd.f32 %v2078_v29, %v1537_v45  ;;  %v2588_v55 = vadd.f32 %v2225_v54, %v1664_v48  ;;  %v2229_v45 = vld [vmem:[#allocation2 + $0x30] sm:$0xff]  ;;  %v2230_v29 = vld [vmem:[#allocation2 + $0x38] sm:$0xff] }
 0x219   :  { %v2080_v35 = vpop.f32.mrf.mxu0  ;;  %v2120_v1 = vpop.f32.mrf.mxu1 }
 0x21a   :  { %v1667_v62 = vadd.f32 %v2118_v51, %v1602_v13  ;;  %v2081_v63 = vadd.f32 %v2080_v35, %v2079_v50  ;;  %1698 = vadd.xlane.f32.xlu1 %v2588_v55  ;;  %v2121_v3 = vadd.f32 %v2120_v1, %v2119_v52 }
 0x21b   :  { %v2082_v31 = vpop.f32.mrf.mxu0  ;;  %v2122_v58 = vpop.f32.mrf.mxu1 }
 0x21c   :  { %v1607_v2 = vadd.f32 %v2081_v63, %v1542_v56  ;;  %v1689_v6 = vadd.f32 %v2226_v4, %v1667_v62 }
 0x21d   :  { %v2083_v8 = vpop.f32.mrf.mxu0  ;;  %v2123_v9 = vpop.f32.mrf.mxu1 }
 0x21e   :  { %v1672_v38 = vadd.f32 %v2121_v3, %v1607_v2  ;;  %v2084_v5 = vadd.f32 %v2083_v8, %v2082_v31  ;;  %1700 = vadd.xlane.f32.xlu1 %v1689_v6  ;;  %v2124_v10 = vadd.f32 %v2123_v9, %v2122_v58 }
 0x21f   :  { %v2085_v57 = vpop.f32.mrf.mxu0  ;;  %v2125_v49 = vpop.f32.mrf.mxu1 }
 0x220   :  { %v1610_v32 = vadd.f32 %v2084_v5, %v1545_v7  ;;  %v1690_v14 = vadd.f32 %v2227_v12, %v1672_v38 }
 0x221   :  { %v2086_v11 = vpop.f32.mrf.mxu0  ;;  %v2126_v42 = vpop.f32.mrf.mxu1 }
 0x222   :  { %v1675_v17 = vadd.f32 %v2124_v10, %v1610_v32  ;;  %v2087_v16 = vadd.f32 %v2086_v11, %v2085_v57  ;;  %1702 = vadd.xlane.f32.xlu0 %v1690_v14  ;;  %v2127_v21 = vadd.f32 %v2126_v42, %v2125_v49 }
 0x223   :  { %v2088_v43 = vpop.f32.mrf.mxu0  ;;  %v2128_v37 = vpop.f32.mrf.mxu1 }
 0x224   :  { %v1615_v20 = vadd.f32 %v2087_v16, %v1550_v19  ;;  %v1691_v22 = vadd.f32 %v2228_v40, %v1675_v17  ;;  %v1970_v40 = vld [vmem:[%s2660_s6] ss:$0 sm:$0xff] }
 0x225   :  { %v2089_v23 = vpop.f32.mrf.mxu0  ;;  %v2129_v39 = vpop.f32.mrf.mxu1 }
 0x226   :  { %v1680_v25 = vadd.f32 %v2127_v21, %v1615_v20  ;;  %v2090_v26 = vadd.f32 %v2089_v23, %v2088_v43  ;;  %1704 = vadd.xlane.f32.xlu1 %v1691_v22  ;;  %v2130_v44 = vadd.f32 %v2129_v39, %v2128_v37  ;;  %v1969_v20 = vld [vmem:[%s2659_s5] ss:$0 sm:$0xff]  ;;  %s2350_s5 = smov [#allocation10]  }
 0x227   :  { %s1826_s6 = sshll.u32 %s2350_s5, 4  ;;  %s1827_s6 = int_to_ptr.vmem [resolvable:$true] %s1826_s6 }
 0x228   :  { %v1618_v41 = vadd.f32 %v2090_v26, %v1553_v24  ;;  %v1692_v47 = vadd.f32 %v2229_v45, %v1680_v25  ;;  %s2311_s28 = scalar_lea.vmem %s1827_s6, 1024  ;;  %p2316_p7 = scmp.lt.s32.totalorder %s1827_s6, %s1827_s6 }
 0x229   :  { %p2312_p6 = scmp.ne.s32.totalorder %s1827_s6, %s2311_s28  ;;  %p2317_p8 = scmp.lt.s32.totalorder %s2311_s28, %s2311_s28 }
 0x22a   :  { %v1683_v48 = vadd.f32 %v2130_v44, %v1618_v41  ;;  %1706 = vadd.xlane.f32.xlu0 %v1692_v47 }
 0x22b   :  { %p2318_p9 = por %p2317_p8, %p2316_p7 }
 0x22c   :  { %v1693_v30 = vadd.f32 %v2230_v29, %v1683_v48 }
 0x22d   :  { %p2319_p10 = pnand %p2318_p9, %p2312_p6 }
 0x22e   :  { %1708 = vadd.xlane.f32.xlu1 %v1693_v30 }
 0x29b   :  { %v1695_v0 = vpop.xlane.xlu0 %1694 }
 0x29c   :  { %v1711_v46 = vmul.f32 0.0078125, %v1695_v0 }
 0x29e   :  { %v1719_v50 = vsub.f32 %v2578_v60, %v1711_v46 }
 0x29f   :  { %v1697_v27 = vpop.xlane.xlu0 %1696 }
 0x2a0   :  { %v1712_v13 = vmul.f32 0.0078125, %v1697_v27  ;;  %v1727_v51 = vmul.f32 %v1719_v50, %v1719_v50 }
 0x2a2   :  { %v2606_v52 = vsub.f32 %v2582_v28, %v1712_v13  ;;  %1735 = vadd.xlane.f32.xlu0 %v1727_v51 }
 0x2a3   :  { %v1699_v54 = vpop.xlane.xlu1 %1698 }
 0x2a4   :  { %v1713_v33 = vmul.f32 0.0078125, %v1699_v54  ;;  %v1728_v35 = vmul.f32 %v2606_v52, %v2606_v52 }
 0x2a6   :  { %v2611_v56 = vsub.f32 %v2588_v55, %v1713_v33  ;;  %1737 = vadd.xlane.f32.xlu1 %v1728_v35 }
 0x2a7   :  { %v1701_v59 = vpop.xlane.xlu1 %1700 }
 0x2a8   :  { %v1714_v62 = vmul.f32 0.0078125, %v1701_v59  ;;  %v1729_v60 = vmul.f32 %v2611_v56, %v2611_v56 }
 0x2aa   :  { %v2615_v63 = vsub.f32 %v1689_v6, %v1714_v62  ;;  %1739 = vadd.xlane.f32.xlu0 %v1729_v60 }
 0x2ab   :  { %v1703_v28 = vpop.xlane.xlu0 %1702 }
 0x2ac   :  { %v1715_v1 = vmul.f32 0.0078125, %v1703_v28  ;;  %v1730_v53 = vmul.f32 %v2615_v63, %v2615_v63 }
 0x2ae   :  { %v2619_v31 = vsub.f32 %v1690_v14, %v1715_v1  ;;  %1741 = vadd.xlane.f32.xlu1 %v1730_v53 }
 0x2af   :  { %v1705_v2 = vpop.xlane.xlu1 %1704 }
 0x2b0   :  { %v1716_v55 = vmul.f32 0.0078125, %v1705_v2  ;;  %v1731_v3 = vmul.f32 %v2619_v31, %v2619_v31 }
 0x2b2   :  { %v2623_v58 = vsub.f32 %v1691_v22, %v1716_v55  ;;  %1743 = vadd.xlane.f32.xlu0 %v1731_v3 }
 0x2b3   :  { %v1707_v4 = vpop.xlane.xlu0 %1706 }
 0x2b4   :  { %v1717_v6 = vmul.f32 0.0078125, %v1707_v4  ;;  %v1732_v7 = vmul.f32 %v2623_v58, %v2623_v58 }
 0x2b6   :  { %v2627_v8 = vsub.f32 %v1692_v47, %v1717_v6  ;;  %1745 = vadd.xlane.f32.xlu1 %v1732_v7 }
 0x2b7   :  { %v1709_v61 = vpop.xlane.xlu1 %1708 }
 0x2b8   :  { %v1718_v36 = vmul.f32 0.0078125, %v1709_v61  ;;  %v1733_v38 = vmul.f32 %v2627_v8, %v2627_v8 }
 0x2ba   :  { %v2631_v5 = vsub.f32 %v1693_v30, %v1718_v36  ;;  %1747 = vadd.xlane.f32.xlu0 %v1733_v38 }
 0x2bc   :  { %v1734_v9 = vmul.f32 %v2631_v5, %v2631_v5 }
 0x2be   :  { %1749 = vadd.xlane.f32.xlu1 %v1734_v9 }
 0x32b   :  { %v1736_v57 = vpop.xlane.xlu0 %1735 }
 0x32c   :  { %v1751_v34 = vmul.f32 0.0078125, %v1736_v57 }
 0x32e   :  { %v1759_v32 = vadd.f32 1e-05, %v1751_v34 }
 0x32f   :  { %v1738_v10 = vpop.xlane.xlu1 %1737 }
 0x330   :  { %2207 = vrsqrt.f32 %v1759_v32  ;;  %v1752_v49 = vmul.f32 0.0078125, %v1738_v10 }
 0x332   :  { %v1760_v12 = vadd.f32 1e-05, %v1752_v49 }
 0x333   :  { %v1740_v14 = vpop.xlane.xlu0 %1739 }
 0x334   :  { %2209 = vrsqrt.f32 %v1760_v12  ;;  %v1753_v11 = vmul.f32 0.0078125, %v1740_v14 }
 0x336   :  { %v1761_v19 = vadd.f32 1e-05, %v1753_v11 }
 0x337   :  { %v1742_v15 = vpop.xlane.xlu1 %1741 }
 0x338   :  { %2211 = vrsqrt.f32 %v1761_v19  ;;  %v1754_v17 = vmul.f32 0.0078125, %v1742_v15 }
 0x33a   :  { %v1762_v16 = vadd.f32 1e-05, %v1754_v17 }
 0x33b   :  { %v1744_v42 = vpop.xlane.xlu0 %1743 }
 0x33c   :  { %2213 = vrsqrt.f32 %v1762_v16  ;;  %v1755_v43 = vmul.f32 0.0078125, %v1744_v42 }
 0x33d   :  { %v2208_v18 = vpop.eup %2207 }
 0x33e   :  { %v1775_v21 = vmul.f32 %v2208_v18, %v1719_v50  ;;  %v1763_v37 = vadd.f32 1e-05, %v1755_v43 }
 0x33f   :  { %v1746_v22 = vpop.xlane.xlu1 %1745 }
 0x340   :  { %v1790_v23 = vmul.f32 %v1969_v20, %v1775_v21  ;;  %2215 = vrsqrt.f32 %v1763_v37  ;;  %v1756_v24 = vmul.f32 0.0078125, %v1746_v22 }
 0x341   :  { %v2210_v25 = vpop.eup %2209 }
 0x342   :  { %v1805_v26 = vadd.f32 %v1970_v40, %v1790_v23  ;;  %v1776_v39 = vmul.f32 %v2210_v25, %v2606_v52  ;;  %v1764_v41 = vadd.f32 1e-05, %v1756_v24 }
 0x343   :  { %v1748_v44 = vpop.xlane.xlu0 %1747 }
 0x344   :  { %1813 = vst [vmem:[#allocation10] sm:$0xff] %v1805_v26  ;;  %v1791_v45 = vmul.f32 %v1969_v20, %v1776_v39  ;;  %2217 = vrsqrt.f32 %v1764_v41  ;;  %v1757_v47 = vmul.f32 0.0078125, %v1748_v44 }
 0x345   :  { %v2212_v48 = vpop.eup %2211 }
 0x346   :  { %v1806_v29 = vadd.f32 %v1970_v40, %v1791_v45  ;;  %v1777_v30 = vmul.f32 %v2212_v48, %v2611_v56  ;;  %v1765_v0 = vadd.f32 1e-05, %v1757_v47 }
 0x347   :  { %v1750_v46 = vpop.xlane.xlu1 %1749 }
 0x348   :  { %1814 = vst [vmem:[#allocation10 + $0x8] sm:$0xff] %v1806_v29  ;;  %v1792_v50 = vmul.f32 %v1969_v20, %v1777_v30  ;;  %2219 = vrsqrt.f32 %v1765_v0  ;;  %v1758_v27 = vmul.f32 0.0078125, %v1750_v46 }
 0x349   :  { %v2214_v13 = vpop.eup %2213 }
 0x34a   :  { %v1807_v51 = vadd.f32 %v1970_v40, %v1792_v50  ;;  %v1778_v52 = vmul.f32 %v2214_v13, %v2615_v63  ;;  %v1766_v54 = vadd.f32 1e-05, %v1758_v27 }
 0x34c   :  { %1815 = vst [vmem:[#allocation10 + $0x10] sm:$0xff] %v1807_v51  ;;  %v1793_v33 = vmul.f32 %v1969_v20, %v1778_v52  ;;  %2221 = vrsqrt.f32 %v1766_v54 }
 0x34d   :  { %v2216_v35 = vpop.eup %2215 }
 0x34e   :  { %v1808_v59 = vadd.f32 %v1970_v40, %v1793_v33  ;;  %v1779_v62 = vmul.f32 %v2216_v35, %v2619_v31 }
 0x350   :  { %1816 = vst [vmem:[#allocation10 + $0x18] sm:$0xff] %v1808_v59  ;;  %v1794_v56 = vmul.f32 %v1969_v20, %v1779_v62 }
 0x351   :  { %v2218_v60 = vpop.eup %2217 }
 0x352   :  { %v1809_v28 = vadd.f32 %v1970_v40, %v1794_v56  ;;  %v1780_v1 = vmul.f32 %v2218_v60, %v2623_v58 }
 0x354   :  { %1817 = vst [vmem:[#allocation10 + $0x20] sm:$0xff] %v1809_v28  ;;  %v1795_v53 = vmul.f32 %v1969_v20, %v1780_v1 }
 0x355   :  { %v2220_v2 = vpop.eup %2219 }
 0x356   :  { %v1810_v55 = vadd.f32 %v1970_v40, %v1795_v53  ;;  %v1781_v63 = vmul.f32 %v2220_v2, %v2627_v8 }
 0x358   :  { %1818 = vst [vmem:[#allocation10 + $0x28] sm:$0xff] %v1810_v55  ;;  %v1796_v3 = vmul.f32 %v1969_v20, %v1781_v63 }
 0x359   :  { %v2222_v4 = vpop.eup %2221 }
 0x35a   :  { %v1811_v6 = vadd.f32 %v1970_v40, %v1796_v3  ;;  %v1782_v7 = vmul.f32 %v2222_v4, %v2631_v5 }
 0x35c   :  { %1819 = vst [vmem:[#allocation10 + $0x30] sm:$0xff] %v1811_v6  ;;  %v1797_v31 = vmul.f32 %v1969_v20, %v1782_v7 }
 0x35e   :  { %v1812_v61 = vadd.f32 %v1970_v40, %v1797_v31 }
 0x360   :  { %1820 = vst [vmem:[#allocation10 + $0x38] sm:$0xff] %v1812_v61 }
 0x361   :  { %2322 = shalt.err (!%p2319_p10)
}
 0x362   :  { %1832 = dma.vmem_to_hbm [thread:$0]  %s1827_s6, 1024, %s2661_s7, [#allocation4], %s2343_s11, %s2343_s11, %s2344_s12  }
 0x363   :  { %2337 = dma.done.wait [#allocation4], 1024  }
 0x364   :  { %2338 = vsyncadd [#allocation4], 4294966272 }
 0x365   :  { %1836 = vsyncpa [#allocation3], 1 }
 0x366   :  { %1837 = vsyncpa [#allocation6], 1 }
 0x367   :  { %1838 = vsyncpa [#allocation9], 1 }
 0x368   :  { %1839 = vsyncpa [#allocation4], 1 }

// kernel: tpu_custom_call.1
= control target key start
LH: loop header
LB: loop body
LE: loop exit
PB: predicated region body
PF: predicated region fallthrough
CT: control target
= control target key end

     0   :  { %12 = vsyncpa [#allocation3], 0  ;;  %s2654_s0 = inlined_call_operand.hbm [shape: f32[64,128], index: 0, kind: input, shape index: {}]   ;;  %s2655_s1 = inlined_call_operand.hbm [shape: bf16[128,1024], index: 1, kind: input, shape index: {}]   ;;  %s2656_s2 = inlined_call_operand.hbm [shape: f32[1,1024], index: 2, kind: input, shape index: {}]   ;;  %s2657_s3 = inlined_call_operand.hbm [shape: bf16[1024,128], index: 3, kind: input, shape index: {}]   ;;  %s2658_s4 = inlined_call_operand.vmem [shape: f32[1,128], index: 4, kind: input, shape index: {}]   ;;  %s2659_s5 = inlined_call_operand.vmem [shape: f32[1,128], index: 5, kind: input, shape index: {}]   ;;  %s2660_s6 = inlined_call_operand.vmem [shape: f32[1,128], index: 6, kind: input, shape index: {}]   ;;  %s2661_s7 = inlined_call_operand.hbm [shape: f32[64,128], index: 7, kind: output, shape index: {}]  }
   0x1   :  { %13 = vsyncpa [#allocation6], 0 }
   0x2   :  { %14 = vsyncpa [#allocation9], 0 }
   0x3   :  { %15 = vsyncpa [#allocation4], 0  ;;  %s2339_s24 = smov [#allocation5]  }
   0x4   :  { %s33_s25 = sshll.u32 %s2339_s24, 4  ;;  %s34_s25 = int_to_ptr.vmem [resolvable:$true] %s33_s25 }
   0x5   :  { %s2239_s26 = scalar_lea.vmem %s34_s25, 8192  ;;  %p2244_p1 = scmp.lt.s32.totalorder %s34_s25, %s34_s25 }
   0x6   :  { %p2240_p0 = scmp.ne.s32.totalorder %s34_s25, %s2239_s26  ;;  %p2245_p2 = scmp.lt.s32.totalorder %s2239_s26, %s2239_s26 }
   0x8   :  { %p2246_p3 = por %p2245_p2, %p2244_p1 }
   0xa   :  { %p2247_p4 = pnand %p2246_p3, %p2240_p0 }
   0xc   :  { %2250 = shalt.err (!%p2247_p4)
}
   0xd   :  { %s2340_s27 = smov 512   ;;  %s2341_s28 = smov 32  }
   0xe   :  { %39 = dma.hbm_to_vmem [thread:$0]  %s2655_s1, 8192, %s34_s25, [#allocation6], %s2340_s27, %s2340_s27, %s2341_s28  }
   0xf   :  { %s2342_s8 = smov [#allocation2]  }
  0x10   :  { %s21_s9 = sshll.u32 %s2342_s8, 4  ;;  %s22_s9 = int_to_ptr.vmem [resolvable:$true] %s21_s9 }
  0x11   :  { %s2259_s10 = scalar_lea.vmem %s22_s9, 1024  ;;  %p2264_p6 = scmp.lt.s32.totalorder %s22_s9, %s22_s9 }
  0x12   :  { %p2260_p5 = scmp.ne.s32.totalorder %s22_s9, %s2259_s10  ;;  %p2265_p7 = scmp.lt.s32.totalorder %s2259_s10, %s2259_s10 }
  0x14   :  { %p2266_p8 = por %p2265_p7, %p2264_p6 }
  0x16   :  { %p2267_p9 = pnand %p2266_p8, %p2260_p5 }
  0x18   :  { %2270 = shalt.err (!%p2267_p9)
}
  0x19   :  { %s2343_s11 = smov 128   ;;  %s2344_s12 = smov 8  }
  0x1a   :  { %27 = dma.hbm_to_vmem [thread:$0]  %s2654_s0, 1024, %s22_s9, [#allocation3], %s2343_s11, %s2343_s11, %s2344_s12  }
  0x1b   :  { %s2345_s1 = smov [#allocation7]   ;;  %s2346_s16 = smov [#allocation8]  }
  0x1c   :  { %s46_s15 = sshll.u32 %s2345_s1, 4  ;;  %s55_s17 = sshll.u32 %s2346_s16, 4  ;;  %s47_s15 = int_to_ptr.vmem [resolvable:$true] %s46_s15  ;;  %s56_s17 = int_to_ptr.vmem [resolvable:$true] %s55_s17 }
  0x1d   :  { %s2279_s18 = scalar_lea.vmem %s47_s15, 128  ;;  %p2284_p11 = scmp.lt.s32.totalorder %s47_s15, %s47_s15 }
  0x1e   :  { %p2280_p10 = scmp.ne.s32.totalorder %s47_s15, %s2279_s18  ;;  %p2285_p12 = scmp.lt.s32.totalorder %s2279_s18, %s2279_s18 }
  0x20   :  { %p2286_p13 = por %p2285_p12, %p2284_p11 }
  0x22   :  { %p2287_p0 = pnand %p2286_p13, %p2280_p10 }
  0x24   :  { %2290 = shalt.err (!%p2287_p0)
}
  0x25   :  { %49 = dma.hbm_to_vmem [thread:$0]  %s2656_s2, 128, %s47_s15, [#allocation6]  }
  0x26   :  { %s2299_s21 = scalar_lea.vmem %s56_s17, 8192  ;;  %p2304_p2 = scmp.lt.s32.totalorder %s56_s17, %s56_s17 }
  0x27   :  { %p2300_p1 = scmp.ne.s32.totalorder %s56_s17, %s2299_s21  ;;  %p2305_p3 = scmp.lt.s32.totalorder %s2299_s21, %s2299_s21 }
  0x29   :  { %p2306_p4 = por %p2305_p3, %p2304_p2 }
  0x2b   :  { %p2307_p5 = pnand %p2306_p4, %p2300_p1 }
  0x2d   :  { %2310 = shalt.err (!%p2307_p5)
}
  0x2e   :  { %s2347_s0 = smov 64   ;;  %s2348_s22 = smov 4  }
  0x2f   :  { %61 = dma.hbm_to_vmem [thread:$0]  %s2657_s3, 8192, %s56_s17, [#allocation9], %s2347_s0, %s2347_s0, %s2348_s22  }
  0x30   :  { %2331 = dma.done.wait [#allocation3], 1024  }
  0x31   :  { %2332 = vsyncadd [#allocation3], 4294966272 }
  0x32   :  { %2333 = dma.done.wait [#allocation6], 8320  }
  0x33   :  { %2334 = vsyncadd [#allocation6], 4294958976 }
  0x34   :  { %2335 = dma.done.wait [#allocation9], 8192  }
  0x35   :  { %2336 = vsyncadd [#allocation9], 4294959104  ;;  %v2349_v0 = vmov 0   ;;  %v149_v1 = vld [vmem:[#allocation5 + $0x1c0] sm:$0xff]  ;;  %v150_v3 = vld [vmem:[#allocation5 + $0x1c8] sm:$0xff] }
  0x36   :  { %551 = vmatprep.mubr.bf16.mxu0 %v2349_v0  ;;  %624 = vmatprep.mubr.bf16.mxu1 %v2349_v0  ;;  %v153_v2 = vld [vmem:[#allocation5 + $0x1e0] sm:$0xff]  ;;  %v154_v5 = vld [vmem:[#allocation5 + $0x1e8] sm:$0xff]  ;;  %v151_v60 = vld [vmem:[#allocation5 + $0x1d0] sm:$0xff] }
  0x37   :  { %v1897_v4 = vcombine.high %v149_v1, %v153_v2  ;;  %v1896_v6 = vcombine.low %v149_v1, %v153_v2  ;;  %v141_v7 = vld [vmem:[#allocation5 + $0x180] sm:$0xff]  ;;  %v1899_v9 = vcombine.high %v150_v3, %v154_v5  ;;  %v1898_v10 = vcombine.low %v150_v3, %v154_v5  ;;  %v142_v12 = vld [vmem:[#allocation5 + $0x188] sm:$0xff]  ;;  %v155_v63 = vld [vmem:[#allocation5 + $0x1f0] sm:$0xff] }
  0x38   :  { %v145_v8 = vld [vmem:[#allocation5 + $0x1a0] sm:$0xff]  ;;  %v146_v13 = vld [vmem:[#allocation5 + $0x1a8] sm:$0xff]  ;;  %v156_v5 = vld [vmem:[#allocation5 + $0x1f8] sm:$0xff] }
  0x39   :  { %v1889_v11 = vcombine.high %v141_v7, %v145_v8  ;;  %v133_v14 = vld [vmem:[#allocation5 + $0x140] sm:$0xff]  ;;  %519 = vmatprep.subr.bf16.mxu0 %v1897_v4  ;;  %v1891_v15 = vcombine.high %v142_v12, %v146_v13  ;;  %v134_v17 = vld [vmem:[#allocation5 + $0x148] sm:$0xff]  ;;  %592 = vmatprep.subr.bf16.mxu1 %v1899_v9  ;;  %v1888_v19 = vcombine.low %v141_v7, %v145_v8  ;;  %v152_v4 = vld [vmem:[#allocation5 + $0x1d8] sm:$0xff] }
  0x3a   :  { %v137_v16 = vld [vmem:[#allocation5 + $0x160] sm:$0xff]  ;;  %v138_v18 = vld [vmem:[#allocation5 + $0x168] sm:$0xff]  ;;  %520 = vmatpush1.bf16.msra.mxu0 %v1896_v6  ;;  %593 = vmatpush1.bf16.msra.mxu1 %v1898_v10  ;;  %v1890_v20 = vcombine.low %v142_v12, %v146_v13  ;;  %v143_v7 = vld [vmem:[#allocation5 + $0x190] sm:$0xff]  ;;  %v1901_v9 = vcombine.high %v151_v60, %v155_v63 }
  0x3b   :  { %521 = vmatprep.subr.bf16.mxu0 %v1889_v11  ;;  %v1881_v21 = vcombine.high %v133_v14, %v137_v16  ;;  %594 = vmatprep.subr.bf16.mxu1 %v1891_v15  ;;  %v1883_v22 = vcombine.high %v134_v17, %v138_v18  ;;  %v125_v23 = vld [vmem:[#allocation5 + $0x100] sm:$0xff]  ;;  %v126_v25 = vld [vmem:[#allocation5 + $0x108] sm:$0xff]  ;;  %v1880_v27 = vcombine.low %v133_v14, %v137_v16  ;;  %v147_v10 = vld [vmem:[#allocation5 + $0x1b0] sm:$0xff] }
  0x3c   :  { %v129_v24 = vld [vmem:[#allocation5 + $0x120] sm:$0xff]  ;;  %v130_v26 = vld [vmem:[#allocation5 + $0x128] sm:$0xff]  ;;  %v1882_v28 = vcombine.low %v134_v17, %v138_v18  ;;  %v1903_v11 = vcombine.high %v152_v4, %v156_v5  ;;  %v144_v12 = vld [vmem:[#allocation5 + $0x198] sm:$0xff]  ;;  %v1900_v15 = vcombine.low %v151_v60, %v155_v63  ;;  %v1902_v17 = vcombine.low %v152_v4, %v156_v5 }
  0x3d   :  { %v1873_v29 = vcombine.high %v125_v23, %v129_v24  ;;  %v1875_v30 = vcombine.high %v126_v25, %v130_v26  ;;  %v117_v31 = vld [vmem:[#allocation5 + $0xc0] sm:$0xff]  ;;  %v118_v33 = vld [vmem:[#allocation5 + $0xc8] sm:$0xff]  ;;  %v1872_v35 = vcombine.low %v125_v23, %v129_v24  ;;  %v1874_v36 = vcombine.low %v126_v25, %v130_v26  ;;  %v148_v14 = vld [vmem:[#allocation5 + $0x1b8] sm:$0xff] }
  0x3e   :  { %522 = vmatpush1.bf16.msra.mxu0 %v1888_v19  ;;  %595 = vmatpush1.bf16.msra.mxu1 %v1890_v20  ;;  %v121_v32 = vld [vmem:[#allocation5 + $0xe0] sm:$0xff]  ;;  %v122_v34 = vld [vmem:[#allocation5 + $0xe8] sm:$0xff]  ;;  %v135_v16 = vld [vmem:[#allocation5 + $0x150] sm:$0xff]  ;;  %v1893_v18 = vcombine.high %v143_v7, %v147_v10  ;;  %v1895_v20 = vcombine.high %v144_v12, %v148_v14  ;;  %v1892_v25 = vcombine.low %v143_v7, %v147_v10 }
  0x3f   :  { %523 = vmatprep.subr.bf16.mxu0 %v1881_v21  ;;  %596 = vmatprep.subr.bf16.mxu1 %v1883_v22  ;;  %v1865_v37 = vcombine.high %v117_v31, %v121_v32  ;;  %v1867_v38 = vcombine.high %v118_v33, %v122_v34  ;;  %v109_v39 = vld [vmem:[#allocation5 + $0x80] sm:$0xff]  ;;  %v110_v41 = vld [vmem:[#allocation5 + $0x88] sm:$0xff]  ;;  %v1864_v43 = vcombine.low %v117_v31, %v121_v32  ;;  %v139_v19 = vld [vmem:[#allocation5 + $0x170] sm:$0xff] }
  0x40   :  { %v113_v40 = vld [vmem:[#allocation5 + $0xa0] sm:$0xff]  ;;  %v114_v42 = vld [vmem:[#allocation5 + $0xa8] sm:$0xff]  ;;  %v1866_v44 = vcombine.low %v118_v33, %v122_v34  ;;  %v83_v21 = vld [vmem:[#allocation2 + $0x10] sm:$0xff]  ;;  %v1884_v34 = vcombine.low %v135_v16, %v139_v19 }
  0x41   :  { %v1857_v45 = vcombine.high %v109_v39, %v113_v40  ;;  %v1859_v46 = vcombine.high %v110_v41, %v114_v42  ;;  %v101_v47 = vld [vmem:[#allocation5 + $0x40] sm:$0xff]  ;;  %v102_v49 = vld [vmem:[#allocation5 + $0x48] sm:$0xff]  ;;  %v1856_v51 = vcombine.low %v109_v39, %v113_v40  ;;  %v1858_v52 = vcombine.low %v110_v41, %v114_v42  ;;  %v84_v22 = vld [vmem:[#allocation2 + $0x18] sm:$0xff] }
  0x42   :  { %524 = vmatpush1.bf16.msra.mxu0 %v1880_v27  ;;  %597 = vmatpush1.bf16.msra.mxu1 %v1882_v28  ;;  %v105_v48 = vld [vmem:[#allocation5 + $0x60] sm:$0xff]  ;;  %v106_v50 = vld [vmem:[#allocation5 + $0x68] sm:$0xff]  ;;  %v136_v23 = vld [vmem:[#allocation5 + $0x158] sm:$0xff]  ;;  %v1894_v27 = vcombine.low %v144_v12, %v148_v14  ;;  %v1885_v28 = vcombine.high %v135_v16, %v139_v19  ;;  %v2414_v32 = vpack.c.bf16 %v84_v22, %v83_v21 }
  0x43   :  { %525 = vmatprep.subr.bf16.mxu0 %v1873_v29  ;;  %598 = vmatprep.subr.bf16.mxu1 %v1875_v30  ;;  %v1849_v53 = vcombine.high %v101_v47, %v105_v48  ;;  %v1851_v54 = vcombine.high %v102_v49, %v106_v50  ;;  %v93_v55 = vld [vmem:[#allocation5] sm:$0xff]  ;;  %v94_v57 = vld [vmem:[#allocation5 + $0x8] sm:$0xff]  ;;  %v1848_v59 = vcombine.low %v101_v47, %v105_v48  ;;  %v140_v24 = vld [vmem:[#allocation5 + $0x178] sm:$0xff] }
  0x44   :  { %v97_v56 = vld [vmem:[#allocation5 + $0x20] sm:$0xff]  ;;  %v98_v58 = vld [vmem:[#allocation5 + $0x28] sm:$0xff]  ;;  %v1850_v61 = vcombine.low %v102_v49, %v106_v50  ;;  %v127_v26 = vld [vmem:[#allocation5 + $0x110] sm:$0xff]  ;;  %v1887_v30 = vcombine.high %v136_v23, %v140_v24 }
  0x45   :  { %v1841_v62 = vcombine.high %v93_v55, %v97_v56  ;;  %v1843_v1 = vcombine.high %v94_v57, %v98_v58  ;;  %v81_v2 = vld [vmem:[#allocation2] sm:$0xff]  ;;  %v82_v3 = vld [vmem:[#allocation2 + $0x8] sm:$0xff]  ;;  %v1840_v6 = vcombine.low %v93_v55, %v97_v56  ;;  %v1842_v8 = vcombine.low %v94_v57, %v98_v58  ;;  %v131_v29 = vld [vmem:[#allocation5 + $0x130] sm:$0xff] }
  0x46   :  { %526 = vmatpush1.bf16.msra.mxu0 %v1872_v35  ;;  %599 = vmatpush1.bf16.msra.mxu1 %v1874_v36  ;;  %v2408_v13 = vpack.c.bf16 %v82_v3, %v81_v2  ;;  %v128_v31 = vld [vmem:[#allocation5 + $0x118] sm:$0xff]  ;;  %v119_v35 = vld [vmem:[#allocation5 + $0xd0] sm:$0xff]  ;;  %v1886_v36 = vcombine.low %v136_v23, %v140_v24  ;;  %v85_v40 = vld [vmem:[#allocation2 + $0x20] sm:$0xff] }
  0x47   :  { %527 = vmatprep.subr.bf16.mxu0 %v1865_v37  ;;  %600 = vmatprep.subr.bf16.mxu1 %v1867_v38  ;;  %v132_v33 = vld [vmem:[#allocation5 + $0x138] sm:$0xff]  ;;  %v1877_v37 = vcombine.high %v127_v26, %v131_v29  ;;  %v123_v38 = vld [vmem:[#allocation5 + $0xf0] sm:$0xff]  ;;  %v86_v41 = vld [vmem:[#allocation2 + $0x28] sm:$0xff] }
  0x48   :  { %v1879_v39 = vcombine.high %v128_v31, %v132_v33  ;;  %v120_v42 = vld [vmem:[#allocation5 + $0xd8] sm:$0xff]  ;;  %v1878_v47 = vcombine.low %v128_v31, %v132_v33  ;;  %v1869_v48 = vcombine.high %v119_v35, %v123_v38  ;;  %v107_v55 = vld [vmem:[#allocation5 + $0x70] sm:$0xff]  ;;  %v2143_v14 = vld [vmem:[#allocation8 + $0x78] sm:$0xff]  }
  0x49   :  { %v112_v49 = vld [vmem:[#allocation5 + $0x98] sm:$0xff]  ;;  %v99_v2 = vld [vmem:[#allocation5 + $0x30] sm:$0xff]  ;;  %v2144_v16 = vld [vmem:[#allocation8 + $0xf8] sm:$0xff]  }
  0x4a   :  { %528 = vmatpush1.bf16.msra.mxu0 %v1864_v43  ;;  %601 = vmatpush1.bf16.msra.mxu1 %v1866_v44  ;;  %v124_v43 = vld [vmem:[#allocation5 + $0xf8] sm:$0xff]  ;;  %v1876_v44 = vcombine.low %v127_v26, %v131_v29  ;;  %v2146_v19 = vld [vmem:[#allocation8 + $0xb8] sm:$0xff]   ;;  %v2151_v24 = vld [vmem:[#allocation8 + $0x68] sm:$0xff]  }
  0x4b   :  { %529 = vmatprep.subr.bf16.mxu0 %v1857_v45  ;;  %602 = vmatprep.subr.bf16.mxu1 %v1859_v46  ;;  %v111_v45 = vld [vmem:[#allocation5 + $0x90] sm:$0xff]  ;;  %v116_v50 = vld [vmem:[#allocation5 + $0xb8] sm:$0xff]  ;;  %v1870_v56 = vcombine.low %v120_v42, %v124_v43  ;;  %v2157_v29 = vld [vmem:[#allocation8 + $0x20] sm:$0xff]  }
  0x4c   :  { %v115_v46 = vld [vmem:[#allocation5 + $0xb0] sm:$0xff]  ;;  %v104_v58 = vld [vmem:[#allocation5 + $0x58] sm:$0xff]  ;;  %v1863_v60 = vcombine.high %v112_v49, %v116_v50  ;;  %v1862_v3 = vcombine.low %v112_v49, %v116_v50  ;;  %v2159_v31 = vld [vmem:[#allocation8 + $0x58] sm:$0xff]  }
  0x4d   :  { %v1861_v57 = vcombine.high %v111_v45, %v115_v46  ;;  %v1860_v63 = vcombine.low %v111_v45, %v115_v46  ;;  %v96_v5 = vld [vmem:[#allocation5 + $0x18] sm:$0xff]  ;;  %v2153_v26 = vld [vmem:[#allocation8 + $0x28] sm:$0xff]   ;;  %v2160_v33 = vld [vmem:[#allocation8 + $0xd8] sm:$0xff]  }
  0x4e   :  { %530 = vmatpush1.bf16.msra.mxu0 %v1856_v51  ;;  %603 = vmatpush1.bf16.msra.mxu1 %v1858_v52  ;;  %v1871_v51 = vcombine.high %v120_v42, %v124_v43  ;;  %v2420_v52 = vpack.c.bf16 %v86_v41, %v85_v40  ;;  %v2148_v21 = vld [vmem:[#allocation8 + $0xf0] sm:$0xff]   ;;  %v2168_v40 = vld [vmem:[#allocation8 + $0xc8] sm:$0xff]   ;;  %v2172_v43 = vld [vmem:[#allocation8 + $0xc0] sm:$0xff]  }
  0x4f   :  { %531 = vmatprep.subr.bf16.mxu0 %v1849_v53  ;;  %604 = vmatprep.subr.bf16.mxu1 %v1851_v54  ;;  %v1868_v53 = vcombine.low %v119_v35, %v123_v38  ;;  %v103_v54 = vld [vmem:[#allocation5 + $0x50] sm:$0xff]  ;;  %v2149_v22 = vld [vmem:[#allocation8 + $0x30] sm:$0xff]   ;;  %v2162_v35 = vld [vmem:[#allocation8 + $0x98] sm:$0xff]  }
  0x50   :  { %v1853_v4 = vcombine.high %v103_v54, %v107_v55  ;;  %v2150_v23 = vld [vmem:[#allocation8 + $0xb0] sm:$0xff]   ;;  %v2169_v41 = vld [vmem:[#allocation8 + $0x8] sm:$0xff]   ;;  %v2174_v45 = vld [vmem:[#allocation8 + $0x80] sm:$0xff]  }
  0x51   :  { %v2166_v38 = vld [vmem:[#allocation8 + $0x90] sm:$0xff]   ;;  %v2170_v42 = vld [vmem:[#allocation8 + $0x88] sm:$0xff]   ;;  %v2175_v46 = vld [vmem:[#allocation8 + $0x178] sm:$0xff]  }
  0x52   :  { %532 = vmatpush1.bf16.msra.mxu0 %v1848_v59  ;;  %605 = vmatpush1.bf16.msra.mxu1 %v1850_v61  ;;  %v108_v59 = vld [vmem:[#allocation5 + $0x78] sm:$0xff]  ;;  %v87_v61 = vld [vmem:[#allocation2 + $0x30] sm:$0xff] }
  0x53   :  { %533 = vmatprep.subr.bf16.mxu0 %v1841_v62  ;;  %606 = vmatprep.subr.bf16.mxu1 %v1843_v1  ;;  %v88_v62 = vld [vmem:[#allocation2 + $0x38] sm:$0xff]  ;;  %v95_v1 = vld [vmem:[#allocation5 + $0x10] sm:$0xff]  ;;  %v1855_v7 = vcombine.high %v104_v58, %v108_v59  ;;  %v1854_v10 = vcombine.low %v104_v58, %v108_v59 }
  0x56   :  { %534 = vmatpush1.bf16.msra.mxu0 %v1840_v6  ;;  %607 = vmatpush1.bf16.msra.mxu1 %v1842_v8  ;;  %v100_v6 = vld [vmem:[#allocation5 + $0x38] sm:$0xff]  ;;  %v2426_v8 = vpack.c.bf16 %v88_v62, %v87_v61 }
  0x57   :  { %665 = vmatprep.subr.bf16.mxu0 %v1901_v9  ;;  %738 = vmatprep.subr.bf16.mxu1 %v1903_v11  ;;  %v1852_v9 = vcombine.low %v103_v54, %v107_v55  ;;  %v1845_v11 = vcombine.high %v95_v1, %v99_v2  ;;  %v1847_v12 = vcombine.high %v96_v5, %v100_v6 }
  0x59   :  { %552 = vmatmul.mubr.bf16.vlgmr.msra.gmra.mxu0 %v2408_v13  ;;  %625 = vmatmul.mubr.bf16.vlgmr.msra.gmra.mxu1 %v2408_v13 }
  0x5a   :  { %666 = vmatpush1.bf16.msra.mxu0 %v1900_v15  ;;  %739 = vmatpush1.bf16.msra.mxu1 %v1902_v17  ;;  %v1844_v15 = vcombine.low %v95_v1, %v99_v2  ;;  %v1846_v17 = vcombine.low %v96_v5, %v100_v6 }
  0x5b   :  { %667 = vmatprep.subr.bf16.mxu0 %v1893_v18  ;;  %740 = vmatprep.subr.bf16.mxu1 %v1895_v20  ;;  %v2145_v18 = vld [vmem:[#allocation8 + $0x38] sm:$0xff]   ;;  %v2147_v20 = vld [vmem:[#allocation8 + $0x70] sm:$0xff]  }
  0x5c   :  { %561 = vmatprep.mubr.bf16.mxu0 %v2349_v0  ;;  %634 = vmatprep.mubr.bf16.mxu1 %v2349_v0 }
  0x5e   :  { %668 = vmatpush1.bf16.msra.mxu0 %v1892_v25  ;;  %741 = vmatpush1.bf16.msra.mxu1 %v1894_v27  ;;  %v2152_v25 = vld [vmem:[#allocation8 + $0xe8] sm:$0xff]  }
  0x5f   :  { %669 = vmatprep.subr.bf16.mxu0 %v1885_v28  ;;  %742 = vmatprep.subr.bf16.mxu1 %v1887_v30  ;;  %v2154_v27 = vld [vmem:[#allocation8 + $0xa8] sm:$0xff]   ;;  %v2155_v28 = vld [vmem:[#allocation8 + $0x60] sm:$0xff]  }
  0x60   :  { %v2158_v30 = vld [vmem:[#allocation8 + $0xa0] sm:$0xff]  }
  0x61   :  { %562 = vmatmul.mubr.bf16.gmra.mxu0 %v2414_v32  ;;  %635 = vmatmul.mubr.bf16.gmra.mxu1 %v2414_v32 }
  0x62   :  { %670 = vmatpush1.bf16.msra.mxu0 %v1884_v34  ;;  %743 = vmatpush1.bf16.msra.mxu1 %v1886_v36  ;;  %v2161_v34 = vld [vmem:[#allocation8 + $0x18] sm:$0xff]   ;;  %v2164_v36 = vld [vmem:[#allocation8 + $0xd0] sm:$0xff]  }
  0x63   :  { %671 = vmatprep.subr.bf16.mxu0 %v1877_v37  ;;  %744 = vmatprep.subr.bf16.mxu1 %v1879_v39  ;;  %v2165_v37 = vld [vmem:[#allocation8 + $0x10] sm:$0xff]   ;;  %v2167_v39 = vld [vmem:[#allocation8 + $0x48] sm:$0xff]  }
  0x64   :  { %571 = vmatprep.mubr.bf16.mxu0 %v2349_v0  ;;  %644 = vmatprep.mubr.bf16.mxu1 %v2349_v0 }
  0x66   :  { %672 = vmatpush1.bf16.msra.mxu0 %v1876_v44  ;;  %745 = vmatpush1.bf16.msra.mxu1 %v1878_v47  ;;  %v2173_v44 = vld [vmem:[#allocation8] sm:$0xff]   ;;  %v2176_v47 = vld [vmem:[#allocation8 + $0x1f8] sm:$0xff]  }
  0x67   :  { %673 = vmatprep.subr.bf16.mxu0 %v1869_v48  ;;  %746 = vmatprep.subr.bf16.mxu1 %v1871_v51  ;;  %v159_v48 = vlaneseq }
  0x69   :  { %572 = vmatmul.mubr.bf16.gmra.mxu0 %v2420_v52  ;;  %645 = vmatmul.mubr.bf16.gmra.mxu1 %v2420_v52  ;;  %v2446_v49 = vshrl.u32 %v159_v48, 7 }
  0x6a   :  { %674 = vmatpush1.bf16.msra.mxu0 %v1868_v53  ;;  %747 = vmatpush1.bf16.msra.mxu1 %v1870_v56  ;;  %v2451_v53 = vld [vmem:[#allocation7] sm:$0xff] }
  0x6b   :  { %675 = vmatprep.subr.bf16.mxu0 %v1861_v57  ;;  %748 = vmatprep.subr.bf16.mxu1 %v1863_v60  ;;  %v165_v50 = vsub.s32 1, %v2446_v49  ;;  %v161_v51 = vsub.s32 0, %v2446_v49  ;;  %v169_v54 = vsub.s32 2, %v2446_v49 }
  0x6c   :  { %581 = vmatprep.mubr.bf16.mxu0 %v2349_v0  ;;  %654 = vmatprep.mubr.bf16.mxu1 %v2349_v0 }
  0x6d   :  { %v2455_v57 = vrot.slane %v2451_v53, %v165_v50  ;;  %v2458_v58 = vrot.slane %v2451_v53, %v161_v51  ;;  %v2464_v61 = vrot.slane %v2451_v53, %v169_v54  ;;  %v2184_v54 = vld [vmem:[#allocation8 + $0x1e8] sm:$0xff]  }
  0x6e   :  { %676 = vmatpush1.bf16.msra.mxu0 %v1860_v63  ;;  %749 = vmatpush1.bf16.msra.mxu1 %v1862_v3 }
  0x6f   :  { %677 = vmatprep.subr.bf16.mxu0 %v1853_v4  ;;  %750 = vmatprep.subr.bf16.mxu1 %v1855_v7 }
  0x71   :  { %582 = vmatmul.mubr.bf16.gmra.mxu0 %v2426_v8  ;;  %655 = vmatmul.mubr.bf16.gmra.mxu1 %v2426_v8 }
  0x72   :  { %678 = vmatpush1.bf16.msra.mxu0 %v1852_v9  ;;  %751 = vmatpush1.bf16.msra.mxu1 %v1854_v10 }
  0x73   :  { %679 = vmatprep.subr.bf16.mxu0 %v1845_v11  ;;  %752 = vmatprep.subr.bf16.mxu1 %v1847_v12 }
  0x74   :  { %697 = vmatprep.mubr.bf16.mxu0 %v2349_v0  ;;  %770 = vmatprep.mubr.bf16.mxu1 %v2349_v0 }
  0x76   :  { %680 = vmatpush1.bf16.msra.mxu0 %v1844_v15  ;;  %753 = vmatpush1.bf16.msra.mxu1 %v1846_v17 }
  0x77   :  { %1971 = vmatprep.subr.bf16.mxu0 %v2143_v14  ;;  %2011 = vmatprep.subr.bf16.mxu1 %v2144_v16 }
  0x79   :  { %698 = vmatmul.mubr.bf16.vlgmr.msra.gmra.mxu0 %v2408_v13  ;;  %771 = vmatmul.mubr.bf16.vlgmr.msra.gmra.mxu1 %v2408_v13  ;;  %v2156_v13 = vld [vmem:[#allocation8 + $0xe0] sm:$0xff]  }
  0x7a   :  { %707 = vmatprep.mubr.bf16.mxu0 %v2349_v0  ;;  %780 = vmatprep.mubr.bf16.mxu1 %v2349_v0 }
  0x7b   :  { %1972 = vmatpush3.bf16.msra.mxu0 %v2145_v18  ;;  %2012 = vmatpush3.bf16.msra.mxu1 %v2146_v19 }
  0x7c   :  { %1973 = vmatprep.subr.bf16.mxu0 %v2147_v20  ;;  %2013 = vmatprep.subr.bf16.mxu1 %v2148_v21 }
  0x7f   :  { %1974 = vmatpush3.bf16.msra.mxu0 %v2149_v22  ;;  %2014 = vmatpush3.bf16.msra.mxu1 %v2150_v23 }
  0x80   :  { %1975 = vmatprep.subr.bf16.mxu0 %v2151_v24  ;;  %2015 = vmatprep.subr.bf16.mxu1 %v2152_v25 }
  0x81   :  { %708 = vmatmul.mubr.bf16.gmra.mxu0 %v2414_v32  ;;  %781 = vmatmul.mubr.bf16.gmra.mxu1 %v2414_v32  ;;  %v2163_v32 = vld [vmem:[#allocation8 + $0x50] sm:$0xff]  }
  0x82   :  { %717 = vmatprep.mubr.bf16.mxu0 %v2349_v0  ;;  %790 = vmatprep.mubr.bf16.mxu1 %v2349_v0 }
  0x83   :  { %1976 = vmatpush3.bf16.msra.mxu0 %v2153_v26  ;;  %2016 = vmatpush3.bf16.msra.mxu1 %v2154_v27  ;;  %v2177_v26 = vld [vmem:[#allocation8 + $0x138] sm:$0xff]  }
  0x84   :  { %1977 = vmatprep.subr.bf16.mxu0 %v2155_v28  ;;  %2017 = vmatprep.subr.bf16.mxu1 %v2156_v13 }
  0x87   :  { %1978 = vmatpush3.bf16.msra.mxu0 %v2157_v29  ;;  %2018 = vmatpush3.bf16.msra.mxu1 %v2158_v30  ;;  %v2178_v29 = vld [vmem:[#allocation8 + $0x1b8] sm:$0xff]   ;;  %v2179_v30 = vld [vmem:[#allocation8 + $0x170] sm:$0xff]  }
  0x88   :  { %1979 = vmatprep.subr.bf16.mxu0 %v2159_v31  ;;  %2019 = vmatprep.subr.bf16.mxu1 %v2160_v33 }
  0x89   :  { %718 = vmatmul.mubr.bf16.gmra.mxu0 %v2420_v52  ;;  %791 = vmatmul.mubr.bf16.gmra.mxu1 %v2420_v52  ;;  %v173_v52 = vsub.s32 3, %v2446_v49 }
  0x8a   :  { %727 = vmatprep.mubr.bf16.mxu0 %v2349_v0  ;;  %800 = vmatprep.mubr.bf16.mxu1 %v2349_v0  ;;  %v2171_v0 = vld [vmem:[#allocation8 + $0x40] sm:$0xff]  }
  0x8b   :  { %1980 = vmatpush3.bf16.msra.mxu0 %v2161_v34  ;;  %2020 = vmatpush3.bf16.msra.mxu1 %v2162_v35  ;;  %v2461_v60 = vrot.slane %v2451_v53, %v173_v52 }
  0x8c   :  { %1981 = vmatprep.subr.bf16.mxu0 %v2163_v32  ;;  %2021 = vmatprep.subr.bf16.mxu1 %v2164_v36  ;;  %v2180_v32 = vld [vmem:[#allocation8 + $0x1f0] sm:$0xff]  }
  0x8f   :  { %1982 = vmatpush3.bf16.msra.mxu0 %v2165_v37  ;;  %2022 = vmatpush3.bf16.msra.mxu1 %v2166_v38 }
  0x90   :  { %1983 = vmatprep.subr.bf16.mxu0 %v2167_v39  ;;  %2023 = vmatprep.subr.bf16.mxu1 %v2168_v40 }
  0x91   :  { %728 = vmatmul.mubr.bf16.gmra.mxu0 %v2426_v8  ;;  %801 = vmatmul.mubr.bf16.gmra.mxu1 %v2426_v8 }
  0x93   :  { %1984 = vmatpush3.bf16.msra.mxu0 %v2169_v41  ;;  %2024 = vmatpush3.bf16.msra.mxu1 %v2170_v42 }
  0x94   :  { %1985 = vmatprep.subr.bf16.mxu0 %v2171_v0  ;;  %2025 = vmatprep.subr.bf16.mxu1 %v2172_v43  ;;  %v2181_v0 = vld [vmem:[#allocation8 + $0x130] sm:$0xff]  }
  0x97   :  { %1986 = vmatpush3.bf16.msra.mxu0 %v2173_v44  ;;  %2026 = vmatpush3.bf16.msra.mxu1 %v2174_v45 }
  0x98   :  { %2051 = vmatprep.subr.bf16.mxu0 %v2175_v46  ;;  %2091 = vmatprep.subr.bf16.mxu1 %v2176_v47  ;;  %v2182_v46 = vld [vmem:[#allocation8 + $0x1b0] sm:$0xff]   ;;  %v2183_v47 = vld [vmem:[#allocation8 + $0x168] sm:$0xff]  }
 0x119   :  { %v553_v55 = vpop.f32.mrf.mxu0  ;;  %v626_v56 = vpop.f32.mrf.mxu1 }
 0x11a   :  { %v554_v4 = vadd.f32 %v553_v55, %v2458_v58  ;;  %v627_v8 = vadd.f32 %v626_v56, %v2464_v61 }
 0x11b   :  { %v555_v59 = vpop.f32.mrf.mxu0  ;;  %v628_v62 = vpop.f32.mrf.mxu1 }
 0x11c   :  { %v556_v1 = vadd.f32 %v555_v59, %v2455_v57  ;;  %v629_v5 = vadd.f32 %v628_v62, %v2461_v60  ;;  %v811_v19 = vmax.f32 %v554_v4, 0.0  ;;  %v813_v23 = vmax.f32 %v627_v8, 0.0  ;;  %v2187_v8 = vld [vmem:[#allocation8 + $0x160] sm:$0xff]  }
 0x11d   :  { %v557_v63 = vpop.f32.mrf.mxu0  ;;  %v630_v3 = vpop.f32.mrf.mxu1 }
 0x11e   :  { %v558_v2 = vadd.f32 %v557_v63, %v2458_v58  ;;  %v631_v6 = vadd.f32 %v630_v3, %v2464_v61  ;;  %v812_v15 = vmax.f32 %v556_v1, 0.0  ;;  %v814_v20 = vmax.f32 %v629_v5, 0.0  ;;  %v2185_v3 = vld [vmem:[#allocation8 + $0x128] sm:$0xff]  }
 0x11f   :  { %v559_v7 = vpop.f32.mrf.mxu0  ;;  %v632_v10 = vpop.f32.mrf.mxu1 }
 0x120   :  { %v560_v9 = vadd.f32 %v559_v7, %v2455_v57  ;;  %v819_v11 = vmax.f32 %v558_v2, 0.0  ;;  %v633_v12 = vadd.f32 %v632_v10, %v2461_v60  ;;  %v821_v16 = vmax.f32 %v631_v6, 0.0  ;;  %v2186_v7 = vld [vmem:[#allocation8 + $0x1a8] sm:$0xff]  }
 0x121   :  { %v563_v14 = vpop.f32.mrf.mxu0  ;;  %v636_v18 = vpop.f32.mrf.mxu1 }
 0x122   :  { %v820_v17 = vmax.f32 %v560_v9, 0.0  ;;  %v822_v21 = vmax.f32 %v633_v12, 0.0  ;;  %v875_v27 = vpack.c.bf16 %v819_v11, %v811_v19  ;;  %v877_v31 = vpack.c.bf16 %v821_v16, %v813_v23 }
 0x123   :  { %v565_v22 = vpop.f32.mrf.mxu0  ;;  %v638_v25 = vpop.f32.mrf.mxu1  ;;  %v564_v36 = vadd.f32 %v563_v14, %v2458_v58  ;;  %v637_v40 = vadd.f32 %v636_v18, %v2464_v61  ;;  %v2188_v14 = vld [vmem:[#allocation8 + $0x1e0] sm:$0xff]  }
 0x124   :  { %v876_v24 = vpack.c.bf16 %v820_v17, %v812_v15  ;;  %v878_v28 = vpack.c.bf16 %v822_v21, %v814_v20  ;;  %v566_v33 = vadd.f32 %v565_v22, %v2455_v57  ;;  %v639_v37 = vadd.f32 %v638_v25, %v2461_v60  ;;  %v2189_v22 = vld [vmem:[#allocation8 + $0x120] sm:$0xff]  }
 0x125   :  { %v567_v13 = vpop.f32.mrf.mxu0  ;;  %v640_v35 = vpop.f32.mrf.mxu1  ;;  %v827_v55 = vmax.f32 %v564_v36, 0.0  ;;  %v829_v63 = vmax.f32 %v637_v40, 0.0 }
 0x126   :  { %v568_v34 = vadd.f32 %v567_v13, %v2458_v58  ;;  %1458 = vmatprep.mubr.bf16.mxu0 %v876_v24  ;;  %v641_v38 = vadd.f32 %v640_v35, %v2464_v61  ;;  %1523 = vmatprep.mubr.bf16.mxu1 %v878_v28  ;;  %v828_v48 = vmax.f32 %v566_v33, 0.0  ;;  %v830_v56 = vmax.f32 %v639_v37, 0.0 }
 0x127   :  { %v569_v39 = vpop.f32.mrf.mxu0  ;;  %1459 = vmatmul.mubr.bf16.vlgmr.msra.gmra.mxu0 %v875_v27  ;;  %v642_v42 = vpop.f32.mrf.mxu1  ;;  %1524 = vmatmul.mubr.bf16.vlgmr.msra.gmra.mxu1 %v877_v31  ;;  %v2191_v27 = vld [vmem:[#allocation8 + $0x158] sm:$0xff]  }
 0x128   :  { %v570_v41 = vadd.f32 %v569_v39, %v2455_v57  ;;  %2052 = vmatpush3.bf16.msra.mxu0 %v2177_v26  ;;  %v835_v43 = vmax.f32 %v568_v34, 0.0  ;;  %v643_v44 = vadd.f32 %v642_v42, %v2461_v60  ;;  %2092 = vmatpush3.bf16.msra.mxu1 %v2178_v29  ;;  %v837_v50 = vmax.f32 %v641_v38, 0.0  ;;  %v2190_v26 = vld [vmem:[#allocation8 + $0x1a0] sm:$0xff]   ;;  %v2192_v31 = vld [vmem:[#allocation8 + $0x1d8] sm:$0xff]  }
 0x129   :  { %v573_v45 = vpop.f32.mrf.mxu0  ;;  %2053 = vmatprep.subr.bf16.mxu0 %v2179_v30  ;;  %v646_v52 = vpop.f32.mrf.mxu1  ;;  %2093 = vmatprep.subr.bf16.mxu1 %v2180_v32  ;;  %v2193_v39 = vld [vmem:[#allocation8 + $0x118] sm:$0xff]  }
 0x12a   :  { %v836_v51 = vmax.f32 %v570_v41, 0.0  ;;  %v838_v59 = vmax.f32 %v643_v44, 0.0  ;;  %v883_v4 = vpack.c.bf16 %v835_v43, %v827_v55  ;;  %v885_v9 = vpack.c.bf16 %v837_v50, %v829_v63  ;;  %v2195_v44 = vld [vmem:[#allocation8 + $0x150] sm:$0xff]  }
 0x12b   :  { %v575_v62 = vpop.f32.mrf.mxu0  ;;  %v648_v2 = vpop.f32.mrf.mxu1  ;;  %v574_v15 = vadd.f32 %v573_v45, %v2458_v58  ;;  %v647_v19 = vadd.f32 %v646_v52, %v2464_v61  ;;  %v177_v43 = vsub.s32 4, %v2446_v49  ;;  %v181_v50 = vsub.s32 5, %v2446_v49 }
 0x12c   :  { %v884_v1 = vpack.c.bf16 %v836_v51, %v828_v48  ;;  %2054 = vmatpush3.bf16.msra.mxu0 %v2181_v0  ;;  %v886_v5 = vpack.c.bf16 %v838_v59, %v830_v56  ;;  %2094 = vmatpush3.bf16.msra.mxu1 %v2182_v46  ;;  %v576_v10 = vadd.f32 %v575_v62, %v2455_v57  ;;  %v2194_v0 = vld [vmem:[#allocation8 + $0x198] sm:$0xff]   ;;  %v2196_v51 = vld [vmem:[#allocation8 + $0x1d0] sm:$0xff]   ;;  %v189_v59 = vsub.s32 7, %v2446_v49 }
 0x12d   :  { %v577_v6 = vpop.f32.mrf.mxu0  ;;  %2055 = vmatprep.subr.bf16.mxu0 %v2183_v47  ;;  %v650_v12 = vpop.f32.mrf.mxu1  ;;  %2095 = vmatprep.subr.bf16.mxu1 %v2184_v54  ;;  %v649_v16 = vadd.f32 %v648_v2, %v2461_v60  ;;  %v843_v33 = vmax.f32 %v574_v15, 0.0  ;;  %v845_v36 = vmax.f32 %v647_v19, 0.0  ;;  %v185_v2 = vsub.s32 6, %v2446_v49  ;;  %v2200_v49 = vld [vmem:[#allocation8 + $0x1c8] sm:$0xff]  }
 0x12e   :  { %v578_v11 = vadd.f32 %v577_v6, %v2458_v58  ;;  %1466 = vmatprep.mubr.bf16.mxu0 %v884_v1  ;;  %v651_v17 = vadd.f32 %v650_v12, %v2464_v61  ;;  %1531 = vmatprep.mubr.bf16.mxu1 %v886_v5  ;;  %v844_v28 = vmax.f32 %v576_v10, 0.0  ;;  %v2503_v5 = vrot.slane %v2451_v53, %v177_v43 }
 0x12f   :  { %v579_v18 = vpop.f32.mrf.mxu0  ;;  %1467 = vmatmul.mubr.bf16.gmra.mxu0 %v883_v4  ;;  %v652_v21 = vpop.f32.mrf.mxu1  ;;  %1532 = vmatmul.mubr.bf16.gmra.mxu1 %v885_v9  ;;  %v846_v34 = vmax.f32 %v649_v16, 0.0  ;;  %v2509_v16 = vrot.slane %v2451_v53, %v189_v59  ;;  %v2512_v19 = vrot.slane %v2451_v53, %v185_v2 }
 0x130   :  { %v580_v20 = vadd.f32 %v579_v18, %v2455_v57  ;;  %2056 = vmatpush3.bf16.msra.mxu0 %v2185_v3  ;;  %v851_v23 = vmax.f32 %v578_v11, 0.0  ;;  %v653_v24 = vadd.f32 %v652_v21, %v2461_v60  ;;  %2096 = vmatpush3.bf16.msra.mxu1 %v2186_v7  ;;  %v853_v13 = vmax.f32 %v651_v17, 0.0  ;;  %v2197_v3 = vld [vmem:[#allocation8 + $0x110] sm:$0xff]   ;;  %v2201_v21 = vld [vmem:[#allocation8 + $0x108] sm:$0xff]  }
 0x131   :  { %v583_v25 = vpop.f32.mrf.mxu0  ;;  %2057 = vmatprep.subr.bf16.mxu0 %v2187_v8  ;;  %v656_v30 = vpop.f32.mrf.mxu1  ;;  %2097 = vmatprep.subr.bf16.mxu1 %v2188_v14  ;;  %v2198_v7 = vld [vmem:[#allocation8 + $0x190] sm:$0xff]   ;;  %v2199_v8 = vld [vmem:[#allocation8 + $0x148] sm:$0xff]   ;;  %v2506_v11 = vrot.slane %v2451_v53, %v181_v50  ;;  %v2204_v53 = vld [vmem:[#allocation8 + $0x1c0] sm:$0xff]  }
 0x132   :  { %v852_v29 = vmax.f32 %v580_v20, 0.0  ;;  %v854_v35 = vmax.f32 %v653_v24, 0.0  ;;  %v891_v40 = vpack.c.bf16 %v851_v23, %v843_v33  ;;  %v893_v45 = vpack.c.bf16 %v853_v13, %v845_v36 }
 0x133   :  { %v585_v32 = vpop.f32.mrf.mxu0  ;;  %v658_v38 = vpop.f32.mrf.mxu1  ;;  %v584_v52 = vadd.f32 %v583_v25, %v2458_v58  ;;  %v657_v62 = vadd.f32 %v656_v30, %v2464_v61  ;;  %v2202_v25 = vld [vmem:[#allocation8 + $0x188] sm:$0xff]  }
 0x134   :  { %v892_v37 = vpack.c.bf16 %v852_v29, %v844_v28  ;;  %2058 = vmatpush3.bf16.msra.mxu0 %v2189_v22  ;;  %v894_v41 = vpack.c.bf16 %v854_v35, %v846_v34  ;;  %2098 = vmatpush3.bf16.msra.mxu1 %v2190_v26  ;;  %v586_v46 = vadd.f32 %v585_v32, %v2455_v57  ;;  %v2203_v26 = vld [vmem:[#allocation8 + $0x140] sm:$0xff]  }
 0x135   :  { %v587_v42 = vpop.f32.mrf.mxu0  ;;  %2059 = vmatprep.subr.bf16.mxu0 %v2191_v27  ;;  %v660_v48 = vpop.f32.mrf.mxu1  ;;  %2099 = vmatprep.subr.bf16.mxu1 %v2192_v31  ;;  %v659_v54 = vadd.f32 %v658_v38, %v2461_v60  ;;  %v859_v12 = vmax.f32 %v584_v52, 0.0  ;;  %v861_v17 = vmax.f32 %v657_v62, 0.0 }
 0x136   :  { %v588_v47 = vadd.f32 %v587_v42, %v2458_v58  ;;  %1474 = vmatprep.mubr.bf16.mxu0 %v892_v37  ;;  %v661_v55 = vadd.f32 %v660_v48, %v2464_v61  ;;  %1539 = vmatprep.mubr.bf16.mxu1 %v894_v41  ;;  %v860_v61 = vmax.f32 %v586_v46, 0.0  ;;  %v2205_v37 = vld [vmem:[#allocation8 + $0x100] sm:$0xff]  }
 0x137   :  { %v589_v56 = vpop.f32.mrf.mxu0  ;;  %1475 = vmatmul.mubr.bf16.gmra.mxu0 %v891_v40  ;;  %v662_v1 = vpop.f32.mrf.mxu1  ;;  %1540 = vmatmul.mubr.bf16.gmra.mxu1 %v893_v45  ;;  %v862_v14 = vmax.f32 %v659_v54, 0.0  ;;  %v2206_v41 = vld [vmem:[#allocation8 + $0x180] sm:$0xff]  }
 0x138   :  { %v590_v63 = vadd.f32 %v589_v56, %v2455_v57  ;;  %2060 = vmatpush3.bf16.msra.mxu0 %v2193_v39  ;;  %v867_v58 = vmax.f32 %v588_v47, 0.0  ;;  %v663_v4 = vadd.f32 %v662_v1, %v2461_v60  ;;  %2100 = vmatpush3.bf16.msra.mxu1 %v2194_v0  ;;  %v869_v9 = vmax.f32 %v661_v55, 0.0 }
 0x139   :  { %v699_v6 = vpop.f32.mrf.mxu0  ;;  %2061 = vmatprep.subr.bf16.mxu0 %v2195_v44  ;;  %v772_v10 = vpop.f32.mrf.mxu1  ;;  %2101 = vmatprep.subr.bf16.mxu1 %v2196_v51 }
 0x13a   :  { %v868_v57 = vmax.f32 %v590_v63, 0.0  ;;  %v870_v60 = vmax.f32 %v663_v4, 0.0  ;;  %v899_v22 = vpack.c.bf16 %v867_v58, %v859_v12  ;;  %v901_v27 = vpack.c.bf16 %v869_v9, %v861_v17 }
 0x13b   :  { %v701_v15 = vpop.f32.mrf.mxu0  ;;  %v774_v20 = vpop.f32.mrf.mxu1  ;;  %v700_v30 = vadd.f32 %v699_v6, %v2503_v5  ;;  %v773_v35 = vadd.f32 %v772_v10, %v2512_v19 }
 0x13c   :  { %v900_v18 = vpack.c.bf16 %v868_v57, %v860_v61  ;;  %2062 = vmatpush3.bf16.msra.mxu0 %v2197_v3  ;;  %v902_v23 = vpack.c.bf16 %v870_v60, %v862_v14  ;;  %2102 = vmatpush3.bf16.msra.mxu1 %v2198_v7  ;;  %v702_v28 = vadd.f32 %v701_v15, %v2506_v11 }
 0x13d   :  { %v703_v24 = vpop.f32.mrf.mxu0  ;;  %2063 = vmatprep.subr.bf16.mxu0 %v2199_v8  ;;  %v776_v29 = vpop.f32.mrf.mxu1  ;;  %2103 = vmatprep.subr.bf16.mxu1 %v2200_v49  ;;  %v775_v31 = vadd.f32 %v774_v20, %v2509_v16  ;;  %v815_v45 = vmax.f32 %v700_v30, 0.0  ;;  %v817_v50 = vmax.f32 %v773_v35, 0.0 }
 0x13e   :  { %v704_v13 = vadd.f32 %v703_v24, %v2503_v5  ;;  %1482 = vmatprep.mubr.bf16.mxu0 %v900_v18  ;;  %v777_v33 = vadd.f32 %v776_v29, %v2512_v19  ;;  %1547 = vmatprep.mubr.bf16.mxu1 %v902_v23  ;;  %v816_v42 = vmax.f32 %v702_v28, 0.0 }
 0x13f   :  { %v705_v34 = vpop.f32.mrf.mxu0  ;;  %1483 = vmatmul.mubr.bf16.gmra.mxu0 %v899_v22  ;;  %v778_v36 = vpop.f32.mrf.mxu1  ;;  %1548 = vmatmul.mubr.bf16.gmra.mxu1 %v901_v27  ;;  %v818_v46 = vmax.f32 %v775_v31, 0.0 }
 0x140   :  { %v706_v32 = vadd.f32 %v705_v34, %v2506_v11  ;;  %2064 = vmatpush3.bf16.msra.mxu0 %v2201_v21  ;;  %v823_v38 = vmax.f32 %v704_v13, 0.0  ;;  %v779_v39 = vadd.f32 %v778_v36, %v2509_v16  ;;  %2104 = vmatpush3.bf16.msra.mxu1 %v2202_v25  ;;  %v825_v0 = vmax.f32 %v777_v33, 0.0 }
 0x141   :  { %v709_v40 = vpop.f32.mrf.mxu0  ;;  %2065 = vmatprep.subr.bf16.mxu0 %v2203_v26  ;;  %v782_v44 = vpop.f32.mrf.mxu1  ;;  %2105 = vmatprep.subr.bf16.mxu1 %v2204_v53 }
 0x142   :  { %v824_v43 = vmax.f32 %v706_v32, 0.0  ;;  %v826_v47 = vmax.f32 %v779_v39, 0.0  ;;  %v879_v54 = vpack.c.bf16 %v823_v38, %v815_v45  ;;  %v881_v59 = vpack.c.bf16 %v825_v0, %v817_v50 }
 0x143   :  { %v711_v48 = vpop.f32.mrf.mxu0  ;;  %v784_v52 = vpop.f32.mrf.mxu1  ;;  %v710_v2 = vadd.f32 %v709_v40, %v2503_v5  ;;  %v783_v6 = vadd.f32 %v782_v44, %v2512_v19 }
 0x144   :  { %v880_v51 = vpack.c.bf16 %v824_v43, %v816_v42  ;;  %2066 = vmatpush3.bf16.msra.mxu0 %v2205_v37  ;;  %v882_v55 = vpack.c.bf16 %v826_v47, %v818_v46  ;;  %2106 = vmatpush3.bf16.msra.mxu1 %v2206_v41  ;;  %v712_v62 = vadd.f32 %v711_v48, %v2506_v11 }
 0x145   :  { %v713_v56 = vpop.f32.mrf.mxu0  ;;  %v786_v1 = vpop.f32.mrf.mxu1  ;;  %v785_v3 = vadd.f32 %v784_v52, %v2509_v16  ;;  %v831_v60 = vmax.f32 %v710_v2, 0.0  ;;  %v833_v20 = vmax.f32 %v783_v6, 0.0 }
 0x146   :  { %v714_v63 = vadd.f32 %v713_v56, %v2503_v5  ;;  %1588 = vmatprep.mubr.bf16.mxu0 %v880_v51  ;;  %v787_v58 = vadd.f32 %v786_v1, %v2512_v19  ;;  %1653 = vmatprep.mubr.bf16.mxu1 %v882_v55  ;;  %v832_v10 = vmax.f32 %v712_v62, 0.0 }
 0x147   :  { %v715_v4 = vpop.f32.mrf.mxu0  ;;  %1589 = vmatmul.mubr.bf16.vlgmr.msra.gmra.mxu0 %v879_v54  ;;  %v788_v8 = vpop.f32.mrf.mxu1  ;;  %1654 = vmatmul.mubr.bf16.vlgmr.msra.gmra.mxu1 %v881_v59  ;;  %v834_v15 = vmax.f32 %v785_v3, 0.0 }
 0x148   :  { %v716_v7 = vadd.f32 %v715_v4, %v2506_v11  ;;  %v839_v61 = vmax.f32 %v714_v63, 0.0  ;;  %v789_v9 = vadd.f32 %v788_v8, %v2509_v16  ;;  %v841_v49 = vmax.f32 %v787_v58, 0.0 }
 0x149   :  { %v719_v57 = vpop.f32.mrf.mxu0  ;;  %v792_v14 = vpop.f32.mrf.mxu1 }
 0x14a   :  { %v840_v12 = vmax.f32 %v716_v7, 0.0  ;;  %v842_v17 = vmax.f32 %v789_v9, 0.0  ;;  %v887_v23 = vpack.c.bf16 %v839_v61, %v831_v60  ;;  %v889_v26 = vpack.c.bf16 %v841_v49, %v833_v20 }
 0x14b   :  { %v721_v18 = vpop.f32.mrf.mxu0  ;;  %v794_v22 = vpop.f32.mrf.mxu1  ;;  %v720_v29 = vadd.f32 %v719_v57, %v2503_v5  ;;  %v793_v33 = vadd.f32 %v792_v14, %v2512_v19 }
 0x14c   :  { %v888_v21 = vpack.c.bf16 %v840_v12, %v832_v10  ;;  %v890_v24 = vpack.c.bf16 %v842_v17, %v834_v15  ;;  %v722_v27 = vadd.f32 %v721_v18, %v2506_v11  ;;  %v795_v53 = vadd.f32 %v794_v22, %v2509_v16 }
 0x14d   :  { %v723_v25 = vpop.f32.mrf.mxu0  ;;  %v796_v13 = vpop.f32.mrf.mxu1  ;;  %v847_v42 = vmax.f32 %v720_v29, 0.0  ;;  %v849_v45 = vmax.f32 %v793_v33, 0.0 }
 0x14e   :  { %v724_v28 = vadd.f32 %v723_v25, %v2503_v5  ;;  %1596 = vmatprep.mubr.bf16.mxu0 %v888_v21  ;;  %v797_v30 = vadd.f32 %v796_v13, %v2512_v19  ;;  %1661 = vmatprep.mubr.bf16.mxu1 %v890_v24  ;;  %v848_v38 = vmax.f32 %v722_v27, 0.0  ;;  %v850_v0 = vmax.f32 %v795_v53, 0.0 }
 0x14f   :  { %v725_v31 = vpop.f32.mrf.mxu0  ;;  %1597 = vmatmul.mubr.bf16.gmra.mxu0 %v887_v23  ;;  %v798_v35 = vpop.f32.mrf.mxu1  ;;  %1662 = vmatmul.mubr.bf16.gmra.mxu1 %v889_v26 }
 0x150   :  { %v726_v34 = vadd.f32 %v725_v31, %v2506_v11  ;;  %v855_v32 = vmax.f32 %v724_v28, 0.0  ;;  %v799_v36 = vadd.f32 %v798_v35, %v2509_v16  ;;  %v857_v39 = vmax.f32 %v797_v30, 0.0 }
 0x151   :  { %v729_v37 = vpop.f32.mrf.mxu0  ;;  %v802_v41 = vpop.f32.mrf.mxu1 }
 0x152   :  { %v856_v40 = vmax.f32 %v726_v34, 0.0  ;;  %v858_v43 = vmax.f32 %v799_v36, 0.0  ;;  %v895_v48 = vpack.c.bf16 %v855_v32, %v847_v42  ;;  %v897_v52 = vpack.c.bf16 %v857_v39, %v849_v45 }
 0x153   :  { %v731_v44 = vpop.f32.mrf.mxu0  ;;  %v804_v47 = vpop.f32.mrf.mxu1  ;;  %v730_v59 = vadd.f32 %v729_v37, %v2503_v5  ;;  %v803_v2 = vadd.f32 %v802_v41, %v2512_v19  ;;  %v2565_v41 = vld [vmem:[%s2658_s4] ss:$0 sm:$0xff] }
 0x154   :  { %v896_v46 = vpack.c.bf16 %v856_v40, %v848_v38  ;;  %v898_v50 = vpack.c.bf16 %v858_v43, %v850_v0  ;;  %v732_v54 = vadd.f32 %v731_v44, %v2506_v11  ;;  %v805_v62 = vadd.f32 %v804_v47, %v2509_v16 }
 0x155   :  { %v733_v51 = vpop.f32.mrf.mxu0  ;;  %v806_v56 = vpop.f32.mrf.mxu1  ;;  %v865_v10 = vmax.f32 %v803_v2, 0.0 }
 0x156   :  { %v734_v55 = vadd.f32 %v733_v51, %v2503_v5  ;;  %1604 = vmatprep.mubr.bf16.mxu0 %v896_v46  ;;  %v807_v63 = vadd.f32 %v806_v56, %v2512_v19  ;;  %1669 = vmatprep.mubr.bf16.mxu1 %v898_v50  ;;  %v864_v7 = vmax.f32 %v732_v54, 0.0  ;;  %v863_v5 = vmax.f32 %v730_v59, 0.0 }
 0x157   :  { %v735_v1 = vpop.f32.mrf.mxu0  ;;  %1605 = vmatmul.mubr.bf16.gmra.mxu0 %v895_v48  ;;  %v808_v58 = vpop.f32.mrf.mxu1  ;;  %1670 = vmatmul.mubr.bf16.gmra.mxu1 %v897_v52  ;;  %v866_v9 = vmax.f32 %v805_v62, 0.0 }
 0x158   :  { %v736_v3 = vadd.f32 %v735_v1, %v2506_v11  ;;  %v871_v4 = vmax.f32 %v734_v55, 0.0  ;;  %v809_v6 = vadd.f32 %v808_v58, %v2509_v16  ;;  %v873_v8 = vmax.f32 %v807_v63, 0.0 }
 0x15a   :  { %v872_v61 = vmax.f32 %v736_v3, 0.0  ;;  %v874_v57 = vmax.f32 %v809_v6, 0.0  ;;  %v903_v12 = vpack.c.bf16 %v871_v4, %v863_v5  ;;  %v905_v60 = vpack.c.bf16 %v873_v8, %v865_v10 }
 0x15c   :  { %v904_v49 = vpack.c.bf16 %v872_v61, %v864_v7  ;;  %v906_v14 = vpack.c.bf16 %v874_v57, %v866_v9 }
 0x15e   :  { %1612 = vmatprep.mubr.bf16.mxu0 %v904_v49  ;;  %1677 = vmatprep.mubr.bf16.mxu1 %v906_v14  ;;  %v2223_v14 = vld [vmem:[#allocation2] sm:$0xff] }
 0x15f   :  { %1613 = vmatmul.mubr.bf16.gmra.mxu0 %v903_v12  ;;  %1678 = vmatmul.mubr.bf16.gmra.mxu1 %v905_v60 }
 0x1e7   :  { %v1987_v11 = vpop.f32.mrf.mxu0  ;;  %v2027_v19 = vpop.f32.mrf.mxu1 }
 0x1e9   :  { %v1988_v15 = vpop.f32.mrf.mxu0  ;;  %v2028_v17 = vpop.f32.mrf.mxu1 }
 0x1ea   :  { %v1989_v39 = vadd.f32 %v1988_v15, %v1987_v11  ;;  %v2029_v48 = vadd.f32 %v2028_v17, %v2027_v19 }
 0x1eb   :  { %v1990_v16 = vpop.f32.mrf.mxu0  ;;  %v2030_v18 = vpop.f32.mrf.mxu1 }
 0x1ec   :  { %v1461_v44 = vadd.f32 %v1989_v39, %v2565_v41 }
 0x1ed   :  { %v1991_v20 = vpop.f32.mrf.mxu0  ;;  %v2031_v21 = vpop.f32.mrf.mxu1 }
 0x1ee   :  { %v1992_v45 = vadd.f32 %v1991_v20, %v1990_v16  ;;  %v1526_v54 = vadd.f32 %v2029_v48, %v1461_v44  ;;  %v2032_v63 = vadd.f32 %v2031_v21, %v2030_v18 }
 0x1ef   :  { %v1993_v22 = vpop.f32.mrf.mxu0  ;;  %v2033_v23 = vpop.f32.mrf.mxu1 }
 0x1f0   :  { %v1464_v55 = vadd.f32 %v1992_v45, %v2565_v41 }
 0x1f1   :  { %v1994_v24 = vpop.f32.mrf.mxu0  ;;  %v2034_v25 = vpop.f32.mrf.mxu1 }
 0x1f2   :  { %v1995_v51 = vadd.f32 %v1994_v24, %v1993_v22  ;;  %v1529_v6 = vadd.f32 %v2032_v63, %v1464_v55  ;;  %v2035_v9 = vadd.f32 %v2034_v25, %v2033_v23 }
 0x1f3   :  { %v1996_v26 = vpop.f32.mrf.mxu0  ;;  %v2036_v27 = vpop.f32.mrf.mxu1 }
 0x1f4   :  { %v1469_v58 = vadd.f32 %v1995_v51, %v2565_v41 }
 0x1f5   :  { %v1997_v28 = vpop.f32.mrf.mxu0  ;;  %v2037_v13 = vpop.f32.mrf.mxu1 }
 0x1f6   :  { %v1998_v7 = vadd.f32 %v1997_v28, %v1996_v26  ;;  %v1534_v11 = vadd.f32 %v2035_v9, %v1469_v58  ;;  %v2038_v22 = vadd.f32 %v2037_v13, %v2036_v27  ;;  %v2224_v26 = vld [vmem:[#allocation2 + $0x8] sm:$0xff] }
 0x1f7   :  { %v1999_v29 = vpop.f32.mrf.mxu0  ;;  %v2546_v53 = vpop.f32.mrf.mxu1 }
 0x1f8   :  { %v1472_v15 = vadd.f32 %v1998_v7, %v2565_v41 }
 0x1f9   :  { %v2000_v30 = vpop.f32.mrf.mxu0  ;;  %v2548_v31 = vpop.f32.mrf.mxu1 }
 0x1fa   :  { %v2001_v17 = vadd.f32 %v2000_v30, %v1999_v29  ;;  %v1537_v45 = vadd.f32 %v2038_v22, %v1472_v15  ;;  %v2041_v27 = vadd.f32 %v2548_v31, %v2546_v53 }
 0x1fb   :  { %v2002_v33 = vpop.f32.mrf.mxu0  ;;  %v2550_v34 = vpop.f32.mrf.mxu1 }
 0x1fd   :  { %v2003_v35 = vpop.f32.mrf.mxu0  ;;  %v2552_v32 = vpop.f32.mrf.mxu1 }
 0x1fe   :  { %v2004_v39 = vadd.f32 %v2003_v35, %v2002_v33  ;;  %v2044_v53 = vadd.f32 %v2552_v32, %v2550_v34 }
 0x1ff   :  { %v2554_v36 = vpop.f32.mrf.mxu0  ;;  %v2556_v37 = vpop.f32.mrf.mxu1 }
 0x200   :  { %v1480_v33 = vadd.f32 %v2004_v39, %v2565_v41 }
 0x201   :  { %v2558_v38 = vpop.f32.mrf.mxu0  ;;  %v2560_v40 = vpop.f32.mrf.mxu1 }
 0x202   :  { %v1545_v7 = vadd.f32 %v2044_v53, %v1480_v33  ;;  %v2047_v34 = vadd.f32 %v2560_v40, %v2556_v37  ;;  %v2228_v40 = vld [vmem:[#allocation2 + $0x28] sm:$0xff] }
 0x203   :  { %v2567_v42 = vpop.f32.mrf.mxu0  ;;  %v2569_v0 = vpop.f32.mrf.mxu1 }
 0x205   :  { %v2571_v43 = vpop.f32.mrf.mxu0  ;;  %v2574_v46 = vpop.f32.mrf.mxu1 }
 0x207   :  { %v2067_v47 = vpop.f32.mrf.mxu0  ;;  %v2107_v50 = vpop.f32.mrf.mxu1 }
 0x209   :  { %v2068_v52 = vpop.f32.mrf.mxu0  ;;  %v2108_v59 = vpop.f32.mrf.mxu1 }
 0x20a   :  { %v2069_v56 = vadd.f32 %v2068_v52, %v2067_v47  ;;  %v2109_v2 = vadd.f32 %v2108_v59, %v2107_v50  ;;  %v1477_v47 = vadd.f32 %v2001_v17, %v2565_v41  ;;  %v2007_v59 = vadd.f32 %v2558_v38, %v2554_v36 }
 0x20b   :  { %v2070_v62 = vpop.f32.mrf.mxu0  ;;  %v2110_v3 = vpop.f32.mrf.mxu1  ;;  %v2010_v36 = vadd.f32 %v2571_v43, %v2567_v42 }
 0x20c   :  { %v1591_v1 = vadd.f32 %v2069_v56, %v1526_v54  ;;  %v2225_v54 = vld [vmem:[#allocation2 + $0x10] sm:$0xff]  ;;  %v1542_v56 = vadd.f32 %v2041_v27, %v1477_v47 }
 0x20d   :  { %v2071_v4 = vpop.f32.mrf.mxu0  ;;  %v2111_v5 = vpop.f32.mrf.mxu1  ;;  %v1488_v15 = vadd.f32 %v2010_v36, %v2565_v41 }
 0x20e   :  { %v1656_v8 = vadd.f32 %v2109_v2, %v1591_v1  ;;  %v2072_v61 = vadd.f32 %v2071_v4, %v2070_v62  ;;  %v2112_v49 = vadd.f32 %v2111_v5, %v2110_v3  ;;  %v2226_v4 = vld [vmem:[#allocation2 + $0x18] sm:$0xff] }
 0x20f   :  { %v2073_v57 = vpop.f32.mrf.mxu0  ;;  %v2113_v12 = vpop.f32.mrf.mxu1 }
 0x210   :  { %v1594_v10 = vadd.f32 %v2072_v61, %v1529_v6  ;;  %v2578_v60 = vadd.f32 %v2223_v14, %v1656_v8  ;;  %v1485_v61 = vadd.f32 %v2007_v59, %v2565_v41 }
 0x211   :  { %v2074_v19 = vpop.f32.mrf.mxu0  ;;  %v2114_v20 = vpop.f32.mrf.mxu1 }
 0x212   :  { %v1659_v16 = vadd.f32 %v2112_v49, %v1594_v10  ;;  %v2075_v18 = vadd.f32 %v2074_v19, %v2073_v57  ;;  %1694 = vadd.xlane.f32.xlu0 %v2578_v60  ;;  %v2115_v24 = vadd.f32 %v2114_v20, %v2113_v12  ;;  %v2227_v12 = vld [vmem:[#allocation2 + $0x20] sm:$0xff]  ;;  %v1550_v19 = vadd.f32 %v2047_v34, %v1485_v61 }
 0x213   :  { %v2076_v21 = vpop.f32.mrf.mxu0  ;;  %v2116_v25 = vpop.f32.mrf.mxu1 }
 0x214   :  { %v1599_v23 = vadd.f32 %v2075_v18, %v1534_v11  ;;  %v2582_v28 = vadd.f32 %v2224_v26, %v1659_v16  ;;  %v2050_v18 = vadd.f32 %v2574_v46, %v2569_v0 }
 0x215   :  { %v2077_v44 = vpop.f32.mrf.mxu0  ;;  %v2117_v30 = vpop.f32.mrf.mxu1 }
 0x216   :  { %v1664_v48 = vadd.f32 %v2115_v24, %v1599_v23  ;;  %v2078_v29 = vadd.f32 %v2077_v44, %v2076_v21  ;;  %1696 = vadd.xlane.f32.xlu0 %v2582_v28  ;;  %v2118_v51 = vadd.f32 %v2117_v30, %v2116_v25  ;;  %v1553_v24 = vadd.f32 %v2050_v18, %v1488_v15 }
 0x217   :  { %v2079_v50 = vpop.f32.mrf.mxu0  ;;  %v2119_v52 = vpop.f32.mrf.mxu1 }
 0x218   :  { %v1602_v13 = vadd.f32 %v2078_v29, %v1537_v45  ;;  %v2588_v55 = vadd.f32 %v2225_v54, %v1664_v48  ;;  %v2229_v45 = vld [vmem:[#allocation2 + $0x30] sm:$0xff]  ;;  %v2230_v29 = vld [vmem:[#allocation2 + $0x38] sm:$0xff] }
 0x219   :  { %v2080_v35 = vpop.f32.mrf.mxu0  ;;  %v2120_v1 = vpop.f32.mrf.mxu1 }
 0x21a   :  { %v1667_v62 = vadd.f32 %v2118_v51, %v1602_v13  ;;  %v2081_v63 = vadd.f32 %v2080_v35, %v2079_v50  ;;  %1698 = vadd.xlane.f32.xlu1 %v2588_v55  ;;  %v2121_v3 = vadd.f32 %v2120_v1, %v2119_v52 }
 0x21b   :  { %v2082_v31 = vpop.f32.mrf.mxu0  ;;  %v2122_v58 = vpop.f32.mrf.mxu1 }
 0x21c   :  { %v1607_v2 = vadd.f32 %v2081_v63, %v1542_v56  ;;  %v1689_v6 = vadd.f32 %v2226_v4, %v1667_v62 }
 0x21d   :  { %v2083_v8 = vpop.f32.mrf.mxu0  ;;  %v2123_v9 = vpop.f32.mrf.mxu1 }
 0x21e   :  { %v1672_v38 = vadd.f32 %v2121_v3, %v1607_v2  ;;  %v2084_v5 = vadd.f32 %v2083_v8, %v2082_v31  ;;  %1700 = vadd.xlane.f32.xlu1 %v1689_v6  ;;  %v2124_v10 = vadd.f32 %v2123_v9, %v2122_v58 }
 0x21f   :  { %v2085_v57 = vpop.f32.mrf.mxu0  ;;  %v2125_v49 = vpop.f32.mrf.mxu1 }
 0x220   :  { %v1610_v32 = vadd.f32 %v2084_v5, %v1545_v7  ;;  %v1690_v14 = vadd.f32 %v2227_v12, %v1672_v38 }
 0x221   :  { %v2086_v11 = vpop.f32.mrf.mxu0  ;;  %v2126_v42 = vpop.f32.mrf.mxu1 }
 0x222   :  { %v1675_v17 = vadd.f32 %v2124_v10, %v1610_v32  ;;  %v2087_v16 = vadd.f32 %v2086_v11, %v2085_v57  ;;  %1702 = vadd.xlane.f32.xlu0 %v1690_v14  ;;  %v2127_v21 = vadd.f32 %v2126_v42, %v2125_v49 }
 0x223   :  { %v2088_v43 = vpop.f32.mrf.mxu0  ;;  %v2128_v37 = vpop.f32.mrf.mxu1 }
 0x224   :  { %v1615_v20 = vadd.f32 %v2087_v16, %v1550_v19  ;;  %v1691_v22 = vadd.f32 %v2228_v40, %v1675_v17  ;;  %v1970_v40 = vld [vmem:[%s2660_s6] ss:$0 sm:$0xff] }
 0x225   :  { %v2089_v23 = vpop.f32.mrf.mxu0  ;;  %v2129_v39 = vpop.f32.mrf.mxu1 }
 0x226   :  { %v1680_v25 = vadd.f32 %v2127_v21, %v1615_v20  ;;  %v2090_v26 = vadd.f32 %v2089_v23, %v2088_v43  ;;  %1704 = vadd.xlane.f32.xlu1 %v1691_v22  ;;  %v2130_v44 = vadd.f32 %v2129_v39, %v2128_v37  ;;  %v1969_v20 = vld [vmem:[%s2659_s5] ss:$0 sm:$0xff]  ;;  %s2350_s5 = smov [#allocation10]  }
 0x227   :  { %s1826_s6 = sshll.u32 %s2350_s5, 4  ;;  %s1827_s6 = int_to_ptr.vmem [resolvable:$true] %s1826_s6 }
 0x228   :  { %v1618_v41 = vadd.f32 %v2090_v26, %v1553_v24  ;;  %v1692_v47 = vadd.f32 %v2229_v45, %v1680_v25  ;;  %s2311_s28 = scalar_lea.vmem %s1827_s6, 1024  ;;  %p2316_p7 = scmp.lt.s32.totalorder %s1827_s6, %s1827_s6 }
 0x229   :  { %p2312_p6 = scmp.ne.s32.totalorder %s1827_s6, %s2311_s28  ;;  %p2317_p8 = scmp.lt.s32.totalorder %s2311_s28, %s2311_s28 }
 0x22a   :  { %v1683_v48 = vadd.f32 %v2130_v44, %v1618_v41  ;;  %1706 = vadd.xlane.f32.xlu0 %v1692_v47 }
 0x22b   :  { %p2318_p9 = por %p2317_p8, %p2316_p7 }
 0x22c   :  { %v1693_v30 = vadd.f32 %v2230_v29, %v1683_v48 }
 0x22d   :  { %p2319_p10 = pnand %p2318_p9, %p2312_p6 }
 0x22e   :  { %1708 = vadd.xlane.f32.xlu1 %v1693_v30 }
 0x29b   :  { %v1695_v0 = vpop.xlane.xlu0 %1694 }
 0x29c   :  { %v1711_v46 = vmul.f32 0.0078125, %v1695_v0 }
 0x29e   :  { %v1719_v50 = vsub.f32 %v2578_v60, %v1711_v46 }
 0x29f   :  { %v1697_v27 = vpop.xlane.xlu0 %1696 }
 0x2a0   :  { %v1712_v13 = vmul.f32 0.0078125, %v1697_v27  ;;  %v1727_v51 = vmul.f32 %v1719_v50, %v1719_v50 }
 0x2a2   :  { %v2606_v52 = vsub.f32 %v2582_v28, %v1712_v13  ;;  %1735 = vadd.xlane.f32.xlu0 %v1727_v51 }
 0x2a3   :  { %v1699_v54 = vpop.xlane.xlu1 %1698 }
 0x2a4   :  { %v1713_v33 = vmul.f32 0.0078125, %v1699_v54  ;;  %v1728_v35 = vmul.f32 %v2606_v52, %v2606_v52 }
 0x2a6   :  { %v2611_v56 = vsub.f32 %v2588_v55, %v1713_v33  ;;  %1737 = vadd.xlane.f32.xlu1 %v1728_v35 }
 0x2a7   :  { %v1701_v59 = vpop.xlane.xlu1 %1700 }
 0x2a8   :  { %v1714_v62 = vmul.f32 0.0078125, %v1701_v59  ;;  %v1729_v60 = vmul.f32 %v2611_v56, %v2611_v56 }
 0x2aa   :  { %v2615_v63 = vsub.f32 %v1689_v6, %v1714_v62  ;;  %1739 = vadd.xlane.f32.xlu0 %v1729_v60 }
 0x2ab   :  { %v1703_v28 = vpop.xlane.xlu0 %1702 }
 0x2ac   :  { %v1715_v1 = vmul.f32 0.0078125, %v1703_v28  ;;  %v1730_v53 = vmul.f32 %v2615_v63, %v2615_v63 }
 0x2ae   :  { %v2619_v31 = vsub.f32 %v1690_v14, %v1715_v1  ;;  %1741 = vadd.xlane.f32.xlu1 %v1730_v53 }
 0x2af   :  { %v1705_v2 = vpop.xlane.xlu1 %1704 }
 0x2b0   :  { %v1716_v55 = vmul.f32 0.0078125, %v1705_v2  ;;  %v1731_v3 = vmul.f32 %v2619_v31, %v2619_v31 }
 0x2b2   :  { %v2623_v58 = vsub.f32 %v1691_v22, %v1716_v55  ;;  %1743 = vadd.xlane.f32.xlu0 %v1731_v3 }
 0x2b3   :  { %v1707_v4 = vpop.xlane.xlu0 %1706 }
 0x2b4   :  { %v1717_v6 = vmul.f32 0.0078125, %v1707_v4  ;;  %v1732_v7 = vmul.f32 %v2623_v58, %v2623_v58 }
 0x2b6   :  { %v2627_v8 = vsub.f32 %v1692_v47, %v1717_v6  ;;  %1745 = vadd.xlane.f32.xlu1 %v1732_v7 }
 0x2b7   :  { %v1709_v61 = vpop.xlane.xlu1 %1708 }
 0x2b8   :  { %v1718_v36 = vmul.f32 0.0078125, %v1709_v61  ;;  %v1733_v38 = vmul.f32 %v2627_v8, %v2627_v8 }
 0x2ba   :  { %v2631_v5 = vsub.f32 %v1693_v30, %v1718_v36  ;;  %1747 = vadd.xlane.f32.xlu0 %v1733_v38 }
 0x2bc   :  { %v1734_v9 = vmul.f32 %v2631_v5, %v2631_v5 }
 0x2be   :  { %1749 = vadd.xlane.f32.xlu1 %v1734_v9 }
 0x32b   :  { %v1736_v57 = vpop.xlane.xlu0 %1735 }
 0x32c   :  { %v1751_v34 = vmul.f32 0.0078125, %v1736_v57 }
 0x32e   :  { %v1759_v32 = vadd.f32 1e-05, %v1751_v34 }
 0x32f   :  { %v1738_v10 = vpop.xlane.xlu1 %1737 }
 0x330   :  { %2207 = vrsqrt.f32 %v1759_v32  ;;  %v1752_v49 = vmul.f32 0.0078125, %v1738_v10 }
 0x332   :  { %v1760_v12 = vadd.f32 1e-05, %v1752_v49 }
 0x333   :  { %v1740_v14 = vpop.xlane.xlu0 %1739 }
 0x334   :  { %2209 = vrsqrt.f32 %v1760_v12  ;;  %v1753_v11 = vmul.f32 0.0078125, %v1740_v14 }
 0x336   :  { %v1761_v19 = vadd.f32 1e-05, %v1753_v11 }
 0x337   :  { %v1742_v15 = vpop.xlane.xlu1 %1741 }
 0x338   :  { %2211 = vrsqrt.f32 %v1761_v19  ;;  %v1754_v17 = vmul.f32 0.0078125, %v1742_v15 }
 0x33a   :  { %v1762_v16 = vadd.f32 1e-05, %v1754_v17 }
 0x33b   :  { %v1744_v42 = vpop.xlane.xlu0 %1743 }
 0x33c   :  { %2213 = vrsqrt.f32 %v1762_v16  ;;  %v1755_v43 = vmul.f32 0.0078125, %v1744_v42 }
 0x33d   :  { %v2208_v18 = vpop.eup %2207 }
 0x33e   :  { %v1775_v21 = vmul.f32 %v2208_v18, %v1719_v50  ;;  %v1763_v37 = vadd.f32 1e-05, %v1755_v43 }
 0x33f   :  { %v1746_v22 = vpop.xlane.xlu1 %1745 }
 0x340   :  { %v1790_v23 = vmul.f32 %v1969_v20, %v1775_v21  ;;  %2215 = vrsqrt.f32 %v1763_v37  ;;  %v1756_v24 = vmul.f32 0.0078125, %v1746_v22 }
 0x341   :  { %v2210_v25 = vpop.eup %2209 }
 0x342   :  { %v1805_v26 = vadd.f32 %v1970_v40, %v1790_v23  ;;  %v1776_v39 = vmul.f32 %v2210_v25, %v2606_v52  ;;  %v1764_v41 = vadd.f32 1e-05, %v1756_v24 }
 0x343   :  { %v1748_v44 = vpop.xlane.xlu0 %1747 }
 0x344   :  { %1813 = vst [vmem:[#allocation10] sm:$0xff] %v1805_v26  ;;  %v1791_v45 = vmul.f32 %v1969_v20, %v1776_v39  ;;  %2217 = vrsqrt.f32 %v1764_v41  ;;  %v1757_v47 = vmul.f32 0.0078125, %v1748_v44 }
 0x345   :  { %v2212_v48 = vpop.eup %2211 }
 0x346   :  { %v1806_v29 = vadd.f32 %v1970_v40, %v1791_v45  ;;  %v1777_v30 = vmul.f32 %v2212_v48, %v2611_v56  ;;  %v1765_v0 = vadd.f32 1e-05, %v1757_v47 }
 0x347   :  { %v1750_v46 = vpop.xlane.xlu1 %1749 }
 0x348   :  { %1814 = vst [vmem:[#allocation10 + $0x8] sm:$0xff] %v1806_v29  ;;  %v1792_v50 = vmul.f32 %v1969_v20, %v1777_v30  ;;  %2219 = vrsqrt.f32 %v1765_v0  ;;  %v1758_v27 = vmul.f32 0.0078125, %v1750_v46 }
 0x349   :  { %v2214_v13 = vpop.eup %2213 }
 0x34a   :  { %v1807_v51 = vadd.f32 %v1970_v40, %v1792_v50  ;;  %v1778_v52 = vmul.f32 %v2214_v13, %v2615_v63  ;;  %v1766_v54 = vadd.f32 1e-05, %v1758_v27 }
 0x34c   :  { %1815 = vst [vmem:[#allocation10 + $0x10] sm:$0xff] %v1807_v51  ;;  %v1793_v33 = vmul.f32 %v1969_v20, %v1778_v52  ;;  %2221 = vrsqrt.f32 %v1766_v54 }
 0x34d   :  { %v2216_v35 = vpop.eup %2215 }
 0x34e   :  { %v1808_v59 = vadd.f32 %v1970_v40, %v1793_v33  ;;  %v1779_v62 = vmul.f32 %v2216_v35, %v2619_v31 }
 0x350   :  { %1816 = vst [vmem:[#allocation10 + $0x18] sm:$0xff] %v1808_v59  ;;  %v1794_v56 = vmul.f32 %v1969_v20, %v1779_v62 }
 0x351   :  { %v2218_v60 = vpop.eup %2217 }
 0x352   :  { %v1809_v28 = vadd.f32 %v1970_v40, %v1794_v56  ;;  %v1780_v1 = vmul.f32 %v2218_v60, %v2623_v58 }
 0x354   :  { %1817 = vst [vmem:[#allocation10 + $0x20] sm:$0xff] %v1809_v28  ;;  %v1795_v53 = vmul.f32 %v1969_v20, %v1780_v1 }
 0x355   :  { %v2220_v2 = vpop.eup %2219 }
 0x356   :  { %v1810_v55 = vadd.f32 %v1970_v40, %v1795_v53  ;;  %v1781_v63 = vmul.f32 %v2220_v2, %v2627_v8 }
 0x358   :  { %1818 = vst [vmem:[#allocation10 + $0x28] sm:$0xff] %v1810_v55  ;;  %v1796_v3 = vmul.f32 %v1969_v20, %v1781_v63 }
 0x359   :  { %v2222_v4 = vpop.eup %2221 }
 0x35a   :  { %v1811_v6 = vadd.f32 %v1970_v40, %v1796_v3  ;;  %v1782_v7 = vmul.f32 %v2222_v4, %v2631_v5 }
 0x35c   :  { %1819 = vst [vmem:[#allocation10 + $0x30] sm:$0xff] %v1811_v6  ;;  %v1797_v31 = vmul.f32 %v1969_v20, %v1782_v7 }
 0x35e   :  { %v1812_v61 = vadd.f32 %v1970_v40, %v1797_v31 }
 0x360   :  { %1820 = vst [vmem:[#allocation10 + $0x38] sm:$0xff] %v1812_v61 }
 0x361   :  { %2322 = shalt.err (!%p2319_p10)
}
 0x362   :  { %1832 = dma.vmem_to_hbm [thread:$0]  %s1827_s6, 1024, %s2661_s7, [#allocation4], %s2343_s11, %s2343_s11, %s2344_s12  }
 0x363   :  { %2337 = dma.done.wait [#allocation4], 1024  }
 0x364   :  { %2338 = vsyncadd [#allocation4], 4294966272 }
 0x365   :  { %1836 = vsyncpa [#allocation3], 1 }
 0x366   :  { %1837 = vsyncpa [#allocation6], 1 }
 0x367   :  { %1838 = vsyncpa [#allocation9], 1 }
 0x368   :  { %1839 = vsyncpa [#allocation4], 1 }

</bundles_post_ra>
